<compile_context>
chip_gen: v7x
topology: tpu7x:2x2x1
jax: 0.10.0
libtpu: 0.0.40
codegen_flags: <defaults>
</compile_context>

<pallas_src>
import functools
import math

import jax
import jax.numpy as jnp
from jax import lax
from jax.experimental import pallas as pl
from jax.experimental.pallas import tpu as pltpu


CONFIG = {
    "embeddingNum": 32,    # E  (stands in for 768 in the real model)
    "headNum": 4,          # H  -> Dh = E / H = 8
    "feedForwardDim": 64,  # F
    "layerNum": 2,         # L
    "maxLen": 16,
    "vocabSize": 32,       # len(config['word2index'])
}

_LN_EPS = 1e-5  # nn.LayerNorm default


def _gelu_tanh(x):
    # TODO(synk): PyTorch nn.GELU() defaults to the exact erf form; the tanh
    # approximation is used for robust Mosaic lowering (max |diff| ~3e-3).
    c = math.sqrt(2.0 / math.pi)
    return 0.5 * x * (1.0 + jnp.tanh(c * (x + 0.044715 * (x * x * x))))


def _layer_norm(x, gamma, beta):
    mean = jnp.mean(x, axis=-1, keepdims=True)
    xc = x - mean
    var = jnp.mean(xc * xc, axis=-1, keepdims=True)
    return xc * lax.rsqrt(var + _LN_EPS) * gamma + beta


def _bert_kernel(ids_ref, segs_ref, tok_ref, sege_ref, pos_ref,
                 wqkv_ref, bqkv_ref, g1_ref, bt1_ref,
                 wf1_ref, bf1_ref, wf2_ref, bf2_ref, g2_ref, bt2_ref,
                 emb_out_ref, pool_out_ref, attn_ref,
                 *, B, S, E, H, L, vocab, inv_scale):
    Dh = E // H
    N = B * S

    # ---- bertEmbedding: token + segment + position --------------------------
    ids = ids_ref[...]                                          # (N, 1) int32
    onehot = ids == lax.broadcasted_iota(jnp.int32, (N, vocab), 1)
    tok = jnp.dot(onehot.astype(jnp.float32), tok_ref[...],
                  preferred_element_type=jnp.float32)           # (N, E)

    seg_is0 = segs_ref[...] == 0                                # (N, 1) bool
    seg = jnp.where(seg_is0, sege_ref[0:1, :], sege_ref[1:2, :])  # (N, E)

    pos = jnp.concatenate([pos_ref[...] for _ in range(B)], axis=0)  # (N, E)

    x = tok + seg + pos                                         # (N, E) f32

    # ---- BackBone stack ------------------------------------------------------
    # Faithful to the PyTorch forward: the layerNum-deep Sequential is applied
    # layerNum times.
    for _rep in range(L):
        for l in range(L):
            # MutiHeadAttention: fused QKV projection for all heads at once.
            proj = jnp.dot(x, wqkv_ref[l],
                           preferred_element_type=jnp.float32) + bqkv_ref[l]
            for b in range(B):
                r0, r1 = b * S, (b + 1) * S
                for h in range(H):
                    c = h * Dh
                    q = proj[r0:r1, 0 * E + c:0 * E + c + Dh]    # (S, Dh)
                    k = proj[r0:r1, 1 * E + c:1 * E + c + Dh]    # (S, Dh)
                    v = proj[r0:r1, 2 * E + c:2 * E + c + Dh]    # (S, Dh)
                    # q @ k^T without materializing the transpose.
                    s = lax.dot_general(
                        q, k, (((1,), (1,)), ((), ())),
                        preferred_element_type=jnp.float32) * inv_scale
                    s = s - jnp.max(s, axis=-1, keepdims=True)
                    p = jnp.exp(s)
                    p = p * pl.reciprocal(
                        jnp.sum(p, axis=-1, keepdims=True), approx=True)
                    z = jnp.dot(p, v, preferred_element_type=jnp.float32)
                    attn_ref[r0:r1, c:c + Dh] = z
            mha = attn_ref[...]                                  # (N, E)

            # AddNorm1 (Dropout(0.1) is identity in eval/inference forward).
            h1 = _layer_norm(x + mha, g1_ref[l], bt1_ref[l])

            # FeedForward: Linear -> GELU -> Linear.
            ff = jnp.dot(h1, wf1_ref[l],
                         preferred_element_type=jnp.float32) + bf1_ref[l]
            ff = _gelu_tanh(ff)
            ff = jnp.dot(ff, wf2_ref[l],
                         preferred_element_type=jnp.float32) + bf2_ref[l]

            # AddNorm2
            x = _layer_norm(h1 + ff, g2_ref[l], bt2_ref[l])

    # ---- outputs: final embedding + Pooler (token 0 of each sequence) -------
    emb_out_ref[...] = x.astype(emb_out_ref.dtype)
    for b in range(B):
        pool_out_ref[b:b + 1, :] = x[b * S:b * S + 1, :].astype(pool_out_ref.dtype)


def bert_forward(datas, segments, params, config):
    """datas/segments: (B, S) int32.  Returns (embedding (B,S,E), pooled (B,E))."""
    B, S = datas.shape
    E = config["embeddingNum"]
    H = config["headNum"]
    L = config["layerNum"]
    V = params["tok_emb"].shape[0]
    N = B * S

    ids = datas.reshape(N, 1).astype(jnp.int32)
    segs = segments.reshape(N, 1).astype(jnp.int32)
    pos = params["pos_emb"][:S]     # positionEmbedding(arange(0, bLen))

    kernel = functools.partial(
        _bert_kernel, B=B, S=S, E=E, H=H, L=L, vocab=V,
        inv_scale=1.0 / math.sqrt(E / H))

    emb_flat, pooled = pl.pallas_call(
        kernel,
        out_shape=(jax.ShapeDtypeStruct((N, E), jnp.float32),
                   jax.ShapeDtypeStruct((B, E), jnp.float32)),
        scratch_shapes=[pltpu.VMEM((N, E), jnp.float32)],
    )(ids, segs,
      params["tok_emb"], params["seg_emb"], pos,
      params["w_qkv"], params["b_qkv"], params["ln1_g"], params["ln1_b"],
      params["w_ff1"], params["b_ff1"], params["w_ff2"], params["b_ff2"],
      params["ln2_g"], params["ln2_b"])

    return emb_flat.reshape(B, S, E), pooled


def _reference(datas, segments, params, config):
    """Pure-JAX reference mirroring the PyTorch module math (per-head, unfused)."""
    E = config["embeddingNum"]
    H = config["headNum"]
    L = config["layerNum"]
    Dh = E // H
    B, S = datas.shape
    scale = math.sqrt(E / H)

    x = (params["tok_emb"][datas] + params["seg_emb"][segments]
         + params["pos_emb"][:S][None, :, :])

    for _rep in range(L):
        for l in range(L):
            wqkv = params["w_qkv"][l]
            bqkv = params["b_qkv"][l][0]
            heads = []
            for h in range(H):
                c = h * Dh
                q = x @ wqkv[:, 0 * E + c:0 * E + c + Dh] + bqkv[0 * E + c:0 * E + c + Dh]
                k = x @ wqkv[:, 1 * E + c:1 * E + c + Dh] + bqkv[1 * E + c:1 * E + c + Dh]
                v = x @ wqkv[:, 2 * E + c:2 * E + c + Dh] + bqkv[2 * E + c:2 * E + c + Dh]
                p = jax.nn.softmax((q @ jnp.swapaxes(k, -1, -2)) / scale, axis=-1)
                heads.append(p @ v)
            mha = jnp.concatenate(heads, axis=-1)
            h1 = _layer_norm(x + mha, params["ln1_g"][l][0], params["ln1_b"][l][0])
            ff = _gelu_tanh(h1 @ params["w_ff1"][l] + params["b_ff1"][l][0])
            ff = ff @ params["w_ff2"][l] + params["b_ff2"][l][0]
            x = _layer_norm(h1 + ff, params["ln2_g"][l][0], params["ln2_b"][l][0])
    return x, x[:, 0, :]


if __name__ == "__main__":
    cfg = CONFIG
    E, H, L = cfg["embeddingNum"], cfg["headNum"], cfg["layerNum"]
    F, V, maxLen = cfg["feedForwardDim"], cfg["vocabSize"], cfg["maxLen"]
    B, S = 2, 8

    key = jax.random.PRNGKey(0)
    keys = jax.random.split(key, 12)

    bound_e = 1.0 / math.sqrt(E)
    bound_f = 1.0 / math.sqrt(F)
    params = {
        "tok_emb": 0.02 * jax.random.normal(keys[0], (V, E), jnp.float32),
        "seg_emb": 0.02 * jax.random.normal(keys[1], (2, E), jnp.float32),
        "pos_emb": 0.02 * jax.random.normal(keys[2], (maxLen, E), jnp.float32),
        # Fused per-layer QKV: columns [0:E]=Q, [E:2E]=K, [2E:3E]=V, each the
        # head-wise concat of the (E, Dh) nn.Linear weights (pre-transposed so
        # y = x @ W + b matches PyTorch's x @ W_pt.T + b exactly).
        "w_qkv": jax.random.uniform(keys[3], (L, E, 3 * E), jnp.float32, -bound_e, bound_e),
        "b_qkv": jax.random.uniform(keys[4], (L, 1, 3 * E), jnp.float32, -bound_e, bound_e),
        "ln1_g": jnp.ones((L, 1, E), jnp.float32),   # nn.LayerNorm default init
        "ln1_b": jnp.zeros((L, 1, E), jnp.float32),
        "w_ff1": jax.random.uniform(keys[5], (L, E, F), jnp.float32, -bound_e, bound_e),
        "b_ff1": jax.random.uniform(keys[6], (L, 1, F), jnp.float32, -bound_e, bound_e),
        "w_ff2": jax.random.uniform(keys[7], (L, F, E), jnp.float32, -bound_f, bound_f),
        "b_ff2": jax.random.uniform(keys[8], (L, 1, E), jnp.float32, -bound_f, bound_f),
        "ln2_g": jnp.ones((L, 1, E), jnp.float32),
        "ln2_b": jnp.zeros((L, 1, E), jnp.float32),
    }

    datas = jax.random.randint(keys[9], (B, S), 0, V, dtype=jnp.int32)
    segments = jax.random.randint(keys[10], (B, S), 0, 2, dtype=jnp.int32)

    emb, pooled = bert_forward(datas, segments, params, cfg)
    emb, pooled = jax.block_until_ready((emb, pooled))

    emb_ref, pooled_ref = _reference(datas, segments, params, cfg)

    assert emb.shape == (B, S, E) and pooled.shape == (B, E)
    # pl.reciprocal(approx=True) in the softmax gives ~1e-4-level relative
    # differences; tolerance loosened accordingly (per the perf review).
    assert jnp.allclose(emb, emb_ref, atol=5e-3, rtol=5e-3), "embedding mismatch"
    assert jnp.allclose(pooled, pooled_ref, atol=5e-3, rtol=5e-3), "pooler mismatch"

    print("KERNEL_OK")
</pallas_src>

<mosaic_0001>
module attributes {stable_mosaic.version = 11 : i64} {
  func.func @_bert_kernel(%arg0: memref<16x1xi32, #tpu.memory_space<vmem>>, %arg1: memref<16x1xi32, #tpu.memory_space<vmem>>, %arg2: memref<32x32xf32, #tpu.memory_space<vmem>>, %arg3: memref<2x32xf32, #tpu.memory_space<vmem>>, %arg4: memref<8x32xf32, #tpu.memory_space<vmem>>, %arg5: memref<2x32x96xf32, #tpu.memory_space<vmem>>, %arg6: memref<2x1x96xf32, #tpu.memory_space<vmem>>, %arg7: memref<2x1x32xf32, #tpu.memory_space<vmem>>, %arg8: memref<2x1x32xf32, #tpu.memory_space<vmem>>, %arg9: memref<2x32x64xf32, #tpu.memory_space<vmem>>, %arg10: memref<2x1x64xf32, #tpu.memory_space<vmem>>, %arg11: memref<2x64x32xf32, #tpu.memory_space<vmem>>, %arg12: memref<2x1x32xf32, #tpu.memory_space<vmem>>, %arg13: memref<2x1x32xf32, #tpu.memory_space<vmem>>, %arg14: memref<2x1x32xf32, #tpu.memory_space<vmem>>, %arg15: memref<16x32xf32, #tpu.memory_space<vmem>>, %arg16: memref<2x32xf32, #tpu.memory_space<vmem>>, %arg17: memref<16x32xf32, #tpu.memory_space<vmem>>) attributes {dimension_semantics = [], scalar_prefetch = 0 : i64, scratch_operands = 1 : i64, tpu.core_type = #tpu.core_type<tc>} {
    %c0 = arith.constant 0 : index
    %c0_0 = arith.constant 0 : index
    %0 = vector.load %arg0[%c0, %c0_0] : memref<16x1xi32, #tpu.memory_space<vmem>>, vector<16x1xi32>
    %1 = tpu.iota {dimensions = array<i32: 1>} : vector<16x32xi32>
    %2 = vector.broadcast %0 : vector<16x1xi32> to vector<16x32xi32>
    %3 = arith.cmpi eq, %2, %1 : vector<16x32xi32>
    %4 = arith.extui %3 : vector<16x32xi1> to vector<16x32xi32>
    %5 = arith.sitofp %4 : vector<16x32xi32> to vector<16x32xf32>
    %c0_1 = arith.constant 0 : index
    %c0_2 = arith.constant 0 : index
    %6 = vector.load %arg2[%c0_1, %c0_2] : memref<32x32xf32, #tpu.memory_space<vmem>>, vector<32x32xf32>
    %cst = arith.constant dense<0.000000e+00> : vector<16x32xf32>
    %7 = tpu.matmul %5, %6, %cst {dimension_numbers = #tpu.dot_dimension_numbers<[1], [0], [0], [1], [0, 0, 1, 1], [], []>} : vector<16x32xf32>, vector<32x32xf32>, vector<16x32xf32> -> vector<16x32xf32>
    %c0_3 = arith.constant 0 : index
    %c0_4 = arith.constant 0 : index
    %8 = vector.load %arg1[%c0_3, %c0_4] : memref<16x1xi32, #tpu.memory_space<vmem>>, vector<16x1xi32>
    %c0_i32 = arith.constant 0 : i32
    %9 = vector.broadcast %c0_i32 : i32 to vector<16x1xi32>
    %10 = arith.cmpi eq, %8, %9 : vector<16x1xi32>
    %c0_5 = arith.constant 0 : index
    %c0_6 = arith.constant 0 : index
    %11 = vector.load %arg3[%c0_5, %c0_6] : memref<2x32xf32, #tpu.memory_space<vmem>>, vector<1x32xf32>
    %c1 = arith.constant 1 : index
    %c0_7 = arith.constant 0 : index
    %12 = vector.load %arg3[%c1, %c0_7] : memref<2x32xf32, #tpu.memory_space<vmem>>, vector<1x32xf32>
    %13 = vector.shape_cast %10 : vector<16x1xi1> to vector<16x1xi1>
    %14 = vector.broadcast %13 : vector<16x1xi1> to vector<16x32xi1>
    %15 = vector.shape_cast %11 : vector<1x32xf32> to vector<1x32xf32>
    %16 = vector.broadcast %15 : vector<1x32xf32> to vector<16x32xf32>
    %17 = vector.shape_cast %12 : vector<1x32xf32> to vector<1x32xf32>
    %18 = vector.broadcast %17 : vector<1x32xf32> to vector<16x32xf32>
    %19 = arith.select %14, %16, %18 : vector<16x32xi1>, vector<16x32xf32>
    %c0_8 = arith.constant 0 : index
    %c0_9 = arith.constant 0 : index
    %20 = vector.load %arg4[%c0_8, %c0_9] : memref<8x32xf32, #tpu.memory_space<vmem>>, vector<8x32xf32>
    %c0_10 = arith.constant 0 : index
    %c0_11 = arith.constant 0 : index
    %21 = vector.load %arg4[%c0_10, %c0_11] : memref<8x32xf32, #tpu.memory_space<vmem>>, vector<8x32xf32>
    %22 = tpu.concatenate %20, %21 in 0 : vector<8x32xf32>, vector<8x32xf32> -> vector<16x32xf32>
    %23 = arith.addf %7, %19 : vector<16x32xf32>
    %24 = arith.addf %23, %22 : vector<16x32xf32>
    %c0_12 = arith.constant 0 : index
    %c0_13 = arith.constant 0 : index
    %c0_14 = arith.constant 0 : index
    %25 = vector.load %arg5[%c0_12, %c0_13, %c0_14] : memref<2x32x96xf32, #tpu.memory_space<vmem>>, vector<1x32x96xf32>
    %26 = vector.shape_cast %25 : vector<1x32x96xf32> to vector<32x96xf32>
    %cst_15 = arith.constant dense<0.000000e+00> : vector<16x96xf32>
    %27 = tpu.matmul %24, %26, %cst_15 {dimension_numbers = #tpu.dot_dimension_numbers<[1], [0], [0], [1], [0, 0, 1, 1], [], []>} : vector<16x32xf32>, vector<32x96xf32>, vector<16x96xf32> -> vector<16x96xf32>
    %c0_16 = arith.constant 0 : index
    %c0_17 = arith.constant 0 : index
    %c0_18 = arith.constant 0 : index
    %28 = vector.load %arg6[%c0_16, %c0_17, %c0_18] : memref<2x1x96xf32, #tpu.memory_space<vmem>>, vector<1x1x96xf32>
    %29 = vector.shape_cast %28 : vector<1x1x96xf32> to vector<1x96xf32>
    %30 = vector.broadcast %29 : vector<1x96xf32> to vector<16x96xf32>
    %31 = arith.addf %27, %30 : vector<16x96xf32>
    %32 = vector.extract_strided_slice %31 {offsets = [0, 0], sizes = [8, 8], strides = [1, 1]} : vector<16x96xf32> to vector<8x8xf32>
    %33 = vector.extract_strided_slice %31 {offsets = [0, 32], sizes = [8, 8], strides = [1, 1]} : vector<16x96xf32> to vector<8x8xf32>
    %34 = vector.extract_strided_slice %31 {offsets = [0, 64], sizes = [8, 8], strides = [1, 1]} : vector<16x96xf32> to vector<8x8xf32>
    %cst_19 = arith.constant dense<0.000000e+00> : vector<8x8xf32>
    %35 = tpu.matmul %32, %33, %cst_19 {dimension_numbers = #tpu.dot_dimension_numbers<[1], [1], [0], [0], [0, 0, 1, 0], [], []>} : vector<8x8xf32>, vector<8x8xf32>, vector<8x8xf32> -> vector<8x8xf32>
    %cst_20 = arith.constant 0.353553385 : f32
    %36 = vector.broadcast %cst_20 : f32 to vector<8x8xf32>
    %37 = arith.mulf %35, %36 : vector<8x8xf32>
    %cst_21 = arith.constant dense<0xFF800000> : vector<8xf32>
    %38 = vector.multi_reduction <maximumf>, %37, %cst_21 [1] : vector<8x8xf32> to vector<8xf32>
    %39 = vector.shape_cast %38 : vector<8xf32> to vector<8x1xf32>
    %40 = vector.broadcast %39 : vector<8x1xf32> to vector<8x8xf32>
    %41 = arith.subf %37, %40 : vector<8x8xf32>
    %42 = math.exp %41 : vector<8x8xf32>
    %cst_22 = arith.constant dense<0.000000e+00> : vector<8xf32>
    %43 = vector.multi_reduction <add>, %42, %cst_22 [1] : vector<8x8xf32> to vector<8xf32>
    %44 = vector.shape_cast %43 : vector<8xf32> to vector<8x1xf32>
    %45 = tpu.reciprocal %44 {approx = true} : vector<8x1xf32> -> vector<8x1xf32>
    %46 = vector.broadcast %45 : vector<8x1xf32> to vector<8x8xf32>
    %47 = arith.mulf %42, %46 : vector<8x8xf32>
    %cst_23 = arith.constant dense<0.000000e+00> : vector<8x8xf32>
    %48 = tpu.matmul %47, %34, %cst_23 {dimension_numbers = #tpu.dot_dimension_numbers<[1], [0], [0], [1], [0, 0, 1, 1], [], []>} : vector<8x8xf32>, vector<8x8xf32>, vector<8x8xf32> -> vector<8x8xf32>
    %c0_24 = arith.constant 0 : index
    %c0_25 = arith.constant 0 : index
    %49 = vector.load %arg17[%c0_24, %c0_25] : memref<16x32xf32, #tpu.memory_space<vmem>>, vector<8x8xf32>
    tpu.vector_store %arg17[%c0_24, %c0_25], %48 {strides = array<i32>} : memref<16x32xf32, #tpu.memory_space<vmem>>, vector<8x8xf32>,
    %50 = vector.extract_strided_slice %31 {offsets = [0, 8], sizes = [8, 8], strides = [1, 1]} : vector<16x96xf32> to vector<8x8xf32>
    %51 = vector.extract_strided_slice %31 {offsets = [0, 40], sizes = [8, 8], strides = [1, 1]} : vector<16x96xf32> to vector<8x8xf32>
    %52 = vector.extract_strided_slice %31 {offsets = [0, 72], sizes = [8, 8], strides = [1, 1]} : vector<16x96xf32> to vector<8x8xf32>
    %cst_26 = arith.constant dense<0.000000e+00> : vector<8x8xf32>
    %53 = tpu.matmul %50, %51, %cst_26 {dimension_numbers = #tpu.dot_dimension_numbers<[1], [1], [0], [0], [0, 0, 1, 0], [], []>} : vector<8x8xf32>, vector<8x8xf32>, vector<8x8xf32> -> vector<8x8xf32>
    %cst_27 = arith.constant 0.353553385 : f32
    %54 = vector.broadcast %cst_27 : f32 to vector<8x8xf32>
    %55 = arith.mulf %53, %54 : vector<8x8xf32>
    %cst_28 = arith.constant dense<0xFF800000> : vector<8xf32>
    %56 = vector.multi_reduction <maximumf>, %55, %cst_28 [1] : vector<8x8xf32> to vector<8xf32>
    %57 = vector.shape_cast %56 : vector<8xf32> to vector<8x1xf32>
    %58 = vector.broadcast %57 : vector<8x1xf32> to vector<8x8xf32>
    %59 = arith.subf %55, %58 : vector<8x8xf32>
    %60 = math.exp %59 : vector<8x8xf32>
    %cst_29 = arith.constant dense<0.000000e+00> : vector<8xf32>
    %61 = vector.multi_reduction <add>, %60, %cst_29 [1] : vector<8x8xf32> to vector<8xf32>
    %62 = vector.shape_cast %61 : vector<8xf32> to vector<8x1xf32>
    %63 = tpu.reciprocal %62 {approx = true} : vector<8x1xf32> -> vector<8x1xf32>
    %64 = vector.broadcast %63 : vector<8x1xf32> to vector<8x8xf32>
    %65 = arith.mulf %60, %64 : vector<8x8xf32>
    %cst_30 = arith.constant dense<0.000000e+00> : vector<8x8xf32>
    %66 = tpu.matmul %65, %52, %cst_30 {dimension_numbers = #tpu.dot_dimension_numbers<[1], [0], [0], [1], [0, 0, 1, 1], [], []>} : vector<8x8xf32>, vector<8x8xf32>, vector<8x8xf32> -> vector<8x8xf32>
    %c0_31 = arith.constant 0 : index
    %c8 = arith.constant 8 : index
    %67 = vector.load %arg17[%c0_31, %c8] : memref<16x32xf32, #tpu.memory_space<vmem>>, vector<8x8xf32>
    tpu.vector_store %arg17[%c0_31, %c8], %66 {strides = array<i32>} : memref<16x32xf32, #tpu.memory_space<vmem>>, vector<8x8xf32>,
    %68 = vector.extract_strided_slice %31 {offsets = [0, 16], sizes = [8, 8], strides = [1, 1]} : vector<16x96xf32> to vector<8x8xf32>
    %69 = vector.extract_strided_slice %31 {offsets = [0, 48], sizes = [8, 8], strides = [1, 1]} : vector<16x96xf32> to vector<8x8xf32>
    %70 = vector.extract_strided_slice %31 {offsets = [0, 80], sizes = [8, 8], strides = [1, 1]} : vector<16x96xf32> to vector<8x8xf32>
    %cst_32 = arith.constant dense<0.000000e+00> : vector<8x8xf32>
    %71 = tpu.matmul %68, %69, %cst_32 {dimension_numbers = #tpu.dot_dimension_numbers<[1], [1], [0], [0], [0, 0, 1, 0], [], []>} : vector<8x8xf32>, vector<8x8xf32>, vector<8x8xf32> -> vector<8x8xf32>
    %cst_33 = arith.constant 0.353553385 : f32
    %72 = vector.broadcast %cst_33 : f32 to vector<8x8xf32>
    %73 = arith.mulf %71, %72 : vector<8x8xf32>
    %cst_34 = arith.constant dense<0xFF800000> : vector<8xf32>
    %74 = vector.multi_reduction <maximumf>, %73, %cst_34 [1] : vector<8x8xf32> to vector<8xf32>
    %75 = vector.shape_cast %74 : vector<8xf32> to vector<8x1xf32>
    %76 = vector.broadcast %75 : vector<8x1xf32> to vector<8x8xf32>
    %77 = arith.subf %73, %76 : vector<8x8xf32>
    %78 = math.exp %77 : vector<8x8xf32>
    %cst_35 = arith.constant dense<0.000000e+00> : vector<8xf32>
    %79 = vector.multi_reduction <add>, %78, %cst_35 [1] : vector<8x8xf32> to vector<8xf32>
    %80 = vector.shape_cast %79 : vector<8xf32> to vector<8x1xf32>
    %81 = tpu.reciprocal %80 {approx = true} : vector<8x1xf32> -> vector<8x1xf32>
    %82 = vector.broadcast %81 : vector<8x1xf32> to vector<8x8xf32>
    %83 = arith.mulf %78, %82 : vector<8x8xf32>
    %cst_36 = arith.constant dense<0.000000e+00> : vector<8x8xf32>
    %84 = tpu.matmul %83, %70, %cst_36 {dimension_numbers = #tpu.dot_dimension_numbers<[1], [0], [0], [1], [0, 0, 1, 1], [], []>} : vector<8x8xf32>, vector<8x8xf32>, vector<8x8xf32> -> vector<8x8xf32>
    %c0_37 = arith.constant 0 : index
    %c16 = arith.constant 16 : index
    %85 = vector.load %arg17[%c0_37, %c16] : memref<16x32xf32, #tpu.memory_space<vmem>>, vector<8x8xf32>
    tpu.vector_store %arg17[%c0_37, %c16], %84 {strides = array<i32>} : memref<16x32xf32, #tpu.memory_space<vmem>>, vector<8x8xf32>,
    %86 = vector.extract_strided_slice %31 {offsets = [0, 24], sizes = [8, 8], strides = [1, 1]} : vector<16x96xf32> to vector<8x8xf32>
    %87 = vector.extract_strided_slice %31 {offsets = [0, 56], sizes = [8, 8], strides = [1, 1]} : vector<16x96xf32> to vector<8x8xf32>
    %88 = vector.extract_strided_slice %31 {offsets = [0, 88], sizes = [8, 8], strides = [1, 1]} : vector<16x96xf32> to vector<8x8xf32>
    %cst_38 = arith.constant dense<0.000000e+00> : vector<8x8xf32>
    %89 = tpu.matmul %86, %87, %cst_38 {dimension_numbers = #tpu.dot_dimension_numbers<[1], [1], [0], [0], [0, 0, 1, 0], [], []>} : vector<8x8xf32>, vector<8x8xf32>, vector<8x8xf32> -> vector<8x8xf32>
    %cst_39 = arith.constant 0.353553385 : f32
    %90 = vector.broadcast %cst_39 : f32 to vector<8x8xf32>
    %91 = arith.mulf %89, %90 : vector<8x8xf32>
    %cst_40 = arith.constant dense<0xFF800000> : vector<8xf32>
    %92 = vector.multi_reduction <maximumf>, %91, %cst_40 [1] : vector<8x8xf32> to vector<8xf32>
    %93 = vector.shape_cast %92 : vector<8xf32> to vector<8x1xf32>
    %94 = vector.broadcast %93 : vector<8x1xf32> to vector<8x8xf32>
    %95 = arith.subf %91, %94 : vector<8x8xf32>
    %96 = math.exp %95 : vector<8x8xf32>
    %cst_41 = arith.constant dense<0.000000e+00> : vector<8xf32>
    %97 = vector.multi_reduction <add>, %96, %cst_41 [1] : vector<8x8xf32> to vector<8xf32>
    %98 = vector.shape_cast %97 : vector<8xf32> to vector<8x1xf32>
    %99 = tpu.reciprocal %98 {approx = true} : vector<8x1xf32> -> vector<8x1xf32>
    %100 = vector.broadcast %99 : vector<8x1xf32> to vector<8x8xf32>
    %101 = arith.mulf %96, %100 : vector<8x8xf32>
    %cst_42 = arith.constant dense<0.000000e+00> : vector<8x8xf32>
    %102 = tpu.matmul %101, %88, %cst_42 {dimension_numbers = #tpu.dot_dimension_numbers<[1], [0], [0], [1], [0, 0, 1, 1], [], []>} : vector<8x8xf32>, vector<8x8xf32>, vector<8x8xf32> -> vector<8x8xf32>
    %c0_43 = arith.constant 0 : index
    %c24 = arith.constant 24 : index
    %103 = vector.load %arg17[%c0_43, %c24] : memref<16x32xf32, #tpu.memory_space<vmem>>, vector<8x8xf32>
    tpu.vector_store %arg17[%c0_43, %c24], %102 {strides = array<i32>} : memref<16x32xf32, #tpu.memory_space<vmem>>, vector<8x8xf32>,
    %104 = vector.extract_strided_slice %31 {offsets = [8, 0], sizes = [8, 8], strides = [1, 1]} : vector<16x96xf32> to vector<8x8xf32>
    %105 = vector.extract_strided_slice %31 {offsets = [8, 32], sizes = [8, 8], strides = [1, 1]} : vector<16x96xf32> to vector<8x8xf32>
    %106 = vector.extract_strided_slice %31 {offsets = [8, 64], sizes = [8, 8], strides = [1, 1]} : vector<16x96xf32> to vector<8x8xf32>
    %cst_44 = arith.constant dense<0.000000e+00> : vector<8x8xf32>
    %107 = tpu.matmul %104, %105, %cst_44 {dimension_numbers = #tpu.dot_dimension_numbers<[1], [1], [0], [0], [0, 0, 1, 0], [], []>} : vector<8x8xf32>, vector<8x8xf32>, vector<8x8xf32> -> vector<8x8xf32>
    %cst_45 = arith.constant 0.353553385 : f32
    %108 = vector.broadcast %cst_45 : f32 to vector<8x8xf32>
    %109 = arith.mulf %107, %108 : vector<8x8xf32>
    %cst_46 = arith.constant dense<0xFF800000> : vector<8xf32>
    %110 = vector.multi_reduction <maximumf>, %109, %cst_46 [1] : vector<8x8xf32> to vector<8xf32>
    %111 = vector.shape_cast %110 : vector<8xf32> to vector<8x1xf32>
    %112 = vector.broadcast %111 : vector<8x1xf32> to vector<8x8xf32>
    %113 = arith.subf %109, %112 : vector<8x8xf32>
    %114 = math.exp %113 : vector<8x8xf32>
    %cst_47 = arith.constant dense<0.000000e+00> : vector<8xf32>
    %115 = vector.multi_reduction <add>, %114, %cst_47 [1] : vector<8x8xf32> to vector<8xf32>
    %116 = vector.shape_cast %115 : vector<8xf32> to vector<8x1xf32>
    %117 = tpu.reciprocal %116 {approx = true} : vector<8x1xf32> -> vector<8x1xf32>
    %118 = vector.broadcast %117 : vector<8x1xf32> to vector<8x8xf32>
    %119 = arith.mulf %114, %118 : vector<8x8xf32>
    %cst_48 = arith.constant dense<0.000000e+00> : vector<8x8xf32>
    %120 = tpu.matmul %119, %106, %cst_48 {dimension_numbers = #tpu.dot_dimension_numbers<[1], [0], [0], [1], [0, 0, 1, 1], [], []>} : vector<8x8xf32>, vector<8x8xf32>, vector<8x8xf32> -> vector<8x8xf32>
    %c8_49 = arith.constant 8 : index
    %c0_50 = arith.constant 0 : index
    %121 = vector.load %arg17[%c8_49, %c0_50] : memref<16x32xf32, #tpu.memory_space<vmem>>, vector<8x8xf32>
    tpu.vector_store %arg17[%c8_49, %c0_50], %120 {strides = array<i32>} : memref<16x32xf32, #tpu.memory_space<vmem>>, vector<8x8xf32>,
    %122 = vector.extract_strided_slice %31 {offsets = [8, 8], sizes = [8, 8], strides = [1, 1]} : vector<16x96xf32> to vector<8x8xf32>
    %123 = vector.extract_strided_slice %31 {offsets = [8, 40], sizes = [8, 8], strides = [1, 1]} : vector<16x96xf32> to vector<8x8xf32>
    %124 = vector.extract_strided_slice %31 {offsets = [8, 72], sizes = [8, 8], strides = [1, 1]} : vector<16x96xf32> to vector<8x8xf32>
    %cst_51 = arith.constant dense<0.000000e+00> : vector<8x8xf32>
    %125 = tpu.matmul %122, %123, %cst_51 {dimension_numbers = #tpu.dot_dimension_numbers<[1], [1], [0], [0], [0, 0, 1, 0], [], []>} : vector<8x8xf32>, vector<8x8xf32>, vector<8x8xf32> -> vector<8x8xf32>
    %cst_52 = arith.constant 0.353553385 : f32
    %126 = vector.broadcast %cst_52 : f32 to vector<8x8xf32>
    %127 = arith.mulf %125, %126 : vector<8x8xf32>
    %cst_53 = arith.constant dense<0xFF800000> : vector<8xf32>
    %128 = vector.multi_reduction <maximumf>, %127, %cst_53 [1] : vector<8x8xf32> to vector<8xf32>
    %129 = vector.shape_cast %128 : vector<8xf32> to vector<8x1xf32>
    %130 = vector.broadcast %129 : vector<8x1xf32> to vector<8x8xf32>
    %131 = arith.subf %127, %130 : vector<8x8xf32>
    %132 = math.exp %131 : vector<8x8xf32>
    %cst_54 = arith.constant dense<0.000000e+00> : vector<8xf32>
    %133 = vector.multi_reduction <add>, %132, %cst_54 [1] : vector<8x8xf32> to vector<8xf32>
    %134 = vector.shape_cast %133 : vector<8xf32> to vector<8x1xf32>
    %135 = tpu.reciprocal %134 {approx = true} : vector<8x1xf32> -> vector<8x1xf32>
    %136 = vector.broadcast %135 : vector<8x1xf32> to vector<8x8xf32>
    %137 = arith.mulf %132, %136 : vector<8x8xf32>
    %cst_55 = arith.constant dense<0.000000e+00> : vector<8x8xf32>
    %138 = tpu.matmul %137, %124, %cst_55 {dimension_numbers = #tpu.dot_dimension_numbers<[1], [0], [0], [1], [0, 0, 1, 1], [], []>} : vector<8x8xf32>, vector<8x8xf32>, vector<8x8xf32> -> vector<8x8xf32>
    %c8_56 = arith.constant 8 : index
    %c8_57 = arith.constant 8 : index
    %139 = vector.load %arg17[%c8_56, %c8_57] : memref<16x32xf32, #tpu.memory_space<vmem>>, vector<8x8xf32>
    tpu.vector_store %arg17[%c8_56, %c8_57], %138 {strides = array<i32>} : memref<16x32xf32, #tpu.memory_space<vmem>>, vector<8x8xf32>,
    %140 = vector.extract_strided_slice %31 {offsets = [8, 16], sizes = [8, 8], strides = [1, 1]} : vector<16x96xf32> to vector<8x8xf32>
    %141 = vector.extract_strided_slice %31 {offsets = [8, 48], sizes = [8, 8], strides = [1, 1]} : vector<16x96xf32> to vector<8x8xf32>
    %142 = vector.extract_strided_slice %31 {offsets = [8, 80], sizes = [8, 8], strides = [1, 1]} : vector<16x96xf32> to vector<8x8xf32>
    %cst_58 = arith.constant dense<0.000000e+00> : vector<8x8xf32>
    %143 = tpu.matmul %140, %141, %cst_58 {dimension_numbers = #tpu.dot_dimension_numbers<[1], [1], [0], [0], [0, 0, 1, 0], [], []>} : vector<8x8xf32>, vector<8x8xf32>, vector<8x8xf32> -> vector<8x8xf32>
    %cst_59 = arith.constant 0.353553385 : f32
    %144 = vector.broadcast %cst_59 : f32 to vector<8x8xf32>
    %145 = arith.mulf %143, %144 : vector<8x8xf32>
    %cst_60 = arith.constant dense<0xFF800000> : vector<8xf32>
    %146 = vector.multi_reduction <maximumf>, %145, %cst_60 [1] : vector<8x8xf32> to vector<8xf32>
    %147 = vector.shape_cast %146 : vector<8xf32> to vector<8x1xf32>
    %148 = vector.broadcast %147 : vector<8x1xf32> to vector<8x8xf32>
    %149 = arith.subf %145, %148 : vector<8x8xf32>
    %150 = math.exp %149 : vector<8x8xf32>
    %cst_61 = arith.constant dense<0.000000e+00> : vector<8xf32>
    %151 = vector.multi_reduction <add>, %150, %cst_61 [1] : vector<8x8xf32> to vector<8xf32>
    %152 = vector.shape_cast %151 : vector<8xf32> to vector<8x1xf32>
    %153 = tpu.reciprocal %152 {approx = true} : vector<8x1xf32> -> vector<8x1xf32>
    %154 = vector.broadcast %153 : vector<8x1xf32> to vector<8x8xf32>
    %155 = arith.mulf %150, %154 : vector<8x8xf32>
    %cst_62 = arith.constant dense<0.000000e+00> : vector<8x8xf32>
    %156 = tpu.matmul %155, %142, %cst_62 {dimension_numbers = #tpu.dot_dimension_numbers<[1], [0], [0], [1], [0, 0, 1, 1], [], []>} : vector<8x8xf32>, vector<8x8xf32>, vector<8x8xf32> -> vector<8x8xf32>
    %c8_63 = arith.constant 8 : index
    %c16_64 = arith.constant 16 : index
    %157 = vector.load %arg17[%c8_63, %c16_64] : memref<16x32xf32, #tpu.memory_space<vmem>>, vector<8x8xf32>
    tpu.vector_store %arg17[%c8_63, %c16_64], %156 {strides = array<i32>} : memref<16x32xf32, #tpu.memory_space<vmem>>, vector<8x8xf32>,
    %158 = vector.extract_strided_slice %31 {offsets = [8, 24], sizes = [8, 8], strides = [1, 1]} : vector<16x96xf32> to vector<8x8xf32>
    %159 = vector.extract_strided_slice %31 {offsets = [8, 56], sizes = [8, 8], strides = [1, 1]} : vector<16x96xf32> to vector<8x8xf32>
    %160 = vector.extract_strided_slice %31 {offsets = [8, 88], sizes = [8, 8], strides = [1, 1]} : vector<16x96xf32> to vector<8x8xf32>
    %cst_65 = arith.constant dense<0.000000e+00> : vector<8x8xf32>
    %161 = tpu.matmul %158, %159, %cst_65 {dimension_numbers = #tpu.dot_dimension_numbers<[1], [1], [0], [0], [0, 0, 1, 0], [], []>} : vector<8x8xf32>, vector<8x8xf32>, vector<8x8xf32> -> vector<8x8xf32>
    %cst_66 = arith.constant 0.353553385 : f32
    %162 = vector.broadcast %cst_66 : f32 to vector<8x8xf32>
    %163 = arith.mulf %161, %162 : vector<8x8xf32>
    %cst_67 = arith.constant dense<0xFF800000> : vector<8xf32>
    %164 = vector.multi_reduction <maximumf>, %163, %cst_67 [1] : vector<8x8xf32> to vector<8xf32>
    %165 = vector.shape_cast %164 : vector<8xf32> to vector<8x1xf32>
    %166 = vector.broadcast %165 : vector<8x1xf32> to vector<8x8xf32>
    %167 = arith.subf %163, %166 : vector<8x8xf32>
    %168 = math.exp %167 : vector<8x8xf32>
    %cst_68 = arith.constant dense<0.000000e+00> : vector<8xf32>
    %169 = vector.multi_reduction <add>, %168, %cst_68 [1] : vector<8x8xf32> to vector<8xf32>
    %170 = vector.shape_cast %169 : vector<8xf32> to vector<8x1xf32>
    %171 = tpu.reciprocal %170 {approx = true} : vector<8x1xf32> -> vector<8x1xf32>
    %172 = vector.broadcast %171 : vector<8x1xf32> to vector<8x8xf32>
    %173 = arith.mulf %168, %172 : vector<8x8xf32>
    %cst_69 = arith.constant dense<0.000000e+00> : vector<8x8xf32>
    %174 = tpu.matmul %173, %160, %cst_69 {dimension_numbers = #tpu.dot_dimension_numbers<[1], [0], [0], [1], [0, 0, 1, 1], [], []>} : vector<8x8xf32>, vector<8x8xf32>, vector<8x8xf32> -> vector<8x8xf32>
    %c8_70 = arith.constant 8 : index
    %c24_71 = arith.constant 24 : index
    %175 = vector.load %arg17[%c8_70, %c24_71] : memref<16x32xf32, #tpu.memory_space<vmem>>, vector<8x8xf32>
    tpu.vector_store %arg17[%c8_70, %c24_71], %174 {strides = array<i32>} : memref<16x32xf32, #tpu.memory_space<vmem>>, vector<8x8xf32>,
    %c0_72 = arith.constant 0 : index
    %c0_73 = arith.constant 0 : index
    %176 = vector.load %arg17[%c0_72, %c0_73] : memref<16x32xf32, #tpu.memory_space<vmem>>, vector<16x32xf32>
    %177 = arith.addf %24, %176 : vector<16x32xf32>
    %c0_74 = arith.constant 0 : index
    %c0_75 = arith.constant 0 : index
    %c0_76 = arith.constant 0 : index
    %178 = vector.load %arg7[%c0_74, %c0_75, %c0_76] : memref<2x1x32xf32, #tpu.memory_space<vmem>>, vector<1x1x32xf32>
    %179 = vector.shape_cast %178 : vector<1x1x32xf32> to vector<1x32xf32>
    %c0_77 = arith.constant 0 : index
    %c0_78 = arith.constant 0 : index
    %c0_79 = arith.constant 0 : index
    %180 = vector.load %arg8[%c0_77, %c0_78, %c0_79] : memref<2x1x32xf32, #tpu.memory_space<vmem>>, vector<1x1x32xf32>
    %181 = vector.shape_cast %180 : vector<1x1x32xf32> to vector<1x32xf32>
    %cst_80 = arith.constant dense<0.000000e+00> : vector<16xf32>
    %182 = vector.multi_reduction <add>, %177, %cst_80 [1] : vector<16x32xf32> to vector<16xf32>
    %183 = vector.shape_cast %182 : vector<16xf32> to vector<16x1xf32>
    %cst_81 = arith.constant 3.200000e+01 : f32
    %184 = vector.broadcast %cst_81 : f32 to vector<16x1xf32>
    %185 = arith.divf %183, %184 : vector<16x1xf32>
    %186 = vector.broadcast %185 : vector<16x1xf32> to vector<16x32xf32>
    %187 = arith.subf %177, %186 : vector<16x32xf32>
    %188 = arith.mulf %187, %187 : vector<16x32xf32>
    %cst_82 = arith.constant dense<0.000000e+00> : vector<16xf32>
    %189 = vector.multi_reduction <add>, %188, %cst_82 [1] : vector<16x32xf32> to vector<16xf32>
    %190 = vector.shape_cast %189 : vector<16xf32> to vector<16x1xf32>
    %cst_83 = arith.constant 3.200000e+01 : f32
    %191 = vector.broadcast %cst_83 : f32 to vector<16x1xf32>
    %192 = arith.divf %190, %191 : vector<16x1xf32>
    %cst_84 = arith.constant 9.99999974E-6 : f32
    %193 = vector.broadcast %cst_84 : f32 to vector<16x1xf32>
    %194 = arith.addf %192, %193 : vector<16x1xf32>
    %195 = math.rsqrt %194 : vector<16x1xf32>
    %196 = vector.broadcast %195 : vector<16x1xf32> to vector<16x32xf32>
    %197 = arith.mulf %187, %196 : vector<16x32xf32>
    %198 = vector.broadcast %179 : vector<1x32xf32> to vector<16x32xf32>
    %199 = arith.mulf %197, %198 : vector<16x32xf32>
    %200 = vector.broadcast %181 : vector<1x32xf32> to vector<16x32xf32>
    %201 = arith.addf %199, %200 : vector<16x32xf32>
    %c0_85 = arith.constant 0 : index
    %c0_86 = arith.constant 0 : index
    %c0_87 = arith.constant 0 : index
    %202 = vector.load %arg9[%c0_85, %c0_86, %c0_87] : memref<2x32x64xf32, #tpu.memory_space<vmem>>, vector<1x32x64xf32>
    %203 = vector.shape_cast %202 : vector<1x32x64xf32> to vector<32x64xf32>
    %cst_88 = arith.constant dense<0.000000e+00> : vector<16x64xf32>
    %204 = tpu.matmul %201, %203, %cst_88 {dimension_numbers = #tpu.dot_dimension_numbers<[1], [0], [0], [1], [0, 0, 1, 1], [], []>} : vector<16x32xf32>, vector<32x64xf32>, vector<16x64xf32> -> vector<16x64xf32>
    %c0_89 = arith.constant 0 : index
    %c0_90 = arith.constant 0 : index
    %c0_91 = arith.constant 0 : index
    %205 = vector.load %arg10[%c0_89, %c0_90, %c0_91] : memref<2x1x64xf32, #tpu.memory_space<vmem>>, vector<1x1x64xf32>
    %206 = vector.shape_cast %205 : vector<1x1x64xf32> to vector<1x64xf32>
    %207 = vector.broadcast %206 : vector<1x64xf32> to vector<16x64xf32>
    %208 = arith.addf %204, %207 : vector<16x64xf32>
    %cst_92 = arith.constant 5.000000e-01 : f32
    %209 = vector.broadcast %cst_92 : f32 to vector<16x64xf32>
    %210 = arith.mulf %209, %208 : vector<16x64xf32>
    %211 = arith.mulf %208, %208 : vector<16x64xf32>
    %212 = arith.mulf %211, %208 : vector<16x64xf32>
    %cst_93 = arith.constant 4.471500e-02 : f32
    %213 = vector.broadcast %cst_93 : f32 to vector<16x64xf32>
    %214 = arith.mulf %213, %212 : vector<16x64xf32>
    %215 = arith.addf %208, %214 : vector<16x64xf32>
    %cst_94 = arith.constant 0.797884583 : f32
    %216 = vector.broadcast %cst_94 : f32 to vector<16x64xf32>
    %217 = arith.mulf %216, %215 : vector<16x64xf32>
    %218 = math.tanh %217 : vector<16x64xf32>
    %cst_95 = arith.constant 1.000000e+00 : f32
    %219 = vector.broadcast %cst_95 : f32 to vector<16x64xf32>
    %220 = arith.addf %219, %218 : vector<16x64xf32>
    %221 = arith.mulf %210, %220 : vector<16x64xf32>
    %c0_96 = arith.constant 0 : index
    %c0_97 = arith.constant 0 : index
    %c0_98 = arith.constant 0 : index
    %222 = vector.load %arg11[%c0_96, %c0_97, %c0_98] : memref<2x64x32xf32, #tpu.memory_space<vmem>>, vector<1x64x32xf32>
    %223 = vector.shape_cast %222 : vector<1x64x32xf32> to vector<64x32xf32>
    %cst_99 = arith.constant dense<0.000000e+00> : vector<16x32xf32>
    %224 = tpu.matmul %221, %223, %cst_99 {dimension_numbers = #tpu.dot_dimension_numbers<[1], [0], [0], [1], [0, 0, 1, 1], [], []>} : vector<16x64xf32>, vector<64x32xf32>, vector<16x32xf32> -> vector<16x32xf32>
    %c0_100 = arith.constant 0 : index
    %c0_101 = arith.constant 0 : index
    %c0_102 = arith.constant 0 : index
    %225 = vector.load %arg12[%c0_100, %c0_101, %c0_102] : memref<2x1x32xf32, #tpu.memory_space<vmem>>, vector<1x1x32xf32>
    %226 = vector.shape_cast %225 : vector<1x1x32xf32> to vector<1x32xf32>
    %227 = vector.broadcast %226 : vector<1x32xf32> to vector<16x32xf32>
    %228 = arith.addf %224, %227 : vector<16x32xf32>
    %229 = arith.addf %201, %228 : vector<16x32xf32>
    %c0_103 = arith.constant 0 : index
    %c0_104 = arith.constant 0 : index
    %c0_105 = arith.constant 0 : index
    %230 = vector.load %arg13[%c0_103, %c0_104, %c0_105] : memref<2x1x32xf32, #tpu.memory_space<vmem>>, vector<1x1x32xf32>
    %231 = vector.shape_cast %230 : vector<1x1x32xf32> to vector<1x32xf32>
    %c0_106 = arith.constant 0 : index
    %c0_107 = arith.constant 0 : index
    %c0_108 = arith.constant 0 : index
    %232 = vector.load %arg14[%c0_106, %c0_107, %c0_108] : memref<2x1x32xf32, #tpu.memory_space<vmem>>, vector<1x1x32xf32>
    %233 = vector.shape_cast %232 : vector<1x1x32xf32> to vector<1x32xf32>
    %cst_109 = arith.constant dense<0.000000e+00> : vector<16xf32>
    %234 = vector.multi_reduction <add>, %229, %cst_109 [1] : vector<16x32xf32> to vector<16xf32>
    %235 = vector.shape_cast %234 : vector<16xf32> to vector<16x1xf32>
    %cst_110 = arith.constant 3.200000e+01 : f32
    %236 = vector.broadcast %cst_110 : f32 to vector<16x1xf32>
    %237 = arith.divf %235, %236 : vector<16x1xf32>
    %238 = vector.broadcast %237 : vector<16x1xf32> to vector<16x32xf32>
    %239 = arith.subf %229, %238 : vector<16x32xf32>
    %240 = arith.mulf %239, %239 : vector<16x32xf32>
    %cst_111 = arith.constant dense<0.000000e+00> : vector<16xf32>
    %241 = vector.multi_reduction <add>, %240, %cst_111 [1] : vector<16x32xf32> to vector<16xf32>
    %242 = vector.shape_cast %241 : vector<16xf32> to vector<16x1xf32>
    %cst_112 = arith.constant 3.200000e+01 : f32
    %243 = vector.broadcast %cst_112 : f32 to vector<16x1xf32>
    %244 = arith.divf %242, %243 : vector<16x1xf32>
    %cst_113 = arith.constant 9.99999974E-6 : f32
    %245 = vector.broadcast %cst_113 : f32 to vector<16x1xf32>
    %246 = arith.addf %244, %245 : vector<16x1xf32>
    %247 = math.rsqrt %246 : vector<16x1xf32>
    %248 = vector.broadcast %247 : vector<16x1xf32> to vector<16x32xf32>
    %249 = arith.mulf %239, %248 : vector<16x32xf32>
    %250 = vector.broadcast %231 : vector<1x32xf32> to vector<16x32xf32>
    %251 = arith.mulf %249, %250 : vector<16x32xf32>
    %252 = vector.broadcast %233 : vector<1x32xf32> to vector<16x32xf32>
    %253 = arith.addf %251, %252 : vector<16x32xf32>
    %c1_114 = arith.constant 1 : index
    %c0_115 = arith.constant 0 : index
    %c0_116 = arith.constant 0 : index
    %254 = vector.load %arg5[%c1_114, %c0_115, %c0_116] : memref<2x32x96xf32, #tpu.memory_space<vmem>>, vector<1x32x96xf32>
    %255 = vector.shape_cast %254 : vector<1x32x96xf32> to vector<32x96xf32>
    %cst_117 = arith.constant dense<0.000000e+00> : vector<16x96xf32>
    %256 = tpu.matmul %253, %255, %cst_117 {dimension_numbers = #tpu.dot_dimension_numbers<[1], [0], [0], [1], [0, 0, 1, 1], [], []>} : vector<16x32xf32>, vector<32x96xf32>, vector<16x96xf32> -> vector<16x96xf32>
    %c1_118 = arith.constant 1 : index
    %c0_119 = arith.constant 0 : index
    %c0_120 = arith.constant 0 : index
    %257 = vector.load %arg6[%c1_118, %c0_119, %c0_120] : memref<2x1x96xf32, #tpu.memory_space<vmem>>, vector<1x1x96xf32>
    %258 = vector.shape_cast %257 : vector<1x1x96xf32> to vector<1x96xf32>
    %259 = vector.broadcast %258 : vector<1x96xf32> to vector<16x96xf32>
    %260 = arith.addf %256, %259 : vector<16x96xf32>
    %261 = vector.extract_strided_slice %260 {offsets = [0, 0], sizes = [8, 8], strides = [1, 1]} : vector<16x96xf32> to vector<8x8xf32>
    %262 = vector.extract_strided_slice %260 {offsets = [0, 32], sizes = [8, 8], strides = [1, 1]} : vector<16x96xf32> to vector<8x8xf32>
    %263 = vector.extract_strided_slice %260 {offsets = [0, 64], sizes = [8, 8], strides = [1, 1]} : vector<16x96xf32> to vector<8x8xf32>
    %cst_121 = arith.constant dense<0.000000e+00> : vector<8x8xf32>
    %264 = tpu.matmul %261, %262, %cst_121 {dimension_numbers = #tpu.dot_dimension_numbers<[1], [1], [0], [0], [0, 0, 1, 0], [], []>} : vector<8x8xf32>, vector<8x8xf32>, vector<8x8xf32> -> vector<8x8xf32>
    %cst_122 = arith.constant 0.353553385 : f32
    %265 = vector.broadcast %cst_122 : f32 to vector<8x8xf32>
    %266 = arith.mulf %264, %265 : vector<8x8xf32>
    %cst_123 = arith.constant dense<0xFF800000> : vector<8xf32>
    %267 = vector.multi_reduction <maximumf>, %266, %cst_123 [1] : vector<8x8xf32> to vector<8xf32>
    %268 = vector.shape_cast %267 : vector<8xf32> to vector<8x1xf32>
    %269 = vector.broadcast %268 : vector<8x1xf32> to vector<8x8xf32>
    %270 = arith.subf %266, %269 : vector<8x8xf32>
    %271 = math.exp %270 : vector<8x8xf32>
    %cst_124 = arith.constant dense<0.000000e+00> : vector<8xf32>
    %272 = vector.multi_reduction <add>, %271, %cst_124 [1] : vector<8x8xf32> to vector<8xf32>
    %273 = vector.shape_cast %272 : vector<8xf32> to vector<8x1xf32>
    %274 = tpu.reciprocal %273 {approx = true} : vector<8x1xf32> -> vector<8x1xf32>
    %275 = vector.broadcast %274 : vector<8x1xf32> to vector<8x8xf32>
    %276 = arith.mulf %271, %275 : vector<8x8xf32>
    %cst_125 = arith.constant dense<0.000000e+00> : vector<8x8xf32>
    %277 = tpu.matmul %276, %263, %cst_125 {dimension_numbers = #tpu.dot_dimension_numbers<[1], [0], [0], [1], [0, 0, 1, 1], [], []>} : vector<8x8xf32>, vector<8x8xf32>, vector<8x8xf32> -> vector<8x8xf32>
    %c0_126 = arith.constant 0 : index
    %c0_127 = arith.constant 0 : index
    %278 = vector.load %arg17[%c0_126, %c0_127] : memref<16x32xf32, #tpu.memory_space<vmem>>, vector<8x8xf32>
    tpu.vector_store %arg17[%c0_126, %c0_127], %277 {strides = array<i32>} : memref<16x32xf32, #tpu.memory_space<vmem>>, vector<8x8xf32>,
    %279 = vector.extract_strided_slice %260 {offsets = [0, 8], sizes = [8, 8], strides = [1, 1]} : vector<16x96xf32> to vector<8x8xf32>
    %280 = vector.extract_strided_slice %260 {offsets = [0, 40], sizes = [8, 8], strides = [1, 1]} : vector<16x96xf32> to vector<8x8xf32>
    %281 = vector.extract_strided_slice %260 {offsets = [0, 72], sizes = [8, 8], strides = [1, 1]} : vector<16x96xf32> to vector<8x8xf32>
    %cst_128 = arith.constant dense<0.000000e+00> : vector<8x8xf32>
    %282 = tpu.matmul %279, %280, %cst_128 {dimension_numbers = #tpu.dot_dimension_numbers<[1], [1], [0], [0], [0, 0, 1, 0], [], []>} : vector<8x8xf32>, vector<8x8xf32>, vector<8x8xf32> -> vector<8x8xf32>
    %cst_129 = arith.constant 0.353553385 : f32
    %283 = vector.broadcast %cst_129 : f32 to vector<8x8xf32>
    %284 = arith.mulf %282, %283 : vector<8x8xf32>
    %cst_130 = arith.constant dense<0xFF800000> : vector<8xf32>
    %285 = vector.multi_reduction <maximumf>, %284, %cst_130 [1] : vector<8x8xf32> to vector<8xf32>
    %286 = vector.shape_cast %285 : vector<8xf32> to vector<8x1xf32>
    %287 = vector.broadcast %286 : vector<8x1xf32> to vector<8x8xf32>
    %288 = arith.subf %284, %287 : vector<8x8xf32>
    %289 = math.exp %288 : vector<8x8xf32>
    %cst_131 = arith.constant dense<0.000000e+00> : vector<8xf32>
    %290 = vector.multi_reduction <add>, %289, %cst_131 [1] : vector<8x8xf32> to vector<8xf32>
    %291 = vector.shape_cast %290 : vector<8xf32> to vector<8x1xf32>
    %292 = tpu.reciprocal %291 {approx = true} : vector<8x1xf32> -> vector<8x1xf32>
    %293 = vector.broadcast %292 : vector<8x1xf32> to vector<8x8xf32>
    %294 = arith.mulf %289, %293 : vector<8x8xf32>
    %cst_132 = arith.constant dense<0.000000e+00> : vector<8x8xf32>
    %295 = tpu.matmul %294, %281, %cst_132 {dimension_numbers = #tpu.dot_dimension_numbers<[1], [0], [0], [1], [0, 0, 1, 1], [], []>} : vector<8x8xf32>, vector<8x8xf32>, vector<8x8xf32> -> vector<8x8xf32>
    %c0_133 = arith.constant 0 : index
    %c8_134 = arith.constant 8 : index
    %296 = vector.load %arg17[%c0_133, %c8_134] : memref<16x32xf32, #tpu.memory_space<vmem>>, vector<8x8xf32>
    tpu.vector_store %arg17[%c0_133, %c8_134], %295 {strides = array<i32>} : memref<16x32xf32, #tpu.memory_space<vmem>>, vector<8x8xf32>,
    %297 = vector.extract_strided_slice %260 {offsets = [0, 16], sizes = [8, 8], strides = [1, 1]} : vector<16x96xf32> to vector<8x8xf32>
    %298 = vector.extract_strided_slice %260 {offsets = [0, 48], sizes = [8, 8], strides = [1, 1]} : vector<16x96xf32> to vector<8x8xf32>
    %299 = vector.extract_strided_slice %260 {offsets = [0, 80], sizes = [8, 8], strides = [1, 1]} : vector<16x96xf32> to vector<8x8xf32>
    %cst_135 = arith.constant dense<0.000000e+00> : vector<8x8xf32>
    %300 = tpu.matmul %297, %298, %cst_135 {dimension_numbers = #tpu.dot_dimension_numbers<[1], [1], [0], [0], [0, 0, 1, 0], [], []>} : vector<8x8xf32>, vector<8x8xf32>, vector<8x8xf32> -> vector<8x8xf32>
    %cst_136 = arith.constant 0.353553385 : f32
    %301 = vector.broadcast %cst_136 : f32 to vector<8x8xf32>
    %302 = arith.mulf %300, %301 : vector<8x8xf32>
    %cst_137 = arith.constant dense<0xFF800000> : vector<8xf32>
    %303 = vector.multi_reduction <maximumf>, %302, %cst_137 [1] : vector<8x8xf32> to vector<8xf32>
    %304 = vector.shape_cast %303 : vector<8xf32> to vector<8x1xf32>
    %305 = vector.broadcast %304 : vector<8x1xf32> to vector<8x8xf32>
    %306 = arith.subf %302, %305 : vector<8x8xf32>
    %307 = math.exp %306 : vector<8x8xf32>
    %cst_138 = arith.constant dense<0.000000e+00> : vector<8xf32>
    %308 = vector.multi_reduction <add>, %307, %cst_138 [1] : vector<8x8xf32> to vector<8xf32>
    %309 = vector.shape_cast %308 : vector<8xf32> to vector<8x1xf32>
    %310 = tpu.reciprocal %309 {approx = true} : vector<8x1xf32> -> vector<8x1xf32>
    %311 = vector.broadcast %310 : vector<8x1xf32> to vector<8x8xf32>
    %312 = arith.mulf %307, %311 : vector<8x8xf32>
    %cst_139 = arith.constant dense<0.000000e+00> : vector<8x8xf32>
    %313 = tpu.matmul %312, %299, %cst_139 {dimension_numbers = #tpu.dot_dimension_numbers<[1], [0], [0], [1], [0, 0, 1, 1], [], []>} : vector<8x8xf32>, vector<8x8xf32>, vector<8x8xf32> -> vector<8x8xf32>
    %c0_140 = arith.constant 0 : index
    %c16_141 = arith.constant 16 : index
    %314 = vector.load %arg17[%c0_140, %c16_141] : memref<16x32xf32, #tpu.memory_space<vmem>>, vector<8x8xf32>
    tpu.vector_store %arg17[%c0_140, %c16_141], %313 {strides = array<i32>} : memref<16x32xf32, #tpu.memory_space<vmem>>, vector<8x8xf32>,
    %315 = vector.extract_strided_slice %260 {offsets = [0, 24], sizes = [8, 8], strides = [1, 1]} : vector<16x96xf32> to vector<8x8xf32>
    %316 = vector.extract_strided_slice %260 {offsets = [0, 56], sizes = [8, 8], strides = [1, 1]} : vector<16x96xf32> to vector<8x8xf32>
    %317 = vector.extract_strided_slice %260 {offsets = [0, 88], sizes = [8, 8], strides = [1, 1]} : vector<16x96xf32> to vector<8x8xf32>
    %cst_142 = arith.constant dense<0.000000e+00> : vector<8x8xf32>
    %318 = tpu.matmul %315, %316, %cst_142 {dimension_numbers = #tpu.dot_dimension_numbers<[1], [1], [0], [0], [0, 0, 1, 0], [], []>} : vector<8x8xf32>, vector<8x8xf32>, vector<8x8xf32> -> vector<8x8xf32>
    %cst_143 = arith.constant 0.353553385 : f32
    %319 = vector.broadcast %cst_143 : f32 to vector<8x8xf32>
    %320 = arith.mulf %318, %319 : vector<8x8xf32>
    %cst_144 = arith.constant dense<0xFF800000> : vector<8xf32>
    %321 = vector.multi_reduction <maximumf>, %320, %cst_144 [1] : vector<8x8xf32> to vector<8xf32>
    %322 = vector.shape_cast %321 : vector<8xf32> to vector<8x1xf32>
    %323 = vector.broadcast %322 : vector<8x1xf32> to vector<8x8xf32>
    %324 = arith.subf %320, %323 : vector<8x8xf32>
    %325 = math.exp %324 : vector<8x8xf32>
    %cst_145 = arith.constant dense<0.000000e+00> : vector<8xf32>
    %326 = vector.multi_reduction <add>, %325, %cst_145 [1] : vector<8x8xf32> to vector<8xf32>
    %327 = vector.shape_cast %326 : vector<8xf32> to vector<8x1xf32>
    %328 = tpu.reciprocal %327 {approx = true} : vector<8x1xf32> -> vector<8x1xf32>
    %329 = vector.broadcast %328 : vector<8x1xf32> to vector<8x8xf32>
    %330 = arith.mulf %325, %329 : vector<8x8xf32>
    %cst_146 = arith.constant dense<0.000000e+00> : vector<8x8xf32>
    %331 = tpu.matmul %330, %317, %cst_146 {dimension_numbers = #tpu.dot_dimension_numbers<[1], [0], [0], [1], [0, 0, 1, 1], [], []>} : vector<8x8xf32>, vector<8x8xf32>, vector<8x8xf32> -> vector<8x8xf32>
    %c0_147 = arith.constant 0 : index
    %c24_148 = arith.constant 24 : index
    %332 = vector.load %arg17[%c0_147, %c24_148] : memref<16x32xf32, #tpu.memory_space<vmem>>, vector<8x8xf32>
    tpu.vector_store %arg17[%c0_147, %c24_148], %331 {strides = array<i32>} : memref<16x32xf32, #tpu.memory_space<vmem>>, vector<8x8xf32>,
    %333 = vector.extract_strided_slice %260 {offsets = [8, 0], sizes = [8, 8], strides = [1, 1]} : vector<16x96xf32> to vector<8x8xf32>
    %334 = vector.extract_strided_slice %260 {offsets = [8, 32], sizes = [8, 8], strides = [1, 1]} : vector<16x96xf32> to vector<8x8xf32>
    %335 = vector.extract_strided_slice %260 {offsets = [8, 64], sizes = [8, 8], strides = [1, 1]} : vector<16x96xf32> to vector<8x8xf32>
    %cst_149 = arith.constant dense<0.000000e+00> : vector<8x8xf32>
    %336 = tpu.matmul %333, %334, %cst_149 {dimension_numbers = #tpu.dot_dimension_numbers<[1], [1], [0], [0], [0, 0, 1, 0], [], []>} : vector<8x8xf32>, vector<8x8xf32>, vector<8x8xf32> -> vector<8x8xf32>
    %cst_150 = arith.constant 0.353553385 : f32
    %337 = vector.broadcast %cst_150 : f32 to vector<8x8xf32>
    %338 = arith.mulf %336, %337 : vector<8x8xf32>
    %cst_151 = arith.constant dense<0xFF800000> : vector<8xf32>
    %339 = vector.multi_reduction <maximumf>, %338, %cst_151 [1] : vector<8x8xf32> to vector<8xf32>
    %340 = vector.shape_cast %339 : vector<8xf32> to vector<8x1xf32>
    %341 = vector.broadcast %340 : vector<8x1xf32> to vector<8x8xf32>
    %342 = arith.subf %338, %341 : vector<8x8xf32>
    %343 = math.exp %342 : vector<8x8xf32>
    %cst_152 = arith.constant dense<0.000000e+00> : vector<8xf32>
    %344 = vector.multi_reduction <add>, %343, %cst_152 [1] : vector<8x8xf32> to vector<8xf32>
    %345 = vector.shape_cast %344 : vector<8xf32> to vector<8x1xf32>
    %346 = tpu.reciprocal %345 {approx = true} : vector<8x1xf32> -> vector<8x1xf32>
    %347 = vector.broadcast %346 : vector<8x1xf32> to vector<8x8xf32>
    %348 = arith.mulf %343, %347 : vector<8x8xf32>
    %cst_153 = arith.constant dense<0.000000e+00> : vector<8x8xf32>
    %349 = tpu.matmul %348, %335, %cst_153 {dimension_numbers = #tpu.dot_dimension_numbers<[1], [0], [0], [1], [0, 0, 1, 1], [], []>} : vector<8x8xf32>, vector<8x8xf32>, vector<8x8xf32> -> vector<8x8xf32>
    %c8_154 = arith.constant 8 : index
    %c0_155 = arith.constant 0 : index
    %350 = vector.load %arg17[%c8_154, %c0_155] : memref<16x32xf32, #tpu.memory_space<vmem>>, vector<8x8xf32>
    tpu.vector_store %arg17[%c8_154, %c0_155], %349 {strides = array<i32>} : memref<16x32xf32, #tpu.memory_space<vmem>>, vector<8x8xf32>,
    %351 = vector.extract_strided_slice %260 {offsets = [8, 8], sizes = [8, 8], strides = [1, 1]} : vector<16x96xf32> to vector<8x8xf32>
    %352 = vector.extract_strided_slice %260 {offsets = [8, 40], sizes = [8, 8], strides = [1, 1]} : vector<16x96xf32> to vector<8x8xf32>
    %353 = vector.extract_strided_slice %260 {offsets = [8, 72], sizes = [8, 8], strides = [1, 1]} : vector<16x96xf32> to vector<8x8xf32>
    %cst_156 = arith.constant dense<0.000000e+00> : vector<8x8xf32>
    %354 = tpu.matmul %351, %352, %cst_156 {dimension_numbers = #tpu.dot_dimension_numbers<[1], [1], [0], [0], [0, 0, 1, 0], [], []>} : vector<8x8xf32>, vector<8x8xf32>, vector<8x8xf32> -> vector<8x8xf32>
    %cst_157 = arith.constant 0.353553385 : f32
    %355 = vector.broadcast %cst_157 : f32 to vector<8x8xf32>
    %356 = arith.mulf %354, %355 : vector<8x8xf32>
    %cst_158 = arith.constant dense<0xFF800000> : vector<8xf32>
    %357 = vector.multi_reduction <maximumf>, %356, %cst_158 [1] : vector<8x8xf32> to vector<8xf32>
    %358 = vector.shape_cast %357 : vector<8xf32> to vector<8x1xf32>
    %359 = vector.broadcast %358 : vector<8x1xf32> to vector<8x8xf32>
    %360 = arith.subf %356, %359 : vector<8x8xf32>
    %361 = math.exp %360 : vector<8x8xf32>
    %cst_159 = arith.constant dense<0.000000e+00> : vector<8xf32>
    %362 = vector.multi_reduction <add>, %361, %cst_159 [1] : vector<8x8xf32> to vector<8xf32>
    %363 = vector.shape_cast %362 : vector<8xf32> to vector<8x1xf32>
    %364 = tpu.reciprocal %363 {approx = true} : vector<8x1xf32> -> vector<8x1xf32>
    %365 = vector.broadcast %364 : vector<8x1xf32> to vector<8x8xf32>
    %366 = arith.mulf %361, %365 : vector<8x8xf32>
    %cst_160 = arith.constant dense<0.000000e+00> : vector<8x8xf32>
    %367 = tpu.matmul %366, %353, %cst_160 {dimension_numbers = #tpu.dot_dimension_numbers<[1], [0], [0], [1], [0, 0, 1, 1], [], []>} : vector<8x8xf32>, vector<8x8xf32>, vector<8x8xf32> -> vector<8x8xf32>
    %c8_161 = arith.constant 8 : index
    %c8_162 = arith.constant 8 : index
    %368 = vector.load %arg17[%c8_161, %c8_162] : memref<16x32xf32, #tpu.memory_space<vmem>>, vector<8x8xf32>
    tpu.vector_store %arg17[%c8_161, %c8_162], %367 {strides = array<i32>} : memref<16x32xf32, #tpu.memory_space<vmem>>, vector<8x8xf32>,
    %369 = vector.extract_strided_slice %260 {offsets = [8, 16], sizes = [8, 8], strides = [1, 1]} : vector<16x96xf32> to vector<8x8xf32>
    %370 = vector.extract_strided_slice %260 {offsets = [8, 48], sizes = [8, 8], strides = [1, 1]} : vector<16x96xf32> to vector<8x8xf32>
    %371 = vector.extract_strided_slice %260 {offsets = [8, 80], sizes = [8, 8], strides = [1, 1]} : vector<16x96xf32> to vector<8x8xf32>
    %cst_163 = arith.constant dense<0.000000e+00> : vector<8x8xf32>
    %372 = tpu.matmul %369, %370, %cst_163 {dimension_numbers = #tpu.dot_dimension_numbers<[1], [1], [0], [0], [0, 0, 1, 0], [], []>} : vector<8x8xf32>, vector<8x8xf32>, vector<8x8xf32> -> vector<8x8xf32>
    %cst_164 = arith.constant 0.353553385 : f32
    %373 = vector.broadcast %cst_164 : f32 to vector<8x8xf32>
    %374 = arith.mulf %372, %373 : vector<8x8xf32>
    %cst_165 = arith.constant dense<0xFF800000> : vector<8xf32>
    %375 = vector.multi_reduction <maximumf>, %374, %cst_165 [1] : vector<8x8xf32> to vector<8xf32>
    %376 = vector.shape_cast %375 : vector<8xf32> to vector<8x1xf32>
    %377 = vector.broadcast %376 : vector<8x1xf32> to vector<8x8xf32>
    %378 = arith.subf %374, %377 : vector<8x8xf32>
    %379 = math.exp %378 : vector<8x8xf32>
    %cst_166 = arith.constant dense<0.000000e+00> : vector<8xf32>
    %380 = vector.multi_reduction <add>, %379, %cst_166 [1] : vector<8x8xf32> to vector<8xf32>
    %381 = vector.shape_cast %380 : vector<8xf32> to vector<8x1xf32>
    %382 = tpu.reciprocal %381 {approx = true} : vector<8x1xf32> -> vector<8x1xf32>
    %383 = vector.broadcast %382 : vector<8x1xf32> to vector<8x8xf32>
    %384 = arith.mulf %379, %383 : vector<8x8xf32>
    %cst_167 = arith.constant dense<0.000000e+00> : vector<8x8xf32>
    %385 = tpu.matmul %384, %371, %cst_167 {dimension_numbers = #tpu.dot_dimension_numbers<[1], [0], [0], [1], [0, 0, 1, 1], [], []>} : vector<8x8xf32>, vector<8x8xf32>, vector<8x8xf32> -> vector<8x8xf32>
    %c8_168 = arith.constant 8 : index
    %c16_169 = arith.constant 16 : index
    %386 = vector.load %arg17[%c8_168, %c16_169] : memref<16x32xf32, #tpu.memory_space<vmem>>, vector<8x8xf32>
    tpu.vector_store %arg17[%c8_168, %c16_169], %385 {strides = array<i32>} : memref<16x32xf32, #tpu.memory_space<vmem>>, vector<8x8xf32>,
    %387 = vector.extract_strided_slice %260 {offsets = [8, 24], sizes = [8, 8], strides = [1, 1]} : vector<16x96xf32> to vector<8x8xf32>
    %388 = vector.extract_strided_slice %260 {offsets = [8, 56], sizes = [8, 8], strides = [1, 1]} : vector<16x96xf32> to vector<8x8xf32>
    %389 = vector.extract_strided_slice %260 {offsets = [8, 88], sizes = [8, 8], strides = [1, 1]} : vector<16x96xf32> to vector<8x8xf32>
    %cst_170 = arith.constant dense<0.000000e+00> : vector<8x8xf32>
    %390 = tpu.matmul %387, %388, %cst_170 {dimension_numbers = #tpu.dot_dimension_numbers<[1], [1], [0], [0], [0, 0, 1, 0], [], []>} : vector<8x8xf32>, vector<8x8xf32>, vector<8x8xf32> -> vector<8x8xf32>
    %cst_171 = arith.constant 0.353553385 : f32
    %391 = vector.broadcast %cst_171 : f32 to vector<8x8xf32>
    %392 = arith.mulf %390, %391 : vector<8x8xf32>
    %cst_172 = arith.constant dense<0xFF800000> : vector<8xf32>
    %393 = vector.multi_reduction <maximumf>, %392, %cst_172 [1] : vector<8x8xf32> to vector<8xf32>
    %394 = vector.shape_cast %393 : vector<8xf32> to vector<8x1xf32>
    %395 = vector.broadcast %394 : vector<8x1xf32> to vector<8x8xf32>
    %396 = arith.subf %392, %395 : vector<8x8xf32>
    %397 = math.exp %396 : vector<8x8xf32>
    %cst_173 = arith.constant dense<0.000000e+00> : vector<8xf32>
    %398 = vector.multi_reduction <add>, %397, %cst_173 [1] : vector<8x8xf32> to vector<8xf32>
    %399 = vector.shape_cast %398 : vector<8xf32> to vector<8x1xf32>
    %400 = tpu.reciprocal %399 {approx = true} : vector<8x1xf32> -> vector<8x1xf32>
    %401 = vector.broadcast %400 : vector<8x1xf32> to vector<8x8xf32>
    %402 = arith.mulf %397, %401 : vector<8x8xf32>
    %cst_174 = arith.constant dense<0.000000e+00> : vector<8x8xf32>
    %403 = tpu.matmul %402, %389, %cst_174 {dimension_numbers = #tpu.dot_dimension_numbers<[1], [0], [0], [1], [0, 0, 1, 1], [], []>} : vector<8x8xf32>, vector<8x8xf32>, vector<8x8xf32> -> vector<8x8xf32>
    %c8_175 = arith.constant 8 : index
    %c24_176 = arith.constant 24 : index
    %404 = vector.load %arg17[%c8_175, %c24_176] : memref<16x32xf32, #tpu.memory_space<vmem>>, vector<8x8xf32>
    tpu.vector_store %arg17[%c8_175, %c24_176], %403 {strides = array<i32>} : memref<16x32xf32, #tpu.memory_space<vmem>>, vector<8x8xf32>,
    %c0_177 = arith.constant 0 : index
    %c0_178 = arith.constant 0 : index
    %405 = vector.load %arg17[%c0_177, %c0_178] : memref<16x32xf32, #tpu.memory_space<vmem>>, vector<16x32xf32>
    %406 = arith.addf %253, %405 : vector<16x32xf32>
    %c1_179 = arith.constant 1 : index
    %c0_180 = arith.constant 0 : index
    %c0_181 = arith.constant 0 : index
    %407 = vector.load %arg7[%c1_179, %c0_180, %c0_181] : memref<2x1x32xf32, #tpu.memory_space<vmem>>, vector<1x1x32xf32>
    %408 = vector.shape_cast %407 : vector<1x1x32xf32> to vector<1x32xf32>
    %c1_182 = arith.constant 1 : index
    %c0_183 = arith.constant 0 : index
    %c0_184 = arith.constant 0 : index
    %409 = vector.load %arg8[%c1_182, %c0_183, %c0_184] : memref<2x1x32xf32, #tpu.memory_space<vmem>>, vector<1x1x32xf32>
    %410 = vector.shape_cast %409 : vector<1x1x32xf32> to vector<1x32xf32>
    %cst_185 = arith.constant dense<0.000000e+00> : vector<16xf32>
    %411 = vector.multi_reduction <add>, %406, %cst_185 [1] : vector<16x32xf32> to vector<16xf32>
    %412 = vector.shape_cast %411 : vector<16xf32> to vector<16x1xf32>
    %cst_186 = arith.constant 3.200000e+01 : f32
    %413 = vector.broadcast %cst_186 : f32 to vector<16x1xf32>
    %414 = arith.divf %412, %413 : vector<16x1xf32>
    %415 = vector.broadcast %414 : vector<16x1xf32> to vector<16x32xf32>
    %416 = arith.subf %406, %415 : vector<16x32xf32>
    %417 = arith.mulf %416, %416 : vector<16x32xf32>
    %cst_187 = arith.constant dense<0.000000e+00> : vector<16xf32>
    %418 = vector.multi_reduction <add>, %417, %cst_187 [1] : vector<16x32xf32> to vector<16xf32>
    %419 = vector.shape_cast %418 : vector<16xf32> to vector<16x1xf32>
    %cst_188 = arith.constant 3.200000e+01 : f32
    %420 = vector.broadcast %cst_188 : f32 to vector<16x1xf32>
    %421 = arith.divf %419, %420 : vector<16x1xf32>
    %cst_189 = arith.constant 9.99999974E-6 : f32
    %422 = vector.broadcast %cst_189 : f32 to vector<16x1xf32>
    %423 = arith.addf %421, %422 : vector<16x1xf32>
    %424 = math.rsqrt %423 : vector<16x1xf32>
    %425 = vector.broadcast %424 : vector<16x1xf32> to vector<16x32xf32>
    %426 = arith.mulf %416, %425 : vector<16x32xf32>
    %427 = vector.broadcast %408 : vector<1x32xf32> to vector<16x32xf32>
    %428 = arith.mulf %426, %427 : vector<16x32xf32>
    %429 = vector.broadcast %410 : vector<1x32xf32> to vector<16x32xf32>
    %430 = arith.addf %428, %429 : vector<16x32xf32>
    %c1_190 = arith.constant 1 : index
    %c0_191 = arith.constant 0 : index
    %c0_192 = arith.constant 0 : index
    %431 = vector.load %arg9[%c1_190, %c0_191, %c0_192] : memref<2x32x64xf32, #tpu.memory_space<vmem>>, vector<1x32x64xf32>
    %432 = vector.shape_cast %431 : vector<1x32x64xf32> to vector<32x64xf32>
    %cst_193 = arith.constant dense<0.000000e+00> : vector<16x64xf32>
    %433 = tpu.matmul %430, %432, %cst_193 {dimension_numbers = #tpu.dot_dimension_numbers<[1], [0], [0], [1], [0, 0, 1, 1], [], []>} : vector<16x32xf32>, vector<32x64xf32>, vector<16x64xf32> -> vector<16x64xf32>
    %c1_194 = arith.constant 1 : index
    %c0_195 = arith.constant 0 : index
    %c0_196 = arith.constant 0 : index
    %434 = vector.load %arg10[%c1_194, %c0_195, %c0_196] : memref<2x1x64xf32, #tpu.memory_space<vmem>>, vector<1x1x64xf32>
    %435 = vector.shape_cast %434 : vector<1x1x64xf32> to vector<1x64xf32>
    %436 = vector.broadcast %435 : vector<1x64xf32> to vector<16x64xf32>
    %437 = arith.addf %433, %436 : vector<16x64xf32>
    %cst_197 = arith.constant 5.000000e-01 : f32
    %438 = vector.broadcast %cst_197 : f32 to vector<16x64xf32>
    %439 = arith.mulf %438, %437 : vector<16x64xf32>
    %440 = arith.mulf %437, %437 : vector<16x64xf32>
    %441 = arith.mulf %440, %437 : vector<16x64xf32>
    %cst_198 = arith.constant 4.471500e-02 : f32
    %442 = vector.broadcast %cst_198 : f32 to vector<16x64xf32>
    %443 = arith.mulf %442, %441 : vector<16x64xf32>
    %444 = arith.addf %437, %443 : vector<16x64xf32>
    %cst_199 = arith.constant 0.797884583 : f32
    %445 = vector.broadcast %cst_199 : f32 to vector<16x64xf32>
    %446 = arith.mulf %445, %444 : vector<16x64xf32>
    %447 = math.tanh %446 : vector<16x64xf32>
    %cst_200 = arith.constant 1.000000e+00 : f32
    %448 = vector.broadcast %cst_200 : f32 to vector<16x64xf32>
    %449 = arith.addf %448, %447 : vector<16x64xf32>
    %450 = arith.mulf %439, %449 : vector<16x64xf32>
    %c1_201 = arith.constant 1 : index
    %c0_202 = arith.constant 0 : index
    %c0_203 = arith.constant 0 : index
    %451 = vector.load %arg11[%c1_201, %c0_202, %c0_203] : memref<2x64x32xf32, #tpu.memory_space<vmem>>, vector<1x64x32xf32>
    %452 = vector.shape_cast %451 : vector<1x64x32xf32> to vector<64x32xf32>
    %cst_204 = arith.constant dense<0.000000e+00> : vector<16x32xf32>
    %453 = tpu.matmul %450, %452, %cst_204 {dimension_numbers = #tpu.dot_dimension_numbers<[1], [0], [0], [1], [0, 0, 1, 1], [], []>} : vector<16x64xf32>, vector<64x32xf32>, vector<16x32xf32> -> vector<16x32xf32>
    %c1_205 = arith.constant 1 : index
    %c0_206 = arith.constant 0 : index
    %c0_207 = arith.constant 0 : index
    %454 = vector.load %arg12[%c1_205, %c0_206, %c0_207] : memref<2x1x32xf32, #tpu.memory_space<vmem>>, vector<1x1x32xf32>
    %455 = vector.shape_cast %454 : vector<1x1x32xf32> to vector<1x32xf32>
    %456 = vector.broadcast %455 : vector<1x32xf32> to vector<16x32xf32>
    %457 = arith.addf %453, %456 : vector<16x32xf32>
    %458 = arith.addf %430, %457 : vector<16x32xf32>
    %c1_208 = arith.constant 1 : index
    %c0_209 = arith.constant 0 : index
    %c0_210 = arith.constant 0 : index
    %459 = vector.load %arg13[%c1_208, %c0_209, %c0_210] : memref<2x1x32xf32, #tpu.memory_space<vmem>>, vector<1x1x32xf32>
    %460 = vector.shape_cast %459 : vector<1x1x32xf32> to vector<1x32xf32>
    %c1_211 = arith.constant 1 : index
    %c0_212 = arith.constant 0 : index
    %c0_213 = arith.constant 0 : index
    %461 = vector.load %arg14[%c1_211, %c0_212, %c0_213] : memref<2x1x32xf32, #tpu.memory_space<vmem>>, vector<1x1x32xf32>
    %462 = vector.shape_cast %461 : vector<1x1x32xf32> to vector<1x32xf32>
    %cst_214 = arith.constant dense<0.000000e+00> : vector<16xf32>
    %463 = vector.multi_reduction <add>, %458, %cst_214 [1] : vector<16x32xf32> to vector<16xf32>
    %464 = vector.shape_cast %463 : vector<16xf32> to vector<16x1xf32>
    %cst_215 = arith.constant 3.200000e+01 : f32
    %465 = vector.broadcast %cst_215 : f32 to vector<16x1xf32>
    %466 = arith.divf %464, %465 : vector<16x1xf32>
    %467 = vector.broadcast %466 : vector<16x1xf32> to vector<16x32xf32>
    %468 = arith.subf %458, %467 : vector<16x32xf32>
    %469 = arith.mulf %468, %468 : vector<16x32xf32>
    %cst_216 = arith.constant dense<0.000000e+00> : vector<16xf32>
    %470 = vector.multi_reduction <add>, %469, %cst_216 [1] : vector<16x32xf32> to vector<16xf32>
    %471 = vector.shape_cast %470 : vector<16xf32> to vector<16x1xf32>
    %cst_217 = arith.constant 3.200000e+01 : f32
    %472 = vector.broadcast %cst_217 : f32 to vector<16x1xf32>
    %473 = arith.divf %471, %472 : vector<16x1xf32>
    %cst_218 = arith.constant 9.99999974E-6 : f32
    %474 = vector.broadcast %cst_218 : f32 to vector<16x1xf32>
    %475 = arith.addf %473, %474 : vector<16x1xf32>
    %476 = math.rsqrt %475 : vector<16x1xf32>
    %477 = vector.broadcast %476 : vector<16x1xf32> to vector<16x32xf32>
    %478 = arith.mulf %468, %477 : vector<16x32xf32>
    %479 = vector.broadcast %460 : vector<1x32xf32> to vector<16x32xf32>
    %480 = arith.mulf %478, %479 : vector<16x32xf32>
    %481 = vector.broadcast %462 : vector<1x32xf32> to vector<16x32xf32>
    %482 = arith.addf %480, %481 : vector<16x32xf32>
    %c0_219 = arith.constant 0 : index
    %c0_220 = arith.constant 0 : index
    %c0_221 = arith.constant 0 : index
    %483 = vector.load %arg5[%c0_219, %c0_220, %c0_221] : memref<2x32x96xf32, #tpu.memory_space<vmem>>, vector<1x32x96xf32>
    %484 = vector.shape_cast %483 : vector<1x32x96xf32> to vector<32x96xf32>
    %cst_222 = arith.constant dense<0.000000e+00> : vector<16x96xf32>
    %485 = tpu.matmul %482, %484, %cst_222 {dimension_numbers = #tpu.dot_dimension_numbers<[1], [0], [0], [1], [0, 0, 1, 1], [], []>} : vector<16x32xf32>, vector<32x96xf32>, vector<16x96xf32> -> vector<16x96xf32>
    %c0_223 = arith.constant 0 : index
    %c0_224 = arith.constant 0 : index
    %c0_225 = arith.constant 0 : index
    %486 = vector.load %arg6[%c0_223, %c0_224, %c0_225] : memref<2x1x96xf32, #tpu.memory_space<vmem>>, vector<1x1x96xf32>
    %487 = vector.shape_cast %486 : vector<1x1x96xf32> to vector<1x96xf32>
    %488 = vector.broadcast %487 : vector<1x96xf32> to vector<16x96xf32>
    %489 = arith.addf %485, %488 : vector<16x96xf32>
    %490 = vector.extract_strided_slice %489 {offsets = [0, 0], sizes = [8, 8], strides = [1, 1]} : vector<16x96xf32> to vector<8x8xf32>
    %491 = vector.extract_strided_slice %489 {offsets = [0, 32], sizes = [8, 8], strides = [1, 1]} : vector<16x96xf32> to vector<8x8xf32>
    %492 = vector.extract_strided_slice %489 {offsets = [0, 64], sizes = [8, 8], strides = [1, 1]} : vector<16x96xf32> to vector<8x8xf32>
    %cst_226 = arith.constant dense<0.000000e+00> : vector<8x8xf32>
    %493 = tpu.matmul %490, %491, %cst_226 {dimension_numbers = #tpu.dot_dimension_numbers<[1], [1], [0], [0], [0, 0, 1, 0], [], []>} : vector<8x8xf32>, vector<8x8xf32>, vector<8x8xf32> -> vector<8x8xf32>
    %cst_227 = arith.constant 0.353553385 : f32
    %494 = vector.broadcast %cst_227 : f32 to vector<8x8xf32>
    %495 = arith.mulf %493, %494 : vector<8x8xf32>
    %cst_228 = arith.constant dense<0xFF800000> : vector<8xf32>
    %496 = vector.multi_reduction <maximumf>, %495, %cst_228 [1] : vector<8x8xf32> to vector<8xf32>
    %497 = vector.shape_cast %496 : vector<8xf32> to vector<8x1xf32>
    %498 = vector.broadcast %497 : vector<8x1xf32> to vector<8x8xf32>
    %499 = arith.subf %495, %498 : vector<8x8xf32>
    %500 = math.exp %499 : vector<8x8xf32>
    %cst_229 = arith.constant dense<0.000000e+00> : vector<8xf32>
    %501 = vector.multi_reduction <add>, %500, %cst_229 [1] : vector<8x8xf32> to vector<8xf32>
    %502 = vector.shape_cast %501 : vector<8xf32> to vector<8x1xf32>
    %503 = tpu.reciprocal %502 {approx = true} : vector<8x1xf32> -> vector<8x1xf32>
    %504 = vector.broadcast %503 : vector<8x1xf32> to vector<8x8xf32>
    %505 = arith.mulf %500, %504 : vector<8x8xf32>
    %cst_230 = arith.constant dense<0.000000e+00> : vector<8x8xf32>
    %506 = tpu.matmul %505, %492, %cst_230 {dimension_numbers = #tpu.dot_dimension_numbers<[1], [0], [0], [1], [0, 0, 1, 1], [], []>} : vector<8x8xf32>, vector<8x8xf32>, vector<8x8xf32> -> vector<8x8xf32>
    %c0_231 = arith.constant 0 : index
    %c0_232 = arith.constant 0 : index
    %507 = vector.load %arg17[%c0_231, %c0_232] : memref<16x32xf32, #tpu.memory_space<vmem>>, vector<8x8xf32>
    tpu.vector_store %arg17[%c0_231, %c0_232], %506 {strides = array<i32>} : memref<16x32xf32, #tpu.memory_space<vmem>>, vector<8x8xf32>,
    %508 = vector.extract_strided_slice %489 {offsets = [0, 8], sizes = [8, 8], strides = [1, 1]} : vector<16x96xf32> to vector<8x8xf32>
    %509 = vector.extract_strided_slice %489 {offsets = [0, 40], sizes = [8, 8], strides = [1, 1]} : vector<16x96xf32> to vector<8x8xf32>
    %510 = vector.extract_strided_slice %489 {offsets = [0, 72], sizes = [8, 8], strides = [1, 1]} : vector<16x96xf32> to vector<8x8xf32>
    %cst_233 = arith.constant dense<0.000000e+00> : vector<8x8xf32>
    %511 = tpu.matmul %508, %509, %cst_233 {dimension_numbers = #tpu.dot_dimension_numbers<[1], [1], [0], [0], [0, 0, 1, 0], [], []>} : vector<8x8xf32>, vector<8x8xf32>, vector<8x8xf32> -> vector<8x8xf32>
    %cst_234 = arith.constant 0.353553385 : f32
    %512 = vector.broadcast %cst_234 : f32 to vector<8x8xf32>
    %513 = arith.mulf %511, %512 : vector<8x8xf32>
    %cst_235 = arith.constant dense<0xFF800000> : vector<8xf32>
    %514 = vector.multi_reduction <maximumf>, %513, %cst_235 [1] : vector<8x8xf32> to vector<8xf32>
    %515 = vector.shape_cast %514 : vector<8xf32> to vector<8x1xf32>
    %516 = vector.broadcast %515 : vector<8x1xf32> to vector<8x8xf32>
    %517 = arith.subf %513, %516 : vector<8x8xf32>
    %518 = math.exp %517 : vector<8x8xf32>
    %cst_236 = arith.constant dense<0.000000e+00> : vector<8xf32>
    %519 = vector.multi_reduction <add>, %518, %cst_236 [1] : vector<8x8xf32> to vector<8xf32>
    %520 = vector.shape_cast %519 : vector<8xf32> to vector<8x1xf32>
    %521 = tpu.reciprocal %520 {approx = true} : vector<8x1xf32> -> vector<8x1xf32>
    %522 = vector.broadcast %521 : vector<8x1xf32> to vector<8x8xf32>
    %523 = arith.mulf %518, %522 : vector<8x8xf32>
    %cst_237 = arith.constant dense<0.000000e+00> : vector<8x8xf32>
    %524 = tpu.matmul %523, %510, %cst_237 {dimension_numbers = #tpu.dot_dimension_numbers<[1], [0], [0], [1], [0, 0, 1, 1], [], []>} : vector<8x8xf32>, vector<8x8xf32>, vector<8x8xf32> -> vector<8x8xf32>
    %c0_238 = arith.constant 0 : index
    %c8_239 = arith.constant 8 : index
    %525 = vector.load %arg17[%c0_238, %c8_239] : memref<16x32xf32, #tpu.memory_space<vmem>>, vector<8x8xf32>
    tpu.vector_store %arg17[%c0_238, %c8_239], %524 {strides = array<i32>} : memref<16x32xf32, #tpu.memory_space<vmem>>, vector<8x8xf32>,
    %526 = vector.extract_strided_slice %489 {offsets = [0, 16], sizes = [8, 8], strides = [1, 1]} : vector<16x96xf32> to vector<8x8xf32>
    %527 = vector.extract_strided_slice %489 {offsets = [0, 48], sizes = [8, 8], strides = [1, 1]} : vector<16x96xf32> to vector<8x8xf32>
    %528 = vector.extract_strided_slice %489 {offsets = [0, 80], sizes = [8, 8], strides = [1, 1]} : vector<16x96xf32> to vector<8x8xf32>
    %cst_240 = arith.constant dense<0.000000e+00> : vector<8x8xf32>
    %529 = tpu.matmul %526, %527, %cst_240 {dimension_numbers = #tpu.dot_dimension_numbers<[1], [1], [0], [0], [0, 0, 1, 0], [], []>} : vector<8x8xf32>, vector<8x8xf32>, vector<8x8xf32> -> vector<8x8xf32>
    %cst_241 = arith.constant 0.353553385 : f32
    %530 = vector.broadcast %cst_241 : f32 to vector<8x8xf32>
    %531 = arith.mulf %529, %530 : vector<8x8xf32>
    %cst_242 = arith.constant dense<0xFF800000> : vector<8xf32>
    %532 = vector.multi_reduction <maximumf>, %531, %cst_242 [1] : vector<8x8xf32> to vector<8xf32>
    %533 = vector.shape_cast %532 : vector<8xf32> to vector<8x1xf32>
    %534 = vector.broadcast %533 : vector<8x1xf32> to vector<8x8xf32>
    %535 = arith.subf %531, %534 : vector<8x8xf32>
    %536 = math.exp %535 : vector<8x8xf32>
    %cst_243 = arith.constant dense<0.000000e+00> : vector<8xf32>
    %537 = vector.multi_reduction <add>, %536, %cst_243 [1] : vector<8x8xf32> to vector<8xf32>
    %538 = vector.shape_cast %537 : vector<8xf32> to vector<8x1xf32>
    %539 = tpu.reciprocal %538 {approx = true} : vector<8x1xf32> -> vector<8x1xf32>
    %540 = vector.broadcast %539 : vector<8x1xf32> to vector<8x8xf32>
    %541 = arith.mulf %536, %540 : vector<8x8xf32>
    %cst_244 = arith.constant dense<0.000000e+00> : vector<8x8xf32>
    %542 = tpu.matmul %541, %528, %cst_244 {dimension_numbers = #tpu.dot_dimension_numbers<[1], [0], [0], [1], [0, 0, 1, 1], [], []>} : vector<8x8xf32>, vector<8x8xf32>, vector<8x8xf32> -> vector<8x8xf32>
    %c0_245 = arith.constant 0 : index
    %c16_246 = arith.constant 16 : index
    %543 = vector.load %arg17[%c0_245, %c16_246] : memref<16x32xf32, #tpu.memory_space<vmem>>, vector<8x8xf32>
    tpu.vector_store %arg17[%c0_245, %c16_246], %542 {strides = array<i32>} : memref<16x32xf32, #tpu.memory_space<vmem>>, vector<8x8xf32>,
    %544 = vector.extract_strided_slice %489 {offsets = [0, 24], sizes = [8, 8], strides = [1, 1]} : vector<16x96xf32> to vector<8x8xf32>
    %545 = vector.extract_strided_slice %489 {offsets = [0, 56], sizes = [8, 8], strides = [1, 1]} : vector<16x96xf32> to vector<8x8xf32>
    %546 = vector.extract_strided_slice %489 {offsets = [0, 88], sizes = [8, 8], strides = [1, 1]} : vector<16x96xf32> to vector<8x8xf32>
    %cst_247 = arith.constant dense<0.000000e+00> : vector<8x8xf32>
    %547 = tpu.matmul %544, %545, %cst_247 {dimension_numbers = #tpu.dot_dimension_numbers<[1], [1], [0], [0], [0, 0, 1, 0], [], []>} : vector<8x8xf32>, vector<8x8xf32>, vector<8x8xf32> -> vector<8x8xf32>
    %cst_248 = arith.constant 0.353553385 : f32
    %548 = vector.broadcast %cst_248 : f32 to vector<8x8xf32>
    %549 = arith.mulf %547, %548 : vector<8x8xf32>
    %cst_249 = arith.constant dense<0xFF800000> : vector<8xf32>
    %550 = vector.multi_reduction <maximumf>, %549, %cst_249 [1] : vector<8x8xf32> to vector<8xf32>
    %551 = vector.shape_cast %550 : vector<8xf32> to vector<8x1xf32>
    %552 = vector.broadcast %551 : vector<8x1xf32> to vector<8x8xf32>
    %553 = arith.subf %549, %552 : vector<8x8xf32>
    %554 = math.exp %553 : vector<8x8xf32>
    %cst_250 = arith.constant dense<0.000000e+00> : vector<8xf32>
    %555 = vector.multi_reduction <add>, %554, %cst_250 [1] : vector<8x8xf32> to vector<8xf32>
    %556 = vector.shape_cast %555 : vector<8xf32> to vector<8x1xf32>
    %557 = tpu.reciprocal %556 {approx = true} : vector<8x1xf32> -> vector<8x1xf32>
    %558 = vector.broadcast %557 : vector<8x1xf32> to vector<8x8xf32>
    %559 = arith.mulf %554, %558 : vector<8x8xf32>
    %cst_251 = arith.constant dense<0.000000e+00> : vector<8x8xf32>
    %560 = tpu.matmul %559, %546, %cst_251 {dimension_numbers = #tpu.dot_dimension_numbers<[1], [0], [0], [1], [0, 0, 1, 1], [], []>} : vector<8x8xf32>, vector<8x8xf32>, vector<8x8xf32> -> vector<8x8xf32>
    %c0_252 = arith.constant 0 : index
    %c24_253 = arith.constant 24 : index
    %561 = vector.load %arg17[%c0_252, %c24_253] : memref<16x32xf32, #tpu.memory_space<vmem>>, vector<8x8xf32>
    tpu.vector_store %arg17[%c0_252, %c24_253], %560 {strides = array<i32>} : memref<16x32xf32, #tpu.memory_space<vmem>>, vector<8x8xf32>,
    %562 = vector.extract_strided_slice %489 {offsets = [8, 0], sizes = [8, 8], strides = [1, 1]} : vector<16x96xf32> to vector<8x8xf32>
    %563 = vector.extract_strided_slice %489 {offsets = [8, 32], sizes = [8, 8], strides = [1, 1]} : vector<16x96xf32> to vector<8x8xf32>
    %564 = vector.extract_strided_slice %489 {offsets = [8, 64], sizes = [8, 8], strides = [1, 1]} : vector<16x96xf32> to vector<8x8xf32>
    %cst_254 = arith.constant dense<0.000000e+00> : vector<8x8xf32>
    %565 = tpu.matmul %562, %563, %cst_254 {dimension_numbers = #tpu.dot_dimension_numbers<[1], [1], [0], [0], [0, 0, 1, 0], [], []>} : vector<8x8xf32>, vector<8x8xf32>, vector<8x8xf32> -> vector<8x8xf32>
    %cst_255 = arith.constant 0.353553385 : f32
    %566 = vector.broadcast %cst_255 : f32 to vector<8x8xf32>
    %567 = arith.mulf %565, %566 : vector<8x8xf32>
    %cst_256 = arith.constant dense<0xFF800000> : vector<8xf32>
    %568 = vector.multi_reduction <maximumf>, %567, %cst_256 [1] : vector<8x8xf32> to vector<8xf32>
    %569 = vector.shape_cast %568 : vector<8xf32> to vector<8x1xf32>
    %570 = vector.broadcast %569 : vector<8x1xf32> to vector<8x8xf32>
    %571 = arith.subf %567, %570 : vector<8x8xf32>
    %572 = math.exp %571 : vector<8x8xf32>
    %cst_257 = arith.constant dense<0.000000e+00> : vector<8xf32>
    %573 = vector.multi_reduction <add>, %572, %cst_257 [1] : vector<8x8xf32> to vector<8xf32>
    %574 = vector.shape_cast %573 : vector<8xf32> to vector<8x1xf32>
    %575 = tpu.reciprocal %574 {approx = true} : vector<8x1xf32> -> vector<8x1xf32>
    %576 = vector.broadcast %575 : vector<8x1xf32> to vector<8x8xf32>
    %577 = arith.mulf %572, %576 : vector<8x8xf32>
    %cst_258 = arith.constant dense<0.000000e+00> : vector<8x8xf32>
    %578 = tpu.matmul %577, %564, %cst_258 {dimension_numbers = #tpu.dot_dimension_numbers<[1], [0], [0], [1], [0, 0, 1, 1], [], []>} : vector<8x8xf32>, vector<8x8xf32>, vector<8x8xf32> -> vector<8x8xf32>
    %c8_259 = arith.constant 8 : index
    %c0_260 = arith.constant 0 : index
    %579 = vector.load %arg17[%c8_259, %c0_260] : memref<16x32xf32, #tpu.memory_space<vmem>>, vector<8x8xf32>
    tpu.vector_store %arg17[%c8_259, %c0_260], %578 {strides = array<i32>} : memref<16x32xf32, #tpu.memory_space<vmem>>, vector<8x8xf32>,
    %580 = vector.extract_strided_slice %489 {offsets = [8, 8], sizes = [8, 8], strides = [1, 1]} : vector<16x96xf32> to vector<8x8xf32>
    %581 = vector.extract_strided_slice %489 {offsets = [8, 40], sizes = [8, 8], strides = [1, 1]} : vector<16x96xf32> to vector<8x8xf32>
    %582 = vector.extract_strided_slice %489 {offsets = [8, 72], sizes = [8, 8], strides = [1, 1]} : vector<16x96xf32> to vector<8x8xf32>
    %cst_261 = arith.constant dense<0.000000e+00> : vector<8x8xf32>
    %583 = tpu.matmul %580, %581, %cst_261 {dimension_numbers = #tpu.dot_dimension_numbers<[1], [1], [0], [0], [0, 0, 1, 0], [], []>} : vector<8x8xf32>, vector<8x8xf32>, vector<8x8xf32> -> vector<8x8xf32>
    %cst_262 = arith.constant 0.353553385 : f32
    %584 = vector.broadcast %cst_262 : f32 to vector<8x8xf32>
    %585 = arith.mulf %583, %584 : vector<8x8xf32>
    %cst_263 = arith.constant dense<0xFF800000> : vector<8xf32>
    %586 = vector.multi_reduction <maximumf>, %585, %cst_263 [1] : vector<8x8xf32> to vector<8xf32>
    %587 = vector.shape_cast %586 : vector<8xf32> to vector<8x1xf32>
    %588 = vector.broadcast %587 : vector<8x1xf32> to vector<8x8xf32>
    %589 = arith.subf %585, %588 : vector<8x8xf32>
    %590 = math.exp %589 : vector<8x8xf32>
    %cst_264 = arith.constant dense<0.000000e+00> : vector<8xf32>
    %591 = vector.multi_reduction <add>, %590, %cst_264 [1] : vector<8x8xf32> to vector<8xf32>
    %592 = vector.shape_cast %591 : vector<8xf32> to vector<8x1xf32>
    %593 = tpu.reciprocal %592 {approx = true} : vector<8x1xf32> -> vector<8x1xf32>
    %594 = vector.broadcast %593 : vector<8x1xf32> to vector<8x8xf32>
    %595 = arith.mulf %590, %594 : vector<8x8xf32>
    %cst_265 = arith.constant dense<0.000000e+00> : vector<8x8xf32>
    %596 = tpu.matmul %595, %582, %cst_265 {dimension_numbers = #tpu.dot_dimension_numbers<[1], [0], [0], [1], [0, 0, 1, 1], [], []>} : vector<8x8xf32>, vector<8x8xf32>, vector<8x8xf32> -> vector<8x8xf32>
    %c8_266 = arith.constant 8 : index
    %c8_267 = arith.constant 8 : index
    %597 = vector.load %arg17[%c8_266, %c8_267] : memref<16x32xf32, #tpu.memory_space<vmem>>, vector<8x8xf32>
    tpu.vector_store %arg17[%c8_266, %c8_267], %596 {strides = array<i32>} : memref<16x32xf32, #tpu.memory_space<vmem>>, vector<8x8xf32>,
    %598 = vector.extract_strided_slice %489 {offsets = [8, 16], sizes = [8, 8], strides = [1, 1]} : vector<16x96xf32> to vector<8x8xf32>
    %599 = vector.extract_strided_slice %489 {offsets = [8, 48], sizes = [8, 8], strides = [1, 1]} : vector<16x96xf32> to vector<8x8xf32>
    %600 = vector.extract_strided_slice %489 {offsets = [8, 80], sizes = [8, 8], strides = [1, 1]} : vector<16x96xf32> to vector<8x8xf32>
    %cst_268 = arith.constant dense<0.000000e+00> : vector<8x8xf32>
    %601 = tpu.matmul %598, %599, %cst_268 {dimension_numbers = #tpu.dot_dimension_numbers<[1], [1], [0], [0], [0, 0, 1, 0], [], []>} : vector<8x8xf32>, vector<8x8xf32>, vector<8x8xf32> -> vector<8x8xf32>
    %cst_269 = arith.constant 0.353553385 : f32
    %602 = vector.broadcast %cst_269 : f32 to vector<8x8xf32>
    %603 = arith.mulf %601, %602 : vector<8x8xf32>
    %cst_270 = arith.constant dense<0xFF800000> : vector<8xf32>
    %604 = vector.multi_reduction <maximumf>, %603, %cst_270 [1] : vector<8x8xf32> to vector<8xf32>
    %605 = vector.shape_cast %604 : vector<8xf32> to vector<8x1xf32>
    %606 = vector.broadcast %605 : vector<8x1xf32> to vector<8x8xf32>
    %607 = arith.subf %603, %606 : vector<8x8xf32>
    %608 = math.exp %607 : vector<8x8xf32>
    %cst_271 = arith.constant dense<0.000000e+00> : vector<8xf32>
    %609 = vector.multi_reduction <add>, %608, %cst_271 [1] : vector<8x8xf32> to vector<8xf32>
    %610 = vector.shape_cast %609 : vector<8xf32> to vector<8x1xf32>
    %611 = tpu.reciprocal %610 {approx = true} : vector<8x1xf32> -> vector<8x1xf32>
    %612 = vector.broadcast %611 : vector<8x1xf32> to vector<8x8xf32>
    %613 = arith.mulf %608, %612 : vector<8x8xf32>
    %cst_272 = arith.constant dense<0.000000e+00> : vector<8x8xf32>
    %614 = tpu.matmul %613, %600, %cst_272 {dimension_numbers = #tpu.dot_dimension_numbers<[1], [0], [0], [1], [0, 0, 1, 1], [], []>} : vector<8x8xf32>, vector<8x8xf32>, vector<8x8xf32> -> vector<8x8xf32>
    %c8_273 = arith.constant 8 : index
    %c16_274 = arith.constant 16 : index
    %615 = vector.load %arg17[%c8_273, %c16_274] : memref<16x32xf32, #tpu.memory_space<vmem>>, vector<8x8xf32>
    tpu.vector_store %arg17[%c8_273, %c16_274], %614 {strides = array<i32>} : memref<16x32xf32, #tpu.memory_space<vmem>>, vector<8x8xf32>,
    %616 = vector.extract_strided_slice %489 {offsets = [8, 24], sizes = [8, 8], strides = [1, 1]} : vector<16x96xf32> to vector<8x8xf32>
    %617 = vector.extract_strided_slice %489 {offsets = [8, 56], sizes = [8, 8], strides = [1, 1]} : vector<16x96xf32> to vector<8x8xf32>
    %618 = vector.extract_strided_slice %489 {offsets = [8, 88], sizes = [8, 8], strides = [1, 1]} : vector<16x96xf32> to vector<8x8xf32>
    %cst_275 = arith.constant dense<0.000000e+00> : vector<8x8xf32>
    %619 = tpu.matmul %616, %617, %cst_275 {dimension_numbers = #tpu.dot_dimension_numbers<[1], [1], [0], [0], [0, 0, 1, 0], [], []>} : vector<8x8xf32>, vector<8x8xf32>, vector<8x8xf32> -> vector<8x8xf32>
    %cst_276 = arith.constant 0.353553385 : f32
    %620 = vector.broadcast %cst_276 : f32 to vector<8x8xf32>
    %621 = arith.mulf %619, %620 : vector<8x8xf32>
    %cst_277 = arith.constant dense<0xFF800000> : vector<8xf32>
    %622 = vector.multi_reduction <maximumf>, %621, %cst_277 [1] : vector<8x8xf32> to vector<8xf32>
    %623 = vector.shape_cast %622 : vector<8xf32> to vector<8x1xf32>
    %624 = vector.broadcast %623 : vector<8x1xf32> to vector<8x8xf32>
    %625 = arith.subf %621, %624 : vector<8x8xf32>
    %626 = math.exp %625 : vector<8x8xf32>
    %cst_278 = arith.constant dense<0.000000e+00> : vector<8xf32>
    %627 = vector.multi_reduction <add>, %626, %cst_278 [1] : vector<8x8xf32> to vector<8xf32>
    %628 = vector.shape_cast %627 : vector<8xf32> to vector<8x1xf32>
    %629 = tpu.reciprocal %628 {approx = true} : vector<8x1xf32> -> vector<8x1xf32>
    %630 = vector.broadcast %629 : vector<8x1xf32> to vector<8x8xf32>
    %631 = arith.mulf %626, %630 : vector<8x8xf32>
    %cst_279 = arith.constant dense<0.000000e+00> : vector<8x8xf32>
    %632 = tpu.matmul %631, %618, %cst_279 {dimension_numbers = #tpu.dot_dimension_numbers<[1], [0], [0], [1], [0, 0, 1, 1], [], []>} : vector<8x8xf32>, vector<8x8xf32>, vector<8x8xf32> -> vector<8x8xf32>
    %c8_280 = arith.constant 8 : index
    %c24_281 = arith.constant 24 : index
    %633 = vector.load %arg17[%c8_280, %c24_281] : memref<16x32xf32, #tpu.memory_space<vmem>>, vector<8x8xf32>
    tpu.vector_store %arg17[%c8_280, %c24_281], %632 {strides = array<i32>} : memref<16x32xf32, #tpu.memory_space<vmem>>, vector<8x8xf32>,
    %c0_282 = arith.constant 0 : index
    %c0_283 = arith.constant 0 : index
    %634 = vector.load %arg17[%c0_282, %c0_283] : memref<16x32xf32, #tpu.memory_space<vmem>>, vector<16x32xf32>
    %635 = arith.addf %482, %634 : vector<16x32xf32>
    %c0_284 = arith.constant 0 : index
    %c0_285 = arith.constant 0 : index
    %c0_286 = arith.constant 0 : index
    %636 = vector.load %arg7[%c0_284, %c0_285, %c0_286] : memref<2x1x32xf32, #tpu.memory_space<vmem>>, vector<1x1x32xf32>
    %637 = vector.shape_cast %636 : vector<1x1x32xf32> to vector<1x32xf32>
    %c0_287 = arith.constant 0 : index
    %c0_288 = arith.constant 0 : index
    %c0_289 = arith.constant 0 : index
    %638 = vector.load %arg8[%c0_287, %c0_288, %c0_289] : memref<2x1x32xf32, #tpu.memory_space<vmem>>, vector<1x1x32xf32>
    %639 = vector.shape_cast %638 : vector<1x1x32xf32> to vector<1x32xf32>
    %cst_290 = arith.constant dense<0.000000e+00> : vector<16xf32>
    %640 = vector.multi_reduction <add>, %635, %cst_290 [1] : vector<16x32xf32> to vector<16xf32>
    %641 = vector.shape_cast %640 : vector<16xf32> to vector<16x1xf32>
    %cst_291 = arith.constant 3.200000e+01 : f32
    %642 = vector.broadcast %cst_291 : f32 to vector<16x1xf32>
    %643 = arith.divf %641, %642 : vector<16x1xf32>
    %644 = vector.broadcast %643 : vector<16x1xf32> to vector<16x32xf32>
    %645 = arith.subf %635, %644 : vector<16x32xf32>
    %646 = arith.mulf %645, %645 : vector<16x32xf32>
    %cst_292 = arith.constant dense<0.000000e+00> : vector<16xf32>
    %647 = vector.multi_reduction <add>, %646, %cst_292 [1] : vector<16x32xf32> to vector<16xf32>
    %648 = vector.shape_cast %647 : vector<16xf32> to vector<16x1xf32>
    %cst_293 = arith.constant 3.200000e+01 : f32
    %649 = vector.broadcast %cst_293 : f32 to vector<16x1xf32>
    %650 = arith.divf %648, %649 : vector<16x1xf32>
    %cst_294 = arith.constant 9.99999974E-6 : f32
    %651 = vector.broadcast %cst_294 : f32 to vector<16x1xf32>
    %652 = arith.addf %650, %651 : vector<16x1xf32>
    %653 = math.rsqrt %652 : vector<16x1xf32>
    %654 = vector.broadcast %653 : vector<16x1xf32> to vector<16x32xf32>
    %655 = arith.mulf %645, %654 : vector<16x32xf32>
    %656 = vector.broadcast %637 : vector<1x32xf32> to vector<16x32xf32>
    %657 = arith.mulf %655, %656 : vector<16x32xf32>
    %658 = vector.broadcast %639 : vector<1x32xf32> to vector<16x32xf32>
    %659 = arith.addf %657, %658 : vector<16x32xf32>
    %c0_295 = arith.constant 0 : index
    %c0_296 = arith.constant 0 : index
    %c0_297 = arith.constant 0 : index
    %660 = vector.load %arg9[%c0_295, %c0_296, %c0_297] : memref<2x32x64xf32, #tpu.memory_space<vmem>>, vector<1x32x64xf32>
    %661 = vector.shape_cast %660 : vector<1x32x64xf32> to vector<32x64xf32>
    %cst_298 = arith.constant dense<0.000000e+00> : vector<16x64xf32>
    %662 = tpu.matmul %659, %661, %cst_298 {dimension_numbers = #tpu.dot_dimension_numbers<[1], [0], [0], [1], [0, 0, 1, 1], [], []>} : vector<16x32xf32>, vector<32x64xf32>, vector<16x64xf32> -> vector<16x64xf32>
    %c0_299 = arith.constant 0 : index
    %c0_300 = arith.constant 0 : index
    %c0_301 = arith.constant 0 : index
    %663 = vector.load %arg10[%c0_299, %c0_300, %c0_301] : memref<2x1x64xf32, #tpu.memory_space<vmem>>, vector<1x1x64xf32>
    %664 = vector.shape_cast %663 : vector<1x1x64xf32> to vector<1x64xf32>
    %665 = vector.broadcast %664 : vector<1x64xf32> to vector<16x64xf32>
    %666 = arith.addf %662, %665 : vector<16x64xf32>
    %cst_302 = arith.constant 5.000000e-01 : f32
    %667 = vector.broadcast %cst_302 : f32 to vector<16x64xf32>
    %668 = arith.mulf %667, %666 : vector<16x64xf32>
    %669 = arith.mulf %666, %666 : vector<16x64xf32>
    %670 = arith.mulf %669, %666 : vector<16x64xf32>
    %cst_303 = arith.constant 4.471500e-02 : f32
    %671 = vector.broadcast %cst_303 : f32 to vector<16x64xf32>
    %672 = arith.mulf %671, %670 : vector<16x64xf32>
    %673 = arith.addf %666, %672 : vector<16x64xf32>
    %cst_304 = arith.constant 0.797884583 : f32
    %674 = vector.broadcast %cst_304 : f32 to vector<16x64xf32>
    %675 = arith.mulf %674, %673 : vector<16x64xf32>
    %676 = math.tanh %675 : vector<16x64xf32>
    %cst_305 = arith.constant 1.000000e+00 : f32
    %677 = vector.broadcast %cst_305 : f32 to vector<16x64xf32>
    %678 = arith.addf %677, %676 : vector<16x64xf32>
    %679 = arith.mulf %668, %678 : vector<16x64xf32>
    %c0_306 = arith.constant 0 : index
    %c0_307 = arith.constant 0 : index
    %c0_308 = arith.constant 0 : index
    %680 = vector.load %arg11[%c0_306, %c0_307, %c0_308] : memref<2x64x32xf32, #tpu.memory_space<vmem>>, vector<1x64x32xf32>
    %681 = vector.shape_cast %680 : vector<1x64x32xf32> to vector<64x32xf32>
    %cst_309 = arith.constant dense<0.000000e+00> : vector<16x32xf32>
    %682 = tpu.matmul %679, %681, %cst_309 {dimension_numbers = #tpu.dot_dimension_numbers<[1], [0], [0], [1], [0, 0, 1, 1], [], []>} : vector<16x64xf32>, vector<64x32xf32>, vector<16x32xf32> -> vector<16x32xf32>
    %c0_310 = arith.constant 0 : index
    %c0_311 = arith.constant 0 : index
    %c0_312 = arith.constant 0 : index
    %683 = vector.load %arg12[%c0_310, %c0_311, %c0_312] : memref<2x1x32xf32, #tpu.memory_space<vmem>>, vector<1x1x32xf32>
    %684 = vector.shape_cast %683 : vector<1x1x32xf32> to vector<1x32xf32>
    %685 = vector.broadcast %684 : vector<1x32xf32> to vector<16x32xf32>
    %686 = arith.addf %682, %685 : vector<16x32xf32>
    %687 = arith.addf %659, %686 : vector<16x32xf32>
    %c0_313 = arith.constant 0 : index
    %c0_314 = arith.constant 0 : index
    %c0_315 = arith.constant 0 : index
    %688 = vector.load %arg13[%c0_313, %c0_314, %c0_315] : memref<2x1x32xf32, #tpu.memory_space<vmem>>, vector<1x1x32xf32>
    %689 = vector.shape_cast %688 : vector<1x1x32xf32> to vector<1x32xf32>
    %c0_316 = arith.constant 0 : index
    %c0_317 = arith.constant 0 : index
    %c0_318 = arith.constant 0 : index
    %690 = vector.load %arg14[%c0_316, %c0_317, %c0_318] : memref<2x1x32xf32, #tpu.memory_space<vmem>>, vector<1x1x32xf32>
    %691 = vector.shape_cast %690 : vector<1x1x32xf32> to vector<1x32xf32>
    %cst_319 = arith.constant dense<0.000000e+00> : vector<16xf32>
    %692 = vector.multi_reduction <add>, %687, %cst_319 [1] : vector<16x32xf32> to vector<16xf32>
    %693 = vector.shape_cast %692 : vector<16xf32> to vector<16x1xf32>
    %cst_320 = arith.constant 3.200000e+01 : f32
    %694 = vector.broadcast %cst_320 : f32 to vector<16x1xf32>
    %695 = arith.divf %693, %694 : vector<16x1xf32>
    %696 = vector.broadcast %695 : vector<16x1xf32> to vector<16x32xf32>
    %697 = arith.subf %687, %696 : vector<16x32xf32>
    %698 = arith.mulf %697, %697 : vector<16x32xf32>
    %cst_321 = arith.constant dense<0.000000e+00> : vector<16xf32>
    %699 = vector.multi_reduction <add>, %698, %cst_321 [1] : vector<16x32xf32> to vector<16xf32>
    %700 = vector.shape_cast %699 : vector<16xf32> to vector<16x1xf32>
    %cst_322 = arith.constant 3.200000e+01 : f32
    %701 = vector.broadcast %cst_322 : f32 to vector<16x1xf32>
    %702 = arith.divf %700, %701 : vector<16x1xf32>
    %cst_323 = arith.constant 9.99999974E-6 : f32
    %703 = vector.broadcast %cst_323 : f32 to vector<16x1xf32>
    %704 = arith.addf %702, %703 : vector<16x1xf32>
    %705 = math.rsqrt %704 : vector<16x1xf32>
    %706 = vector.broadcast %705 : vector<16x1xf32> to vector<16x32xf32>
    %707 = arith.mulf %697, %706 : vector<16x32xf32>
    %708 = vector.broadcast %689 : vector<1x32xf32> to vector<16x32xf32>
    %709 = arith.mulf %707, %708 : vector<16x32xf32>
    %710 = vector.broadcast %691 : vector<1x32xf32> to vector<16x32xf32>
    %711 = arith.addf %709, %710 : vector<16x32xf32>
    %c1_324 = arith.constant 1 : index
    %c0_325 = arith.constant 0 : index
    %c0_326 = arith.constant 0 : index
    %712 = vector.load %arg5[%c1_324, %c0_325, %c0_326] : memref<2x32x96xf32, #tpu.memory_space<vmem>>, vector<1x32x96xf32>
    %713 = vector.shape_cast %712 : vector<1x32x96xf32> to vector<32x96xf32>
    %cst_327 = arith.constant dense<0.000000e+00> : vector<16x96xf32>
    %714 = tpu.matmul %711, %713, %cst_327 {dimension_numbers = #tpu.dot_dimension_numbers<[1], [0], [0], [1], [0, 0, 1, 1], [], []>} : vector<16x32xf32>, vector<32x96xf32>, vector<16x96xf32> -> vector<16x96xf32>
    %c1_328 = arith.constant 1 : index
    %c0_329 = arith.constant 0 : index
    %c0_330 = arith.constant 0 : index
    %715 = vector.load %arg6[%c1_328, %c0_329, %c0_330] : memref<2x1x96xf32, #tpu.memory_space<vmem>>, vector<1x1x96xf32>
    %716 = vector.shape_cast %715 : vector<1x1x96xf32> to vector<1x96xf32>
    %717 = vector.broadcast %716 : vector<1x96xf32> to vector<16x96xf32>
    %718 = arith.addf %714, %717 : vector<16x96xf32>
    %719 = vector.extract_strided_slice %718 {offsets = [0, 0], sizes = [8, 8], strides = [1, 1]} : vector<16x96xf32> to vector<8x8xf32>
    %720 = vector.extract_strided_slice %718 {offsets = [0, 32], sizes = [8, 8], strides = [1, 1]} : vector<16x96xf32> to vector<8x8xf32>
    %721 = vector.extract_strided_slice %718 {offsets = [0, 64], sizes = [8, 8], strides = [1, 1]} : vector<16x96xf32> to vector<8x8xf32>
    %cst_331 = arith.constant dense<0.000000e+00> : vector<8x8xf32>
    %722 = tpu.matmul %719, %720, %cst_331 {dimension_numbers = #tpu.dot_dimension_numbers<[1], [1], [0], [0], [0, 0, 1, 0], [], []>} : vector<8x8xf32>, vector<8x8xf32>, vector<8x8xf32> -> vector<8x8xf32>
    %cst_332 = arith.constant 0.353553385 : f32
    %723 = vector.broadcast %cst_332 : f32 to vector<8x8xf32>
    %724 = arith.mulf %722, %723 : vector<8x8xf32>
    %cst_333 = arith.constant dense<0xFF800000> : vector<8xf32>
    %725 = vector.multi_reduction <maximumf>, %724, %cst_333 [1] : vector<8x8xf32> to vector<8xf32>
    %726 = vector.shape_cast %725 : vector<8xf32> to vector<8x1xf32>
    %727 = vector.broadcast %726 : vector<8x1xf32> to vector<8x8xf32>
    %728 = arith.subf %724, %727 : vector<8x8xf32>
    %729 = math.exp %728 : vector<8x8xf32>
    %cst_334 = arith.constant dense<0.000000e+00> : vector<8xf32>
    %730 = vector.multi_reduction <add>, %729, %cst_334 [1] : vector<8x8xf32> to vector<8xf32>
    %731 = vector.shape_cast %730 : vector<8xf32> to vector<8x1xf32>
    %732 = tpu.reciprocal %731 {approx = true} : vector<8x1xf32> -> vector<8x1xf32>
    %733 = vector.broadcast %732 : vector<8x1xf32> to vector<8x8xf32>
    %734 = arith.mulf %729, %733 : vector<8x8xf32>
    %cst_335 = arith.constant dense<0.000000e+00> : vector<8x8xf32>
    %735 = tpu.matmul %734, %721, %cst_335 {dimension_numbers = #tpu.dot_dimension_numbers<[1], [0], [0], [1], [0, 0, 1, 1], [], []>} : vector<8x8xf32>, vector<8x8xf32>, vector<8x8xf32> -> vector<8x8xf32>
    %c0_336 = arith.constant 0 : index
    %c0_337 = arith.constant 0 : index
    %736 = vector.load %arg17[%c0_336, %c0_337] : memref<16x32xf32, #tpu.memory_space<vmem>>, vector<8x8xf32>
    tpu.vector_store %arg17[%c0_336, %c0_337], %735 {strides = array<i32>} : memref<16x32xf32, #tpu.memory_space<vmem>>, vector<8x8xf32>,
    %737 = vector.extract_strided_slice %718 {offsets = [0, 8], sizes = [8, 8], strides = [1, 1]} : vector<16x96xf32> to vector<8x8xf32>
    %738 = vector.extract_strided_slice %718 {offsets = [0, 40], sizes = [8, 8], strides = [1, 1]} : vector<16x96xf32> to vector<8x8xf32>
    %739 = vector.extract_strided_slice %718 {offsets = [0, 72], sizes = [8, 8], strides = [1, 1]} : vector<16x96xf32> to vector<8x8xf32>
    %cst_338 = arith.constant dense<0.000000e+00> : vector<8x8xf32>
    %740 = tpu.matmul %737, %738, %cst_338 {dimension_numbers = #tpu.dot_dimension_numbers<[1], [1], [0], [0], [0, 0, 1, 0], [], []>} : vector<8x8xf32>, vector<8x8xf32>, vector<8x8xf32> -> vector<8x8xf32>
    %cst_339 = arith.constant 0.353553385 : f32
    %741 = vector.broadcast %cst_339 : f32 to vector<8x8xf32>
    %742 = arith.mulf %740, %741 : vector<8x8xf32>
    %cst_340 = arith.constant dense<0xFF800000> : vector<8xf32>
    %743 = vector.multi_reduction <maximumf>, %742, %cst_340 [1] : vector<8x8xf32> to vector<8xf32>
    %744 = vector.shape_cast %743 : vector<8xf32> to vector<8x1xf32>
    %745 = vector.broadcast %744 : vector<8x1xf32> to vector<8x8xf32>
    %746 = arith.subf %742, %745 : vector<8x8xf32>
    %747 = math.exp %746 : vector<8x8xf32>
    %cst_341 = arith.constant dense<0.000000e+00> : vector<8xf32>
    %748 = vector.multi_reduction <add>, %747, %cst_341 [1] : vector<8x8xf32> to vector<8xf32>
    %749 = vector.shape_cast %748 : vector<8xf32> to vector<8x1xf32>
    %750 = tpu.reciprocal %749 {approx = true} : vector<8x1xf32> -> vector<8x1xf32>
    %751 = vector.broadcast %750 : vector<8x1xf32> to vector<8x8xf32>
    %752 = arith.mulf %747, %751 : vector<8x8xf32>
    %cst_342 = arith.constant dense<0.000000e+00> : vector<8x8xf32>
    %753 = tpu.matmul %752, %739, %cst_342 {dimension_numbers = #tpu.dot_dimension_numbers<[1], [0], [0], [1], [0, 0, 1, 1], [], []>} : vector<8x8xf32>, vector<8x8xf32>, vector<8x8xf32> -> vector<8x8xf32>
    %c0_343 = arith.constant 0 : index
    %c8_344 = arith.constant 8 : index
    %754 = vector.load %arg17[%c0_343, %c8_344] : memref<16x32xf32, #tpu.memory_space<vmem>>, vector<8x8xf32>
    tpu.vector_store %arg17[%c0_343, %c8_344], %753 {strides = array<i32>} : memref<16x32xf32, #tpu.memory_space<vmem>>, vector<8x8xf32>,
    %755 = vector.extract_strided_slice %718 {offsets = [0, 16], sizes = [8, 8], strides = [1, 1]} : vector<16x96xf32> to vector<8x8xf32>
    %756 = vector.extract_strided_slice %718 {offsets = [0, 48], sizes = [8, 8], strides = [1, 1]} : vector<16x96xf32> to vector<8x8xf32>
    %757 = vector.extract_strided_slice %718 {offsets = [0, 80], sizes = [8, 8], strides = [1, 1]} : vector<16x96xf32> to vector<8x8xf32>
    %cst_345 = arith.constant dense<0.000000e+00> : vector<8x8xf32>
    %758 = tpu.matmul %755, %756, %cst_345 {dimension_numbers = #tpu.dot_dimension_numbers<[1], [1], [0], [0], [0, 0, 1, 0], [], []>} : vector<8x8xf32>, vector<8x8xf32>, vector<8x8xf32> -> vector<8x8xf32>
    %cst_346 = arith.constant 0.353553385 : f32
    %759 = vector.broadcast %cst_346 : f32 to vector<8x8xf32>
    %760 = arith.mulf %758, %759 : vector<8x8xf32>
    %cst_347 = arith.constant dense<0xFF800000> : vector<8xf32>
    %761 = vector.multi_reduction <maximumf>, %760, %cst_347 [1] : vector<8x8xf32> to vector<8xf32>
    %762 = vector.shape_cast %761 : vector<8xf32> to vector<8x1xf32>
    %763 = vector.broadcast %762 : vector<8x1xf32> to vector<8x8xf32>
    %764 = arith.subf %760, %763 : vector<8x8xf32>
    %765 = math.exp %764 : vector<8x8xf32>
    %cst_348 = arith.constant dense<0.000000e+00> : vector<8xf32>
    %766 = vector.multi_reduction <add>, %765, %cst_348 [1] : vector<8x8xf32> to vector<8xf32>
    %767 = vector.shape_cast %766 : vector<8xf32> to vector<8x1xf32>
    %768 = tpu.reciprocal %767 {approx = true} : vector<8x1xf32> -> vector<8x1xf32>
    %769 = vector.broadcast %768 : vector<8x1xf32> to vector<8x8xf32>
    %770 = arith.mulf %765, %769 : vector<8x8xf32>
    %cst_349 = arith.constant dense<0.000000e+00> : vector<8x8xf32>
    %771 = tpu.matmul %770, %757, %cst_349 {dimension_numbers = #tpu.dot_dimension_numbers<[1], [0], [0], [1], [0, 0, 1, 1], [], []>} : vector<8x8xf32>, vector<8x8xf32>, vector<8x8xf32> -> vector<8x8xf32>
    %c0_350 = arith.constant 0 : index
    %c16_351 = arith.constant 16 : index
    %772 = vector.load %arg17[%c0_350, %c16_351] : memref<16x32xf32, #tpu.memory_space<vmem>>, vector<8x8xf32>
    tpu.vector_store %arg17[%c0_350, %c16_351], %771 {strides = array<i32>} : memref<16x32xf32, #tpu.memory_space<vmem>>, vector<8x8xf32>,
    %773 = vector.extract_strided_slice %718 {offsets = [0, 24], sizes = [8, 8], strides = [1, 1]} : vector<16x96xf32> to vector<8x8xf32>
    %774 = vector.extract_strided_slice %718 {offsets = [0, 56], sizes = [8, 8], strides = [1, 1]} : vector<16x96xf32> to vector<8x8xf32>
    %775 = vector.extract_strided_slice %718 {offsets = [0, 88], sizes = [8, 8], strides = [1, 1]} : vector<16x96xf32> to vector<8x8xf32>
    %cst_352 = arith.constant dense<0.000000e+00> : vector<8x8xf32>
    %776 = tpu.matmul %773, %774, %cst_352 {dimension_numbers = #tpu.dot_dimension_numbers<[1], [1], [0], [0], [0, 0, 1, 0], [], []>} : vector<8x8xf32>, vector<8x8xf32>, vector<8x8xf32> -> vector<8x8xf32>
    %cst_353 = arith.constant 0.353553385 : f32
    %777 = vector.broadcast %cst_353 : f32 to vector<8x8xf32>
    %778 = arith.mulf %776, %777 : vector<8x8xf32>
    %cst_354 = arith.constant dense<0xFF800000> : vector<8xf32>
    %779 = vector.multi_reduction <maximumf>, %778, %cst_354 [1] : vector<8x8xf32> to vector<8xf32>
    %780 = vector.shape_cast %779 : vector<8xf32> to vector<8x1xf32>
    %781 = vector.broadcast %780 : vector<8x1xf32> to vector<8x8xf32>
    %782 = arith.subf %778, %781 : vector<8x8xf32>
    %783 = math.exp %782 : vector<8x8xf32>
    %cst_355 = arith.constant dense<0.000000e+00> : vector<8xf32>
    %784 = vector.multi_reduction <add>, %783, %cst_355 [1] : vector<8x8xf32> to vector<8xf32>
    %785 = vector.shape_cast %784 : vector<8xf32> to vector<8x1xf32>
    %786 = tpu.reciprocal %785 {approx = true} : vector<8x1xf32> -> vector<8x1xf32>
    %787 = vector.broadcast %786 : vector<8x1xf32> to vector<8x8xf32>
    %788 = arith.mulf %783, %787 : vector<8x8xf32>
    %cst_356 = arith.constant dense<0.000000e+00> : vector<8x8xf32>
    %789 = tpu.matmul %788, %775, %cst_356 {dimension_numbers = #tpu.dot_dimension_numbers<[1], [0], [0], [1], [0, 0, 1, 1], [], []>} : vector<8x8xf32>, vector<8x8xf32>, vector<8x8xf32> -> vector<8x8xf32>
    %c0_357 = arith.constant 0 : index
    %c24_358 = arith.constant 24 : index
    %790 = vector.load %arg17[%c0_357, %c24_358] : memref<16x32xf32, #tpu.memory_space<vmem>>, vector<8x8xf32>
    tpu.vector_store %arg17[%c0_357, %c24_358], %789 {strides = array<i32>} : memref<16x32xf32, #tpu.memory_space<vmem>>, vector<8x8xf32>,
    %791 = vector.extract_strided_slice %718 {offsets = [8, 0], sizes = [8, 8], strides = [1, 1]} : vector<16x96xf32> to vector<8x8xf32>
    %792 = vector.extract_strided_slice %718 {offsets = [8, 32], sizes = [8, 8], strides = [1, 1]} : vector<16x96xf32> to vector<8x8xf32>
    %793 = vector.extract_strided_slice %718 {offsets = [8, 64], sizes = [8, 8], strides = [1, 1]} : vector<16x96xf32> to vector<8x8xf32>
    %cst_359 = arith.constant dense<0.000000e+00> : vector<8x8xf32>
    %794 = tpu.matmul %791, %792, %cst_359 {dimension_numbers = #tpu.dot_dimension_numbers<[1], [1], [0], [0], [0, 0, 1, 0], [], []>} : vector<8x8xf32>, vector<8x8xf32>, vector<8x8xf32> -> vector<8x8xf32>
    %cst_360 = arith.constant 0.353553385 : f32
    %795 = vector.broadcast %cst_360 : f32 to vector<8x8xf32>
    %796 = arith.mulf %794, %795 : vector<8x8xf32>
    %cst_361 = arith.constant dense<0xFF800000> : vector<8xf32>
    %797 = vector.multi_reduction <maximumf>, %796, %cst_361 [1] : vector<8x8xf32> to vector<8xf32>
    %798 = vector.shape_cast %797 : vector<8xf32> to vector<8x1xf32>
    %799 = vector.broadcast %798 : vector<8x1xf32> to vector<8x8xf32>
    %800 = arith.subf %796, %799 : vector<8x8xf32>
    %801 = math.exp %800 : vector<8x8xf32>
    %cst_362 = arith.constant dense<0.000000e+00> : vector<8xf32>
    %802 = vector.multi_reduction <add>, %801, %cst_362 [1] : vector<8x8xf32> to vector<8xf32>
    %803 = vector.shape_cast %802 : vector<8xf32> to vector<8x1xf32>
    %804 = tpu.reciprocal %803 {approx = true} : vector<8x1xf32> -> vector<8x1xf32>
    %805 = vector.broadcast %804 : vector<8x1xf32> to vector<8x8xf32>
    %806 = arith.mulf %801, %805 : vector<8x8xf32>
    %cst_363 = arith.constant dense<0.000000e+00> : vector<8x8xf32>
    %807 = tpu.matmul %806, %793, %cst_363 {dimension_numbers = #tpu.dot_dimension_numbers<[1], [0], [0], [1], [0, 0, 1, 1], [], []>} : vector<8x8xf32>, vector<8x8xf32>, vector<8x8xf32> -> vector<8x8xf32>
    %c8_364 = arith.constant 8 : index
    %c0_365 = arith.constant 0 : index
    %808 = vector.load %arg17[%c8_364, %c0_365] : memref<16x32xf32, #tpu.memory_space<vmem>>, vector<8x8xf32>
    tpu.vector_store %arg17[%c8_364, %c0_365], %807 {strides = array<i32>} : memref<16x32xf32, #tpu.memory_space<vmem>>, vector<8x8xf32>,
    %809 = vector.extract_strided_slice %718 {offsets = [8, 8], sizes = [8, 8], strides = [1, 1]} : vector<16x96xf32> to vector<8x8xf32>
    %810 = vector.extract_strided_slice %718 {offsets = [8, 40], sizes = [8, 8], strides = [1, 1]} : vector<16x96xf32> to vector<8x8xf32>
    %811 = vector.extract_strided_slice %718 {offsets = [8, 72], sizes = [8, 8], strides = [1, 1]} : vector<16x96xf32> to vector<8x8xf32>
    %cst_366 = arith.constant dense<0.000000e+00> : vector<8x8xf32>
    %812 = tpu.matmul %809, %810, %cst_366 {dimension_numbers = #tpu.dot_dimension_numbers<[1], [1], [0], [0], [0, 0, 1, 0], [], []>} : vector<8x8xf32>, vector<8x8xf32>, vector<8x8xf32> -> vector<8x8xf32>
    %cst_367 = arith.constant 0.353553385 : f32
    %813 = vector.broadcast %cst_367 : f32 to vector<8x8xf32>
    %814 = arith.mulf %812, %813 : vector<8x8xf32>
    %cst_368 = arith.constant dense<0xFF800000> : vector<8xf32>
    %815 = vector.multi_reduction <maximumf>, %814, %cst_368 [1] : vector<8x8xf32> to vector<8xf32>
    %816 = vector.shape_cast %815 : vector<8xf32> to vector<8x1xf32>
    %817 = vector.broadcast %816 : vector<8x1xf32> to vector<8x8xf32>
    %818 = arith.subf %814, %817 : vector<8x8xf32>
    %819 = math.exp %818 : vector<8x8xf32>
    %cst_369 = arith.constant dense<0.000000e+00> : vector<8xf32>
    %820 = vector.multi_reduction <add>, %819, %cst_369 [1] : vector<8x8xf32> to vector<8xf32>
    %821 = vector.shape_cast %820 : vector<8xf32> to vector<8x1xf32>
    %822 = tpu.reciprocal %821 {approx = true} : vector<8x1xf32> -> vector<8x1xf32>
    %823 = vector.broadcast %822 : vector<8x1xf32> to vector<8x8xf32>
    %824 = arith.mulf %819, %823 : vector<8x8xf32>
    %cst_370 = arith.constant dense<0.000000e+00> : vector<8x8xf32>
    %825 = tpu.matmul %824, %811, %cst_370 {dimension_numbers = #tpu.dot_dimension_numbers<[1], [0], [0], [1], [0, 0, 1, 1], [], []>} : vector<8x8xf32>, vector<8x8xf32>, vector<8x8xf32> -> vector<8x8xf32>
    %c8_371 = arith.constant 8 : index
    %c8_372 = arith.constant 8 : index
    %826 = vector.load %arg17[%c8_371, %c8_372] : memref<16x32xf32, #tpu.memory_space<vmem>>, vector<8x8xf32>
    tpu.vector_store %arg17[%c8_371, %c8_372], %825 {strides = array<i32>} : memref<16x32xf32, #tpu.memory_space<vmem>>, vector<8x8xf32>,
    %827 = vector.extract_strided_slice %718 {offsets = [8, 16], sizes = [8, 8], strides = [1, 1]} : vector<16x96xf32> to vector<8x8xf32>
    %828 = vector.extract_strided_slice %718 {offsets = [8, 48], sizes = [8, 8], strides = [1, 1]} : vector<16x96xf32> to vector<8x8xf32>
    %829 = vector.extract_strided_slice %718 {offsets = [8, 80], sizes = [8, 8], strides = [1, 1]} : vector<16x96xf32> to vector<8x8xf32>
    %cst_373 = arith.constant dense<0.000000e+00> : vector<8x8xf32>
    %830 = tpu.matmul %827, %828, %cst_373 {dimension_numbers = #tpu.dot_dimension_numbers<[1], [1], [0], [0], [0, 0, 1, 0], [], []>} : vector<8x8xf32>, vector<8x8xf32>, vector<8x8xf32> -> vector<8x8xf32>
    %cst_374 = arith.constant 0.353553385 : f32
    %831 = vector.broadcast %cst_374 : f32 to vector<8x8xf32>
    %832 = arith.mulf %830, %831 : vector<8x8xf32>
    %cst_375 = arith.constant dense<0xFF800000> : vector<8xf32>
    %833 = vector.multi_reduction <maximumf>, %832, %cst_375 [1] : vector<8x8xf32> to vector<8xf32>
    %834 = vector.shape_cast %833 : vector<8xf32> to vector<8x1xf32>
    %835 = vector.broadcast %834 : vector<8x1xf32> to vector<8x8xf32>
    %836 = arith.subf %832, %835 : vector<8x8xf32>
    %837 = math.exp %836 : vector<8x8xf32>
    %cst_376 = arith.constant dense<0.000000e+00> : vector<8xf32>
    %838 = vector.multi_reduction <add>, %837, %cst_376 [1] : vector<8x8xf32> to vector<8xf32>
    %839 = vector.shape_cast %838 : vector<8xf32> to vector<8x1xf32>
    %840 = tpu.reciprocal %839 {approx = true} : vector<8x1xf32> -> vector<8x1xf32>
    %841 = vector.broadcast %840 : vector<8x1xf32> to vector<8x8xf32>
    %842 = arith.mulf %837, %841 : vector<8x8xf32>
    %cst_377 = arith.constant dense<0.000000e+00> : vector<8x8xf32>
    %843 = tpu.matmul %842, %829, %cst_377 {dimension_numbers = #tpu.dot_dimension_numbers<[1], [0], [0], [1], [0, 0, 1, 1], [], []>} : vector<8x8xf32>, vector<8x8xf32>, vector<8x8xf32> -> vector<8x8xf32>
    %c8_378 = arith.constant 8 : index
    %c16_379 = arith.constant 16 : index
    %844 = vector.load %arg17[%c8_378, %c16_379] : memref<16x32xf32, #tpu.memory_space<vmem>>, vector<8x8xf32>
    tpu.vector_store %arg17[%c8_378, %c16_379], %843 {strides = array<i32>} : memref<16x32xf32, #tpu.memory_space<vmem>>, vector<8x8xf32>,
    %845 = vector.extract_strided_slice %718 {offsets = [8, 24], sizes = [8, 8], strides = [1, 1]} : vector<16x96xf32> to vector<8x8xf32>
    %846 = vector.extract_strided_slice %718 {offsets = [8, 56], sizes = [8, 8], strides = [1, 1]} : vector<16x96xf32> to vector<8x8xf32>
    %847 = vector.extract_strided_slice %718 {offsets = [8, 88], sizes = [8, 8], strides = [1, 1]} : vector<16x96xf32> to vector<8x8xf32>
    %cst_380 = arith.constant dense<0.000000e+00> : vector<8x8xf32>
    %848 = tpu.matmul %845, %846, %cst_380 {dimension_numbers = #tpu.dot_dimension_numbers<[1], [1], [0], [0], [0, 0, 1, 0], [], []>} : vector<8x8xf32>, vector<8x8xf32>, vector<8x8xf32> -> vector<8x8xf32>
    %cst_381 = arith.constant 0.353553385 : f32
    %849 = vector.broadcast %cst_381 : f32 to vector<8x8xf32>
    %850 = arith.mulf %848, %849 : vector<8x8xf32>
    %cst_382 = arith.constant dense<0xFF800000> : vector<8xf32>
    %851 = vector.multi_reduction <maximumf>, %850, %cst_382 [1] : vector<8x8xf32> to vector<8xf32>
    %852 = vector.shape_cast %851 : vector<8xf32> to vector<8x1xf32>
    %853 = vector.broadcast %852 : vector<8x1xf32> to vector<8x8xf32>
    %854 = arith.subf %850, %853 : vector<8x8xf32>
    %855 = math.exp %854 : vector<8x8xf32>
    %cst_383 = arith.constant dense<0.000000e+00> : vector<8xf32>
    %856 = vector.multi_reduction <add>, %855, %cst_383 [1] : vector<8x8xf32> to vector<8xf32>
    %857 = vector.shape_cast %856 : vector<8xf32> to vector<8x1xf32>
    %858 = tpu.reciprocal %857 {approx = true} : vector<8x1xf32> -> vector<8x1xf32>
    %859 = vector.broadcast %858 : vector<8x1xf32> to vector<8x8xf32>
    %860 = arith.mulf %855, %859 : vector<8x8xf32>
    %cst_384 = arith.constant dense<0.000000e+00> : vector<8x8xf32>
    %861 = tpu.matmul %860, %847, %cst_384 {dimension_numbers = #tpu.dot_dimension_numbers<[1], [0], [0], [1], [0, 0, 1, 1], [], []>} : vector<8x8xf32>, vector<8x8xf32>, vector<8x8xf32> -> vector<8x8xf32>
    %c8_385 = arith.constant 8 : index
    %c24_386 = arith.constant 24 : index
    %862 = vector.load %arg17[%c8_385, %c24_386] : memref<16x32xf32, #tpu.memory_space<vmem>>, vector<8x8xf32>
    tpu.vector_store %arg17[%c8_385, %c24_386], %861 {strides = array<i32>} : memref<16x32xf32, #tpu.memory_space<vmem>>, vector<8x8xf32>,
    %c0_387 = arith.constant 0 : index
    %c0_388 = arith.constant 0 : index
    %863 = vector.load %arg17[%c0_387, %c0_388] : memref<16x32xf32, #tpu.memory_space<vmem>>, vector<16x32xf32>
    %864 = arith.addf %711, %863 : vector<16x32xf32>
    %c1_389 = arith.constant 1 : index
    %c0_390 = arith.constant 0 : index
    %c0_391 = arith.constant 0 : index
    %865 = vector.load %arg7[%c1_389, %c0_390, %c0_391] : memref<2x1x32xf32, #tpu.memory_space<vmem>>, vector<1x1x32xf32>
    %866 = vector.shape_cast %865 : vector<1x1x32xf32> to vector<1x32xf32>
    %c1_392 = arith.constant 1 : index
    %c0_393 = arith.constant 0 : index
    %c0_394 = arith.constant 0 : index
    %867 = vector.load %arg8[%c1_392, %c0_393, %c0_394] : memref<2x1x32xf32, #tpu.memory_space<vmem>>, vector<1x1x32xf32>
    %868 = vector.shape_cast %867 : vector<1x1x32xf32> to vector<1x32xf32>
    %cst_395 = arith.constant dense<0.000000e+00> : vector<16xf32>
    %869 = vector.multi_reduction <add>, %864, %cst_395 [1] : vector<16x32xf32> to vector<16xf32>
    %870 = vector.shape_cast %869 : vector<16xf32> to vector<16x1xf32>
    %cst_396 = arith.constant 3.200000e+01 : f32
    %871 = vector.broadcast %cst_396 : f32 to vector<16x1xf32>
    %872 = arith.divf %870, %871 : vector<16x1xf32>
    %873 = vector.broadcast %872 : vector<16x1xf32> to vector<16x32xf32>
    %874 = arith.subf %864, %873 : vector<16x32xf32>
    %875 = arith.mulf %874, %874 : vector<16x32xf32>
    %cst_397 = arith.constant dense<0.000000e+00> : vector<16xf32>
    %876 = vector.multi_reduction <add>, %875, %cst_397 [1] : vector<16x32xf32> to vector<16xf32>
    %877 = vector.shape_cast %876 : vector<16xf32> to vector<16x1xf32>
    %cst_398 = arith.constant 3.200000e+01 : f32
    %878 = vector.broadcast %cst_398 : f32 to vector<16x1xf32>
    %879 = arith.divf %877, %878 : vector<16x1xf32>
    %cst_399 = arith.constant 9.99999974E-6 : f32
    %880 = vector.broadcast %cst_399 : f32 to vector<16x1xf32>
    %881 = arith.addf %879, %880 : vector<16x1xf32>
    %882 = math.rsqrt %881 : vector<16x1xf32>
    %883 = vector.broadcast %882 : vector<16x1xf32> to vector<16x32xf32>
    %884 = arith.mulf %874, %883 : vector<16x32xf32>
    %885 = vector.broadcast %866 : vector<1x32xf32> to vector<16x32xf32>
    %886 = arith.mulf %884, %885 : vector<16x32xf32>
    %887 = vector.broadcast %868 : vector<1x32xf32> to vector<16x32xf32>
    %888 = arith.addf %886, %887 : vector<16x32xf32>
    %c1_400 = arith.constant 1 : index
    %c0_401 = arith.constant 0 : index
    %c0_402 = arith.constant 0 : index
    %889 = vector.load %arg9[%c1_400, %c0_401, %c0_402] : memref<2x32x64xf32, #tpu.memory_space<vmem>>, vector<1x32x64xf32>
    %890 = vector.shape_cast %889 : vector<1x32x64xf32> to vector<32x64xf32>
    %cst_403 = arith.constant dense<0.000000e+00> : vector<16x64xf32>
    %891 = tpu.matmul %888, %890, %cst_403 {dimension_numbers = #tpu.dot_dimension_numbers<[1], [0], [0], [1], [0, 0, 1, 1], [], []>} : vector<16x32xf32>, vector<32x64xf32>, vector<16x64xf32> -> vector<16x64xf32>
    %c1_404 = arith.constant 1 : index
    %c0_405 = arith.constant 0 : index
    %c0_406 = arith.constant 0 : index
    %892 = vector.load %arg10[%c1_404, %c0_405, %c0_406] : memref<2x1x64xf32, #tpu.memory_space<vmem>>, vector<1x1x64xf32>
    %893 = vector.shape_cast %892 : vector<1x1x64xf32> to vector<1x64xf32>
    %894 = vector.broadcast %893 : vector<1x64xf32> to vector<16x64xf32>
    %895 = arith.addf %891, %894 : vector<16x64xf32>
    %cst_407 = arith.constant 5.000000e-01 : f32
    %896 = vector.broadcast %cst_407 : f32 to vector<16x64xf32>
    %897 = arith.mulf %896, %895 : vector<16x64xf32>
    %898 = arith.mulf %895, %895 : vector<16x64xf32>
    %899 = arith.mulf %898, %895 : vector<16x64xf32>
    %cst_408 = arith.constant 4.471500e-02 : f32
    %900 = vector.broadcast %cst_408 : f32 to vector<16x64xf32>
    %901 = arith.mulf %900, %899 : vector<16x64xf32>
    %902 = arith.addf %895, %901 : vector<16x64xf32>
    %cst_409 = arith.constant 0.797884583 : f32
    %903 = vector.broadcast %cst_409 : f32 to vector<16x64xf32>
    %904 = arith.mulf %903, %902 : vector<16x64xf32>
    %905 = math.tanh %904 : vector<16x64xf32>
    %cst_410 = arith.constant 1.000000e+00 : f32
    %906 = vector.broadcast %cst_410 : f32 to vector<16x64xf32>
    %907 = arith.addf %906, %905 : vector<16x64xf32>
    %908 = arith.mulf %897, %907 : vector<16x64xf32>
    %c1_411 = arith.constant 1 : index
    %c0_412 = arith.constant 0 : index
    %c0_413 = arith.constant 0 : index
    %909 = vector.load %arg11[%c1_411, %c0_412, %c0_413] : memref<2x64x32xf32, #tpu.memory_space<vmem>>, vector<1x64x32xf32>
    %910 = vector.shape_cast %909 : vector<1x64x32xf32> to vector<64x32xf32>
    %cst_414 = arith.constant dense<0.000000e+00> : vector<16x32xf32>
    %911 = tpu.matmul %908, %910, %cst_414 {dimension_numbers = #tpu.dot_dimension_numbers<[1], [0], [0], [1], [0, 0, 1, 1], [], []>} : vector<16x64xf32>, vector<64x32xf32>, vector<16x32xf32> -> vector<16x32xf32>
    %c1_415 = arith.constant 1 : index
    %c0_416 = arith.constant 0 : index
    %c0_417 = arith.constant 0 : index
    %912 = vector.load %arg12[%c1_415, %c0_416, %c0_417] : memref<2x1x32xf32, #tpu.memory_space<vmem>>, vector<1x1x32xf32>
    %913 = vector.shape_cast %912 : vector<1x1x32xf32> to vector<1x32xf32>
    %914 = vector.broadcast %913 : vector<1x32xf32> to vector<16x32xf32>
    %915 = arith.addf %911, %914 : vector<16x32xf32>
    %916 = arith.addf %888, %915 : vector<16x32xf32>
    %c1_418 = arith.constant 1 : index
    %c0_419 = arith.constant 0 : index
    %c0_420 = arith.constant 0 : index
    %917 = vector.load %arg13[%c1_418, %c0_419, %c0_420] : memref<2x1x32xf32, #tpu.memory_space<vmem>>, vector<1x1x32xf32>
    %918 = vector.shape_cast %917 : vector<1x1x32xf32> to vector<1x32xf32>
    %c1_421 = arith.constant 1 : index
    %c0_422 = arith.constant 0 : index
    %c0_423 = arith.constant 0 : index
    %919 = vector.load %arg14[%c1_421, %c0_422, %c0_423] : memref<2x1x32xf32, #tpu.memory_space<vmem>>, vector<1x1x32xf32>
    %920 = vector.shape_cast %919 : vector<1x1x32xf32> to vector<1x32xf32>
    %cst_424 = arith.constant dense<0.000000e+00> : vector<16xf32>
    %921 = vector.multi_reduction <add>, %916, %cst_424 [1] : vector<16x32xf32> to vector<16xf32>
    %922 = vector.shape_cast %921 : vector<16xf32> to vector<16x1xf32>
    %cst_425 = arith.constant 3.200000e+01 : f32
    %923 = vector.broadcast %cst_425 : f32 to vector<16x1xf32>
    %924 = arith.divf %922, %923 : vector<16x1xf32>
    %925 = vector.broadcast %924 : vector<16x1xf32> to vector<16x32xf32>
    %926 = arith.subf %916, %925 : vector<16x32xf32>
    %927 = arith.mulf %926, %926 : vector<16x32xf32>
    %cst_426 = arith.constant dense<0.000000e+00> : vector<16xf32>
    %928 = vector.multi_reduction <add>, %927, %cst_426 [1] : vector<16x32xf32> to vector<16xf32>
    %929 = vector.shape_cast %928 : vector<16xf32> to vector<16x1xf32>
    %cst_427 = arith.constant 3.200000e+01 : f32
    %930 = vector.broadcast %cst_427 : f32 to vector<16x1xf32>
    %931 = arith.divf %929, %930 : vector<16x1xf32>
    %cst_428 = arith.constant 9.99999974E-6 : f32
    %932 = vector.broadcast %cst_428 : f32 to vector<16x1xf32>
    %933 = arith.addf %931, %932 : vector<16x1xf32>
    %934 = math.rsqrt %933 : vector<16x1xf32>
    %935 = vector.broadcast %934 : vector<16x1xf32> to vector<16x32xf32>
    %936 = arith.mulf %926, %935 : vector<16x32xf32>
    %937 = vector.broadcast %918 : vector<1x32xf32> to vector<16x32xf32>
    %938 = arith.mulf %936, %937 : vector<16x32xf32>
    %939 = vector.broadcast %920 : vector<1x32xf32> to vector<16x32xf32>
    %940 = arith.addf %938, %939 : vector<16x32xf32>
    %c0_429 = arith.constant 0 : index
    %c0_430 = arith.constant 0 : index
    %941 = vector.load %arg15[%c0_429, %c0_430] : memref<16x32xf32, #tpu.memory_space<vmem>>, vector<16x32xf32>
    tpu.vector_store %arg15[%c0_429, %c0_430], %940 {strides = array<i32>} : memref<16x32xf32, #tpu.memory_space<vmem>>, vector<16x32xf32>,
    %942 = vector.extract_strided_slice %940 {offsets = [0, 0], sizes = [1, 32], strides = [1, 1]} : vector<16x32xf32> to vector<1x32xf32>
    %c0_431 = arith.constant 0 : index
    %c0_432 = arith.constant 0 : index
    %943 = vector.load %arg16[%c0_431, %c0_432] : memref<2x32xf32, #tpu.memory_space<vmem>>, vector<1x32xf32>
    tpu.vector_store %arg16[%c0_431, %c0_432], %942 {strides = array<i32>} : memref<2x32xf32, #tpu.memory_space<vmem>>, vector<1x32xf32>,
    %944 = vector.extract_strided_slice %940 {offsets = [8, 0], sizes = [1, 32], strides = [1, 1]} : vector<16x32xf32> to vector<1x32xf32>
    %c1_433 = arith.constant 1 : index
    %c0_434 = arith.constant 0 : index
    %945 = vector.load %arg16[%c1_433, %c0_434] : memref<2x32xf32, #tpu.memory_space<vmem>>, vector<1x32xf32>
    tpu.vector_store %arg16[%c1_433, %c0_434], %944 {strides = array<i32>} : memref<2x32xf32, #tpu.memory_space<vmem>>, vector<1x32xf32>,
    return
  }
}

</mosaic_0001>

<bundles_post_ra>
// kernel: tpu_custom_call.1
= control target key start
LH: loop header
LB: loop body
LE: loop exit
PB: predicated region body
PF: predicated region fallthrough
CT: control target
= control target key end

     0   :  { %s9760_s0 = inlined_call_operand.vmem [shape: s32[16,1], index: 0, kind: input, shape index: {}]   ;;  %s9761_s1 = inlined_call_operand.vmem [shape: s32[16,1], index: 1, kind: input, shape index: {}]   ;;  %s9762_s2 = inlined_call_operand.vmem [shape: f32[32,32], index: 2, kind: input, shape index: {}]   ;;  %s9763_s3 = inlined_call_operand.vmem [shape: f32[2,32], index: 3, kind: input, shape index: {}]   ;;  %s9764_s4 = inlined_call_operand.vmem [shape: f32[8,32], index: 4, kind: input, shape index: {}]   ;;  %s9765_s5 = inlined_call_operand.vmem [shape: f32[2,32,96], index: 5, kind: input, shape index: {}]   ;;  %s9766_s6 = inlined_call_operand.vmem [shape: f32[2,1,96], index: 6, kind: input, shape index: {}]   ;;  %s9767_s7 = inlined_call_operand.vmem [shape: f32[2,1,32], index: 7, kind: input, shape index: {}]   ;;  %s9768_s8 = inlined_call_operand.vmem [shape: f32[2,1,32], index: 8, kind: input, shape index: {}]   ;;  %s9769_s9 = inlined_call_operand.vmem [shape: f32[2,32,64], index: 9, kind: input, shape index: {}]   ;;  %s9770_s10 = inlined_call_operand.vmem [shape: f32[2,1,64], index: 10, kind: input, shape index: {}]   ;;  %s9771_s11 = inlined_call_operand.vmem [shape: f32[2,64,32], index: 11, kind: input, shape index: {}]   ;;  %s9772_s12 = inlined_call_operand.vmem [shape: f32[2,1,32], index: 12, kind: input, shape index: {}]   ;;  %s9773_s13 = inlined_call_operand.vmem [shape: f32[2,1,32], index: 13, kind: input, shape index: {}]   ;;  %s9774_s14 = inlined_call_operand.vmem [shape: f32[2,1,32], index: 14, kind: input, shape index: {}]   ;;  %s9775_s15 = inlined_call_operand.hbm [shape: f32[16,32], index: 15, kind: output, shape index: {0}]   ;;  %s9776_s16 = inlined_call_operand.hbm [shape: f32[2,32], index: 16, kind: output, shape index: {1}]  }
   0x1   :  { %9796 = sst [smem:[#allocation9_spill]] %s9760_s0 }
   0x2   :  { %22 = vsyncpa [#allocation4], 0  ;;  %s9797_s23 = sld [smem:[#allocation9_spill]]  ;;  %v70_v1 = vld [vmem:[%s9762_s2] sm:$0xff]  ;;  %v8535_v2 = vmov 0   ;;  %v71_v3 = vld [vmem:[%s9762_s2 + $0x8] sm:$0xff] }
   0x3   :  { %8309 = vset.pattern.permute.xlu0 %v8535_v2  ;;  %v72_v4 = vld [vmem:[%s9762_s2 + $0x10] sm:$0xff]  ;;  %v73_v5 = vld [vmem:[%s9762_s2 + $0x18] sm:$0xff]  ;;  %8310 = vset.pattern.permute.xlu1 %v8535_v2  ;;  %v8153_v6 = vpack.c.bf16 %v71_v3, %v70_v1 }
   0x4   :  { %v8157_v7 = vpack.c.bf16 %v73_v5, %v72_v4 }
   0x8   :  { %v54_v0 = vld [vmem:[%s9797_s23] sm:$0xff] }
   0x9   :  { %59 = vperm.xlu0 %8309, %v54_v0  }
   0xa   :  { %23 = vsyncpa [#allocation6], 0  ;;  %v55_v8 = vld [vmem:[%s9797_s23 + $0x8] sm:$0xff]  ;;  %8154 = vmatprep.subr.bf16.mxu0 %v8153_v6  ;;  %v74_v9 = vld [vmem:[%s9761_s1] sm:$0xff]  ;;  %v8536_v12 = vmov 0.0   ;;  %v56_v17 = vlaneseq  ;;  %vm101_vm2 = vcmask 261120  }
   0xb   :  { %8156 = vmatpush3.bf16.msra.mxu0 %v8153_v6  ;;  %v75_v10 = vld [vmem:[%s9761_s1 + $0x8] sm:$0xff]  ;;  %vm76_vm0 = vcmp.eq.s32.totalorder %v74_v9, 0  ;;  %v185_v14 = vld [vmem:[%s9765_s5] sm:$0xff]  ;;  %v187_v23 = vld [vmem:[%s9765_s5 + $0x10] sm:$0xff]  ;;  %vm8537_vm7 = vmmov 0   ;;  %s8538_s20 = smov 96  }
   0xc   :  { %8158 = vmatprep.subr.bf16.mxu0 %v8157_v7  ;;  %vm77_vm1 = vcmp.eq.s32.totalorder %v75_v10, 0  ;;  %v80_v11 = vsel %vm76_vm0, 1, %v8535_v2  ;;  %v186_v15 = vld [vmem:[%s9765_s5 + $0x8] sm:$0xff]  ;;  %v57_v18 = vand.u32 127, %v56_v17  ;;  %v188_v24 = vld [vmem:[%s9765_s5 + $0x18] sm:$0xff]  ;;  %v100_v32 = vld [vmem:[%s9764_s4] sm:$0xff] }
   0xd   :  { %62 = vperm.xlu0 %8309, %v55_v8   ;;  %83 = vperm.xlu1 %8310, %v80_v11   ;;  %v81_v13 = vsel %vm77_vm1, 1, %v8535_v2  ;;  %v8161_v16 = vpack.c.bf16 %v186_v15, %v185_v14  ;;  %v8165_v25 = vpack.c.bf16 %v188_v24, %v187_v23  ;;  %v7238_v28 = vld [vmem:[%s9763_s3] ss:$0 sm:$0xff]  ;;  %v7239_v29 = vld [vmem:[%s9763_s3 + $0x1] ss:$0 sm:$0xff]  ;;  %vm280_vm8 = vcmask 64512  }
   0xe   :  { %v7242_v39 = vld [vmem:[%s9766_s6] ss:$0 sm:$0xff]  ;;  %s8539_s21 = smov 88   ;;  %s8540_s22 = smov 120   ;;  %vm614_vm9 = vcmask 130112   ;;  %vm786_vm10 = vcmask 195712  }
   0xf   :  { %8160 = vmatpush3.bf16.msra.mxu0 %v8157_v7  ;;  %8162 = vmatprep.subr.bf16.mxu1 %v8161_v16  ;;  %s8541_s2 = smov 112   ;;  %s8542_s23 = smov 104   ;;  %vm958_vm11 = vcmask 261312   ;;  %vm1813_vm12 = vcmask 523264   ;;  %vm7203_vm13 = vcmask 253952  }
  0x10   :  { %7680 = vmatprep.subr.mxu0 %v8536_v12  ;;  %8164 = vmatpush3.bf16.msra.mxu1 %v8161_v16  ;;  %s9794_s24 = smov 80   ;;  %s9792_s25 = smov 72  }
  0x11   :  { %86 = vperm.xlu1 %8310, %v81_v13   ;;  %8166 = vmatprep.subr.bf16.mxu1 %v8165_v25  ;;  %s9790_s1 = smov 64   ;;  %s9784_s26 = smov 48  }
  0x12   :  { %s9786_s27 = smov 40   ;;  %s9788_s28 = smov 56  }
  0x13   :  { %s9782_s29 = smov 8   ;;  %s9780_s30 = smov 16  }
  0x14   :  { %8168 = vmatpush3.bf16.msra.mxu1 %v8165_v25  ;;  %s9778_s0 = smov 24   ;;  %s9798_s3 = smov 8  }
  0x15   :  { %7695 = vmatprep.subr.mxu1 %v8536_v12  ;;  %s9799_s4 = smov 16   ;;  %s9800_s17 = smov 24  }
  0x16   :  { %s9803_s18 = smov 48  }
  0x88   :  { %v60_v19 = vpop.permute.xlu0 %59 }
  0x89   :  { %vm64_vm3 = vcmp.eq.s32.totalorder %v60_v19, %v57_v18 }
  0x8a   :  { %v7236_v20 = vsel %vm64_vm3, 1.0, %v8536_v12 }
  0x8b   :  { %7666 = vmatprep.mubr.msk.f32.mxu0 %vm101_vm2, %v7236_v20 }
  0x8c   :  { %v63_v21 = vpop.permute.xlu0 %62  ;;  %v84_v26 = vpop.permute.xlu1 %83 }
  0x8d   :  { %vm65_vm4 = vcmp.eq.s32.totalorder %v63_v21, %v57_v18  ;;  %vm88_vm6 = vcmp.eq.s32.totalorder %v84_v26, 1 }
  0x8e   :  { %v7237_v22 = vsel %vm65_vm4, 1.0, %v8536_v12  ;;  %v98_v34 = vsel %vm88_vm6, %v7238_v28, %v7239_v29 }
  0x8f   :  { %7667 = vmatmul.mubr.msk.f32.vlgmr.msra.gmra.mrb[0].mxu0 %vm101_vm2, %v7237_v22 }
  0x90   :  { %v87_v27 = vpop.permute.xlu1 %86  ;;  %7682 = vmatprep.mubr.msk.f32.mxu0 %vm8537_vm7, %v8536_v12 }
  0x91   :  { %vm89_vm5 = vcmp.eq.s32.totalorder %v87_v27, 1 }
  0x92   :  { %v99_v30 = vsel %vm89_vm5, %v7238_v28, %v7239_v29 }
 0x162   :  { %v7668_v31 = vpop.f32.mrb[0].mxu0 }
 0x163   :  { %v180_v33 = vadd.f32 %v7668_v31, %v99_v30  ;;  %v174_v35 = vpop.f32.mrb[1].mxu0 }
 0x164   :  { %v175_v36 = vadd.f32 %v174_v35, %v98_v34 }
 0x165   :  { %v8693_v38 = vadd.f32 %v180_v33, %v100_v32 }
 0x166   :  { %v8691_v37 = vadd.f32 %v175_v36, %v100_v32 }
 0x168   :  { %7677 = vmatprep.mubr.msk.f32.mxu1 %vm101_vm2, %v8691_v37 }
 0x169   :  { %7678 = vmatmul.mubr.msk.f32.vlgmr.msra.gmra.mrb[0].mxu1 %vm101_vm2, %v8693_v38 }
 0x16a   :  { %7697 = vmatprep.mubr.msk.f32.mxu1 %vm8537_vm7, %v8536_v12 }
 0x23c   :  { %v7679_v40 = vpop.f32.mrb[0].mxu1 }
 0x23d   :  { %v8706_v41 = vadd.f32 %v7679_v40, %v7242_v39  ;;  %v268_v42 = vpop.f32.mrb[1].mxu1 }
 0x23e   :  { %v8708_v43 = vadd.f32 %v7242_v39, %v268_v42 }
 0x240   :  { %278 = vrot.lane.b32.xlu0 %v8708_v43, %s8538_s20 }
 0x2b2   :  { %v279_v44 = vpop.permute.xlu0 %278 }
 0x2b3   :  { %7681 = vmatpush3.xpose.msk.msra.mxu0 %vm280_vm8, %v279_v44 }
 0x2b4   :  { %7685 = vmatprep.subr.mxu0 %v8536_v12 }
 0x2b6   :  { %7683 = vmatmul.mubr.msk.f32.vlgmr.msra.gmra.mrb[2].mxu0 %vm280_vm8, %v8708_v43 }
 0x2b7   :  { %7687 = vmatprep.mubr.msk.f32.mxu0 %vm8537_vm7, %v8536_v12 }
 0x389   :  { %v351_v45 = vpop.f32.mrb[2].mxu0 }
 0x38a   :  { %v355_v46 = vmul.f32 0.35355338, %v351_v45  ;;  %v7684_v47 = vpop.f32.mrb[3].mxu0 }
 0x38c   :  { %v356_v48 = vsel %vm280_vm8, %v355_v46, -inf }
 0x38d   :  { %357 = vmax.xlane.f32.xlu1 %v356_v48 }
 0x39e   :  { %446 = vrot.lane.b32.xlu1 %v8708_v43, %s8539_s21 }
 0x3a2   :  { %444 = vrot.lane.b32.xlu1 %v8708_v43, %s8540_s22 }
 0x3a6   :  { %616 = vrot.lane.b32.xlu1 %v8708_v43, %s8541_s2 }
 0x3aa   :  { %788 = vrot.lane.b32.xlu1 %v8708_v43, %s8542_s23 }
 0x3ae   :  { %1128 = vrot.lane.b32.xlu1 %v8706_v41, %s8539_s21 }
 0x3b2   :  { %1299 = vrot.lane.b32.xlu1 %v8706_v41, %s9794_s24 }
 0x3b6   :  { %1470 = vrot.lane.b32.xlu1 %v8706_v41, %s9792_s25 }
 0x41a   :  { %v358_v49 = vpop.xlane.xlu1 %357 }
 0x41b   :  { %v359_v50 = vsub.f32 %v355_v46, %v358_v49 }
 0x41d   :  { %v360_v51 = vmul.f32 1.442695, %v359_v50 }
 0x41e   :  { %v447_v55 = vpop.permute.xlu1 %446 }
 0x41f   :  { %8311 = vpow2.f32 %v360_v51 }
 0x422   :  { %v445_v57 = vpop.permute.xlu1 %444 }
 0x426   :  { %v617_v61 = vpop.permute.xlu1 %616 }
 0x429   :  { %v8312_v52 = vpop.eup %8311 }
 0x42a   :  { %v362_v53 = vsel %vm280_vm8, %v8312_v52, 0.0  ;;  %v789_v63 = vpop.permute.xlu1 %788 }
 0x42b   :  { %363 = vadd.xlane.f32.xlu0 %v362_v53 }
 0x42e   :  { %v1129_v1 = vpop.permute.xlu1 %1128 }
 0x432   :  { %v1300_v3 = vpop.permute.xlu1 %1299 }
 0x436   :  { %v1471_v5 = vpop.permute.xlu1 %1470 }
 0x441   :  { %367 = vrot.lane.b32.xlu0 %v8708_v43, %s9790_s1 }
 0x445   :  { %618 = vrot.lane.b32.xlu0 %v8708_v43, %s9794_s24 }
 0x449   :  { %790 = vrot.lane.b32.xlu0 %v8708_v43, %s9792_s25 }
 0x44d   :  { %961 = vrot.lane.b32.xlu0 %v8706_v41, %s8538_s20 }
 0x451   :  { %1126 = vrot.lane.b32.xlu0 %v8706_v41, %s8540_s22 }
 0x455   :  { %1297 = vrot.lane.b32.xlu0 %v8706_v41, %s8541_s2 }
 0x459   :  { %1468 = vrot.lane.b32.xlu0 %v8706_v41, %s8542_s23 }
 0x4b8   :  { %v364_v54 = vpop.xlane.xlu0 %363 }
 0x4b9   :  { %8313 = vrcp.f32 %v364_v54 }
 0x4bc   :  { %v368_v56 = vpop.permute.xlu0 %367 }
 0x4bd   :  { %7686 = vmatpush3.msra.mxu0 %v368_v56 }
 0x4be   :  { %7690 = vmatprep.subr.mxu0 %v8536_v12 }
 0x4c0   :  { %v619_v59 = vpop.permute.xlu0 %618 }
 0x4c3   :  { %v8314_v58 = vpop.eup %8313 }
 0x4c4   :  { %v366_v60 = vmul.f32 %v8314_v58, %v8312_v52  ;;  %v791_v62 = vpop.permute.xlu0 %790 }
 0x4c6   :  { %7688 = vmatmul.mubr.msk.f32.vlgmr.msra.gmra.mrb[4].mxu0 %vm280_vm8, %v366_v60 }
 0x4c7   :  { %7691 = vmatpush3.xpose.msk.msra.mxu0 %vm280_vm8, %v447_v55  ;;  %7692 = vmatprep.mubr.msk.f32.mxu0 %vm8537_vm7, %v8536_v12 }
 0x4c8   :  { %7700 = vmatprep.subr.mxu0 %v8536_v12  ;;  %v962_v0 = vpop.permute.xlu0 %961 }
 0x4ca   :  { %7693 = vmatmul.mubr.msk.f32.vlgmr.msra.gmra.mrb[6].mxu0 %vm280_vm8, %v445_v57 }
 0x4cb   :  { %7701 = vmatpush3.xpose.msk.msra.mxu0 %vm280_vm8, %v619_v59  ;;  %7702 = vmatprep.mubr.msk.f32.mxu0 %vm8537_vm7, %v8536_v12 }
 0x4cc   :  { %7710 = vmatprep.subr.mxu0 %v8536_v12  ;;  %v1127_v2 = vpop.permute.xlu0 %1126 }
 0x4ce   :  { %7703 = vmatmul.mubr.msk.f32.vlgmr.msra.gmra.mrb[8].mxu0 %vm280_vm8, %v617_v61 }
 0x4cf   :  { %7711 = vmatpush3.xpose.msk.msra.mxu0 %vm280_vm8, %v791_v62  ;;  %7712 = vmatprep.mubr.msk.f32.mxu0 %vm8537_vm7, %v8536_v12 }
 0x4d0   :  { %7720 = vmatprep.subr.mxu0 %v8536_v12  ;;  %v1298_v4 = vpop.permute.xlu0 %1297 }
 0x4d2   :  { %7713 = vmatmul.mubr.msk.f32.vlgmr.msra.gmra.mrb[10].mxu0 %vm280_vm8, %v789_v63 }
 0x4d3   :  { %7721 = vmatpush3.xpose.msk.msra.mxu0 %vm280_vm8, %v962_v0  ;;  %7722 = vmatprep.mubr.msk.f32.mxu0 %vm8537_vm7, %v8536_v12 }
 0x4d4   :  { %7730 = vmatprep.subr.mxu0 %v8536_v12  ;;  %v1469_v6 = vpop.permute.xlu0 %1468 }
 0x4d6   :  { %7723 = vmatmul.mubr.msk.f32.vlgmr.msra.gmra.mrb[12].mxu0 %vm280_vm8, %v8706_v41 }
 0x4d7   :  { %7731 = vmatpush3.xpose.msk.msra.mxu0 %vm280_vm8, %v1129_v1  ;;  %7732 = vmatprep.mubr.msk.f32.mxu0 %vm8537_vm7, %v8536_v12 }
 0x4d8   :  { %7740 = vmatprep.subr.mxu0 %v8536_v12 }
 0x4da   :  { %7733 = vmatmul.mubr.msk.f32.vlgmr.msra.gmra.mrb[14].mxu0 %vm280_vm8, %v1127_v2 }
 0x4db   :  { %7741 = vmatpush3.xpose.msk.msra.mxu0 %vm280_vm8, %v1300_v3  ;;  %7742 = vmatprep.mubr.msk.f32.mxu0 %vm8537_vm7, %v8536_v12 }
 0x4dc   :  { %7750 = vmatprep.subr.mxu0 %v8536_v12 }
 0x4de   :  { %7743 = vmatmul.mubr.msk.f32.vlgmr.msra.gmra.mrb[16].mxu0 %vm280_vm8, %v1298_v4 }
 0x4df   :  { %7751 = vmatpush3.xpose.msk.msra.mxu0 %vm280_vm8, %v1471_v5  ;;  %7752 = vmatprep.mubr.msk.f32.mxu0 %vm8537_vm7, %v8536_v12 }
 0x4e2   :  { %7753 = vmatmul.mubr.msk.f32.vlgmr.msra.gmra.mrb[18].mxu0 %vm280_vm8, %v1469_v6 }
 0x599   :  { %v439_v7 = vpop.f32.mrb[4].mxu0 }
 0x59a   :  { %443 = vst.msk [vmem:[#allocation2] sm:$0xff] %vm280_vm8, %v439_v7  ;;  %v7689_v8 = vpop.f32.mrb[5].mxu0 }
 0x59d   :  { %v518_v9 = vpop.f32.mrb[6].mxu0 }
 0x59e   :  { %v522_v10 = vmul.f32 0.35355338, %v518_v9  ;;  %v7694_v11 = vpop.f32.mrb[7].mxu0 }
 0x5a0   :  { %v523_v13 = vsel %vm280_vm8, %v522_v10, -inf }
 0x5a1   :  { %524 = vmax.xlane.f32.xlu1 %v523_v13  ;;  %v690_v14 = vpop.f32.mrb[8].mxu0 }
 0x5a2   :  { %v694_v15 = vmul.f32 0.35355338, %v690_v14  ;;  %v7704_v16 = vpop.f32.mrb[9].mxu0 }
 0x5a4   :  { %v695_v17 = vsel %vm280_vm8, %v694_v15, -inf }
 0x5a5   :  { %696 = vmax.xlane.f32.xlu0 %v695_v17  ;;  %v862_v18 = vpop.f32.mrb[10].mxu0 }
 0x5a6   :  { %v866_v19 = vmul.f32 0.35355338, %v862_v18  ;;  %v7714_v20 = vpop.f32.mrb[11].mxu0 }
 0x5a8   :  { %v867_v21 = vsel %vm280_vm8, %v866_v19, -inf }
 0x5a9   :  { %868 = vmax.xlane.f32.xlu0 %v867_v21  ;;  %v1033_v22 = vpop.f32.mrb[12].mxu0 }
 0x5aa   :  { %v1037_v23 = vmul.f32 0.35355338, %v1033_v22  ;;  %v7724_v24 = vpop.f32.mrb[13].mxu0 }
 0x5ac   :  { %v1038_v25 = vsel %vm280_vm8, %v1037_v23, -inf }
 0x5ad   :  { %1039 = vmax.xlane.f32.xlu1 %v1038_v25  ;;  %v1200_v26 = vpop.f32.mrb[14].mxu0 }
 0x5ae   :  { %v1204_v27 = vmul.f32 0.35355338, %v1200_v26  ;;  %v7734_v28 = vpop.f32.mrb[15].mxu0 }
 0x5b0   :  { %v1205_v29 = vsel %vm280_vm8, %v1204_v27, -inf }
 0x5b1   :  { %1206 = vmax.xlane.f32.xlu0 %v1205_v29  ;;  %v1371_v30 = vpop.f32.mrb[16].mxu0 }
 0x5b2   :  { %v1375_v31 = vmul.f32 0.35355338, %v1371_v30  ;;  %v7744_v32 = vpop.f32.mrb[17].mxu0 }
 0x5b4   :  { %v1376_v33 = vsel %vm280_vm8, %v1375_v31, -inf }
 0x5b5   :  { %1377 = vmax.xlane.f32.xlu1 %v1376_v33  ;;  %v1542_v34 = vpop.f32.mrb[18].mxu0 }
 0x5b6   :  { %v1546_v35 = vmul.f32 0.35355338, %v1542_v34  ;;  %v7754_v36 = vpop.f32.mrb[19].mxu0 }
 0x5b8   :  { %v1547_v39 = vsel %vm280_vm8, %v1546_v35, -inf }
 0x5b9   :  { %1548 = vmax.xlane.f32.xlu0 %v1547_v39 }
 0x5c6   :  { %706 = vrot.lane.b32.xlu1 %v8708_v43, %s9784_s26 }
 0x5ca   :  { %878 = vrot.lane.b32.xlu1 %v8708_v43, %s9786_s27 }
 0x5cf   :  { %534 = vrot.lane.b32.xlu0 %v8708_v43, %s9788_s28 }
 0x62e   :  { %v525_v40 = vpop.xlane.xlu1 %524 }
 0x62f   :  { %v526_v42 = vsub.f32 %v522_v10, %v525_v40 }
 0x631   :  { %v527_v44 = vmul.f32 1.442695, %v526_v42 }
 0x632   :  { %v697_v45 = vpop.xlane.xlu0 %696 }
 0x633   :  { %8315 = vpow2.f32 %v527_v44  ;;  %v698_v46 = vsub.f32 %v694_v15, %v697_v45 }
 0x635   :  { %v699_v47 = vmul.f32 1.442695, %v698_v46 }
 0x636   :  { %v869_v49 = vpop.xlane.xlu0 %868 }
 0x637   :  { %8317 = vpow2.f32 %v699_v47  ;;  %v870_v55 = vsub.f32 %v866_v19, %v869_v49 }
 0x639   :  { %v871_v58 = vmul.f32 1.442695, %v870_v55 }
 0x63a   :  { %v1040_v56 = vpop.xlane.xlu1 %1039 }
 0x63b   :  { %v1041_v57 = vsub.f32 %v1037_v23, %v1040_v56  ;;  %8319 = vpow2.f32 %v871_v58 }
 0x63d   :  { %v8316_v48 = vpop.eup %8315  ;;  %v1042_v61 = vmul.f32 1.442695, %v1041_v57 }
 0x63e   :  { %v529_v50 = vsel %vm280_vm8, %v8316_v48, 0.0  ;;  %v1207_v52 = vpop.xlane.xlu0 %1206 }
 0x63f   :  { %530 = vadd.xlane.f32.xlu1 %v529_v50  ;;  %v1208_v59 = vsub.f32 %v1204_v27, %v1207_v52  ;;  %8321 = vpow2.f32 %v1042_v61 }
 0x641   :  { %v8318_v51 = vpop.eup %8317  ;;  %v1209_v63 = vmul.f32 1.442695, %v1208_v59 }
 0x642   :  { %v701_v53 = vsel %vm280_vm8, %v8318_v51, 0.0  ;;  %v1378_v60 = vpop.xlane.xlu1 %1377 }
 0x643   :  { %702 = vadd.xlane.f32.xlu0 %v701_v53  ;;  %v1379_v62 = vsub.f32 %v1375_v31, %v1378_v60  ;;  %8323 = vpow2.f32 %v1209_v63 }
 0x645   :  { %v1380_v1 = vmul.f32 1.442695, %v1379_v62  ;;  %v8320_v3 = vpop.eup %8319 }
 0x646   :  { %v1549_v54 = vpop.xlane.xlu0 %1548  ;;  %v873_v5 = vsel %vm280_vm8, %v8320_v3, 0.0  ;;  %v707_v14 = vpop.permute.xlu1 %706 }
 0x647   :  { %v1550_v0 = vsub.f32 %v1546_v35, %v1549_v54  ;;  %8325 = vpow2.f32 %v1380_v1 }
 0x649   :  { %v1551_v2 = vmul.f32 1.442695, %v1550_v0  ;;  %v8322_v4 = vpop.eup %8321 }
 0x64a   :  { %v535_v43 = vpop.permute.xlu0 %534  ;;  %v1044_v9 = vsel %vm280_vm8, %v8322_v4, 0.0  ;;  %v879_v15 = vpop.permute.xlu1 %878 }
 0x64b   :  { %7696 = vmatpush3.msra.mxu1 %v535_v43  ;;  %8327 = vpow2.f32 %v1551_v2 }
 0x64c   :  { %7705 = vmatprep.subr.mxu1 %v8536_v12 }
 0x64d   :  { %v8324_v6 = vpop.eup %8323 }
 0x64e   :  { %v1211_v8 = vsel %vm280_vm8, %v8324_v6, 0.0 }
 0x650   :  { %1216 = vrot.lane.b32.xlu1 %v8706_v41, %s9788_s28 }
 0x651   :  { %v8326_v7 = vpop.eup %8325 }
 0x652   :  { %v1382_v11 = vsel %vm280_vm8, %v8326_v7, 0.0 }
 0x655   :  { %v8809_v10 = vpop.eup %8327 }
 0x656   :  { %v1553_v13 = vsel %vm280_vm8, %v8809_v10, 0.0 }
 0x659   :  { %1049 = vrot.lane.b32.xlu0 %v8706_v41, %s9790_s1 }
 0x674   :  { %874 = vadd.xlane.f32.xlu1 %v873_v5 }
 0x678   :  { %1212 = vadd.xlane.f32.xlu1 %v1211_v8  ;;  %1045 = vadd.xlane.f32.xlu0 %v1044_v9 }
 0x67c   :  { %1383 = vadd.xlane.f32.xlu0 %v1382_v11  ;;  %1554 = vadd.xlane.f32.xlu1 %v1553_v13 }
 0x68d   :  { %1558 = vrot.lane.b32.xlu1 %v8706_v41, %s9786_s27 }
 0x692   :  { %1387 = vrot.lane.b32.xlu0 %v8706_v41, %s9784_s26 }
 0x6cc   :  { %v531_v16 = vpop.xlane.xlu1 %530 }
 0x6cd   :  { %8329 = vrcp.f32 %v531_v16 }
 0x6d0   :  { %v703_v17 = vpop.xlane.xlu0 %702  ;;  %v1217_v41 = vpop.permute.xlu1 %1216 }
 0x6d1   :  { %8331 = vrcp.f32 %v703_v17  ;;  %v1690_v17 = vld [vmem:[%s9769_s9 + $0x10] sm:$0xff] }
 0x6d4   :  { %v1050_v22 = vpop.permute.xlu0 %1049 }
 0x6d7   :  { %v8330_v18 = vpop.eup %8329 }
 0x6d8   :  { %v533_v19 = vmul.f32 %v8330_v18, %v8316_v48  ;;  %v1691_v18 = vld [vmem:[%s9769_s9 + $0x18] sm:$0xff] }
 0x6da   :  { %7698 = vmatmul.mubr.msk.f32.vlgmr.msra.gmra.mrb[2].mxu1 %vm280_vm8, %v533_v19  ;;  %v8173_v19 = vpack.c.bf16 %v1691_v18, %v1690_v17 }
 0x6db   :  { %v8332_v20 = vpop.eup %8331  ;;  %7706 = vmatpush3.msra.mxu1 %v707_v14  ;;  %7707 = vmatprep.mubr.msk.f32.mxu1 %vm8537_vm7, %v8536_v12 }
 0x6dc   :  { %7715 = vmatprep.subr.mxu1 %v8536_v12  ;;  %v705_v21 = vmul.f32 %v8332_v20, %v8318_v51 }
 0x6de   :  { %7708 = vmatmul.mubr.msk.f32.vlgmr.msra.gmra.mrb[4].mxu1 %vm280_vm8, %v705_v21 }
 0x6df   :  { %7716 = vmatpush3.msra.mxu1 %v879_v15  ;;  %7717 = vmatprep.mubr.msk.f32.mxu1 %vm8537_vm7, %v8536_v12  ;;  %v1689_v15 = vld [vmem:[%s9769_s9 + $0x8] sm:$0xff] }
 0x6e0   :  { %7725 = vmatprep.subr.mxu1 %v8536_v12 }
 0x701   :  { %v875_v23 = vpop.xlane.xlu1 %874 }
 0x702   :  { %8333 = vrcp.f32 %v875_v23  ;;  %v7269_v23 = vld [vmem:[%s9767_s7] ss:$0 sm:$0xff] }
 0x705   :  { %v1046_v24 = vpop.xlane.xlu0 %1045  ;;  %v1213_v25 = vpop.xlane.xlu1 %1212 }
 0x706   :  { %8335 = vrcp.f32 %v1046_v24 }
 0x707   :  { %8337 = vrcp.f32 %v1213_v25 }
 0x709   :  { %v1384_v26 = vpop.xlane.xlu0 %1383  ;;  %v1555_v29 = vpop.xlane.xlu1 %1554 }
 0x70a   :  { %8339 = vrcp.f32 %v1384_v26  ;;  %v7270_v26 = vld [vmem:[%s9768_s8] ss:$0 sm:$0xff] }
 0x70b   :  { %8341 = vrcp.f32 %v1555_v29 }
 0x70c   :  { %v8334_v27 = vpop.eup %8333 }
 0x70d   :  { %v877_v28 = vmul.f32 %v8334_v27, %v8320_v3  ;;  %v1388_v35 = vpop.permute.xlu0 %1387  ;;  %v1559_v40 = vpop.permute.xlu1 %1558 }
 0x70f   :  { %7718 = vmatmul.mubr.msk.f32.vlgmr.msra.gmra.mrb[6].mxu1 %vm280_vm8, %v877_v28 }
 0x710   :  { %7726 = vmatpush3.msra.mxu1 %v1050_v22  ;;  %7727 = vmatprep.mubr.msk.f32.mxu1 %vm8537_vm7, %v8536_v12  ;;  %v8336_v30 = vpop.eup %8335 }
 0x711   :  { %7735 = vmatprep.subr.mxu1 %v8536_v12  ;;  %v1048_v31 = vmul.f32 %v8336_v30, %v8322_v4  ;;  %v8338_v32 = vpop.eup %8337 }
 0x712   :  { %v1215_v33 = vmul.f32 %v8338_v32, %v8324_v6 }
 0x713   :  { %7728 = vmatmul.mubr.msk.f32.vlgmr.msra.gmra.mrb[8].mxu1 %vm280_vm8, %v1048_v31 }
 0x714   :  { %7736 = vmatpush3.msra.mxu1 %v1217_v41  ;;  %7737 = vmatprep.mubr.msk.f32.mxu1 %vm8537_vm7, %v8536_v12  ;;  %v8340_v34 = vpop.eup %8339 }
 0x715   :  { %7745 = vmatprep.subr.mxu1 %v8536_v12  ;;  %v1386_v36 = vmul.f32 %v8340_v34, %v8326_v7  ;;  %v8342_v39 = vpop.eup %8341 }
 0x716   :  { %v1557_v42 = vmul.f32 %v8342_v39, %v8809_v10 }
 0x717   :  { %7738 = vmatmul.mubr.msk.f32.vlgmr.msra.gmra.mrb[10].mxu1 %vm280_vm8, %v1215_v33 }
 0x718   :  { %7746 = vmatpush3.msra.mxu1 %v1388_v35  ;;  %7747 = vmatprep.mubr.msk.f32.mxu1 %vm8537_vm7, %v8536_v12  ;;  %v1798_v35 = vld [vmem:[%s9771_s11] sm:$0xff] }
 0x719   :  { %7755 = vmatprep.subr.mxu1 %v8536_v12 }
 0x71b   :  { %7748 = vmatmul.mubr.msk.f32.vlgmr.msra.gmra.mrb[12].mxu1 %vm280_vm8, %v1386_v36  ;;  %v1799_v36 = vld [vmem:[%s9771_s11 + $0x8] sm:$0xff] }
 0x71c   :  { %7756 = vmatpush3.msra.mxu1 %v1559_v40  ;;  %7757 = vmatprep.mubr.msk.f32.mxu1 %vm8537_vm7, %v8536_v12  ;;  %v8177_v39 = vpack.c.bf16 %v1799_v36, %v1798_v35  ;;  %v1800_v40 = vld [vmem:[%s9771_s11 + $0x10] sm:$0xff] }
 0x71e   :  { %8178 = vmatprep.subr.bf16.mxu1 %v8177_v39 }
 0x71f   :  { %7758 = vmatmul.mubr.msk.f32.vlgmr.msra.gmra.mrb[14].mxu1 %vm280_vm8, %v1557_v42  ;;  %v1801_v42 = vld [vmem:[%s9771_s11 + $0x18] sm:$0xff] }
 0x720   :  { %8180 = vmatpush3.bf16.msra.mxu1 %v8177_v39 }
 0x7ad   :  { %v606_v44 = vpop.f32.mrb[2].mxu1 }
 0x7ae   :  { %611 = vrot.lane.b32.xlu0 %v606_v44, %s9782_s29  ;;  %v7699_v45 = vpop.f32.mrb[3].mxu1  ;;  %v8181_v44 = vpack.c.bf16 %v1801_v42, %v1800_v40  ;;  %v7277_v42 = vld [vmem:[%s9773_s13] ss:$0 sm:$0xff] }
 0x7af   :  { %v1802_v45 = vld [vmem:[%s9771_s11 + $0x20] sm:$0xff] }
 0x7b0   :  { %8182 = vmatprep.subr.bf16.mxu1 %v8181_v44 }
 0x7b1   :  { %v778_v46 = vpop.f32.mrb[4].mxu1  ;;  %8184 = vmatpush3.bf16.msra.mxu1 %v8181_v44 }
 0x7b2   :  { %783 = vrot.lane.b32.xlu1 %v778_v46, %s9780_s30  ;;  %v7709_v47 = vpop.f32.mrb[5].mxu1  ;;  %v1803_v46 = vld [vmem:[%s9771_s11 + $0x28] sm:$0xff] }
 0x7b3   :  { %v8185_v47 = vpack.c.bf16 %v1803_v46, %v1802_v45 }
 0x7b5   :  { %8186 = vmatprep.subr.bf16.mxu1 %v8185_v47 }
 0x7b6   :  { %8188 = vmatpush3.bf16.msra.mxu1 %v8185_v47  ;;  %v7278_v47 = vld [vmem:[%s9774_s14] ss:$0 sm:$0xff] }
 0x7e2   :  { %v950_v48 = vpop.f32.mrb[6].mxu1 }
 0x7e3   :  { %955 = vrot.lane.b32.xlu1 %v950_v48, %s9778_s0  ;;  %v7719_v49 = vpop.f32.mrb[7].mxu1  ;;  %v1804_v48 = vld [vmem:[%s9771_s11 + $0x30] sm:$0xff] }
 0x7e4   :  { %v1805_v49 = vld [vmem:[%s9771_s11 + $0x38] sm:$0xff] }
 0x7e6   :  { %v1121_v50 = vpop.f32.mrb[8].mxu1 }
 0x7e7   :  { %1125 = vst.msk [vmem:[#allocation2 + $0x8] sm:$0xff] %vm280_vm8, %v1121_v50  ;;  %v7729_v51 = vpop.f32.mrb[9].mxu1  ;;  %v8189_v50 = vpack.c.bf16 %v1805_v49, %v1804_v48 }
 0x7e8   :  { %v7271_v51 = vld [vmem:[%s9770_s10] ss:$0 sm:$0xff] }
 0x7e9   :  { %8190 = vmatprep.subr.bf16.mxu1 %v8189_v50 }
 0x7ea   :  { %v1288_v52 = vpop.f32.mrb[10].mxu1  ;;  %8192 = vmatpush3.bf16.msra.mxu1 %v8189_v50 }
 0x7eb   :  { %1293 = vrot.lane.b32.xlu0 %v1288_v52, %s9782_s29  ;;  %v7739_v53 = vpop.f32.mrb[11].mxu1  ;;  %7806 = vmatprep.subr.mxu1 %v8536_v12  ;;  %s9801_s29 = smov 56  }
 0x7ee   :  { %v1459_v54 = vpop.f32.mrb[12].mxu1 }
 0x7ef   :  { %1464 = vrot.lane.b32.xlu0 %v1459_v54, %s9780_s30  ;;  %v7749_v43 = vpop.f32.mrb[13].mxu1  ;;  %s9802_s30 = smov 40  }
 0x7f2   :  { %v1630_v55 = vpop.f32.mrb[14].mxu1 }
 0x7f3   :  { %1635 = vrot.lane.b32.xlu1 %v1630_v55, %s9778_s0  ;;  %v7759_v56 = vpop.f32.mrb[15].mxu1 }
 0x820   :  { %v612_v57 = vpop.permute.xlu0 %611 }
 0x821   :  { %615 = vst.msk [vmem:[#allocation2] sm:$0xff] %vm614_vm9, %v612_v57 }
 0x824   :  { %v784_v58 = vpop.permute.xlu1 %783 }
 0x825   :  { %787 = vst.msk [vmem:[#allocation2] sm:$0xff] %vm786_vm10, %v784_v58 }
 0x855   :  { %v956_v59 = vpop.permute.xlu1 %955 }
 0x856   :  { %959 = vst.msk [vmem:[#allocation2] sm:$0xff] %vm958_vm11, %v956_v59 }
 0x85d   :  { %v1639_v60 = vld [vmem:[#allocation2] sm:$0xff]  ;;  %v1294_v61 = vpop.permute.xlu0 %1293 }
 0x85e   :  { %v1641_v62 = vadd.f32 %v1639_v60, %v8691_v37  ;;  %1296 = vst.msk [vmem:[#allocation2 + $0x8] sm:$0xff] %vm614_vm9, %v1294_v61 }
 0x860   :  { %v1645_v63 = vsel %vm101_vm2, %v1641_v62, 0.0 }
 0x861   :  { %1646 = vadd.xlane.f32.xlu0 %v1645_v63  ;;  %v1465_v0 = vpop.permute.xlu0 %1464 }
 0x862   :  { %1467 = vst.msk [vmem:[#allocation2 + $0x8] sm:$0xff] %vm786_vm10, %v1465_v0 }
 0x865   :  { %v1636_v1 = vpop.permute.xlu1 %1635 }
 0x866   :  { %1638 = vst.msk [vmem:[#allocation2 + $0x8] sm:$0xff] %vm958_vm11, %v1636_v1 }
 0x86d   :  { %v1640_v2 = vld [vmem:[#allocation2 + $0x8] sm:$0xff] }
 0x86e   :  { %v1642_v3 = vadd.f32 %v1640_v2, %v8693_v38  ;;  %v1688_v38 = vld [vmem:[%s9769_s9] sm:$0xff] }
 0x86f   :  { %v8169_v16 = vpack.c.bf16 %v1689_v15, %v1688_v38 }
 0x870   :  { %v1648_v4 = vsel %vm101_vm2, %v1642_v3, 0.0 }
 0x871   :  { %1649 = vadd.xlane.f32.xlu1 %v1648_v4  ;;  %8170 = vmatprep.subr.bf16.mxu0 %v8169_v16 }
 0x872   :  { %8172 = vmatpush3.bf16.msra.mxu0 %v8169_v16 }
 0x873   :  { %8174 = vmatprep.subr.bf16.mxu0 %v8173_v19 }
 0x876   :  { %8176 = vmatpush3.bf16.msra.mxu0 %v8173_v19 }
 0x8ee   :  { %v1647_v5 = vpop.xlane.xlu0 %1646 }
 0x8ef   :  { %v1652_v6 = vmul.f32 0.03125, %v1647_v5 }
 0x8f1   :  { %v1654_v37 = vsub.f32 %v1641_v62, %v1652_v6 }
 0x8f3   :  { %v1656_v7 = vmul.f32 %v1654_v37, %v1654_v37 }
 0x8f5   :  { %v1658_v8 = vsel %vm101_vm2, %v1656_v7, 0.0 }
 0x8f6   :  { %1659 = vadd.xlane.f32.xlu0 %v1658_v8  ;;  %v7274_v8 = vld [vmem:[%s9772_s12] ss:$0 sm:$0xff] }
 0x8fe   :  { %v1650_v9 = vpop.xlane.xlu1 %1649 }
 0x8ff   :  { %v1653_v10 = vmul.f32 0.03125, %v1650_v9 }
 0x901   :  { %v1655_v11 = vsub.f32 %v1642_v3, %v1653_v10 }
 0x903   :  { %v1657_v13 = vmul.f32 %v1655_v11, %v1655_v11 }
 0x905   :  { %v1661_v14 = vsel %vm101_vm2, %v1657_v13, 0.0 }
 0x906   :  { %1662 = vadd.xlane.f32.xlu0 %v1661_v14 }
 0x983   :  { %v1660_v20 = vpop.xlane.xlu0 %1659 }
 0x984   :  { %v1664_v21 = vmul.f32 0.03125, %v1660_v20 }
 0x986   :  { %v1666_v41 = vadd.f32 1e-05, %v1664_v21 }
 0x988   :  { %8343 = vrsqrt.f32 %v1666_v41 }
 0x992   :  { %v8344_v22 = vpop.eup %8343 }
 0x993   :  { %v1670_v24 = vmul.f32 %v8344_v22, %v1654_v37  ;;  %v1663_v25 = vpop.xlane.xlu0 %1662 }
 0x994   :  { %v1665_v27 = vmul.f32 0.03125, %v1663_v25 }
 0x995   :  { %v1678_v28 = vmul.f32 %v7269_v23, %v1670_v24 }
 0x996   :  { %v1667_v29 = vadd.f32 1e-05, %v1665_v27  ;;  %v7280_v27 = vld [vmem:[%s9765_s5 + $0x28] sm:$0xff] }
 0x997   :  { %v8880_v30 = vadd.f32 %v7270_v26, %v1678_v28  ;;  %v7281_v28 = vld [vmem:[%s9765_s5 + $0x30] sm:$0xff] }
 0x998   :  { %8345 = vrsqrt.f32 %v1667_v29 }
 0x999   :  { %7768 = vmatprep.mubr.msk.f32.mxu0 %vm101_vm2, %v8880_v30 }
 0x9a2   :  { %v8346_v31 = vpop.eup %8345 }
 0x9a3   :  { %v1671_v32 = vmul.f32 %v8346_v31, %v1655_v11 }
 0x9a5   :  { %v1679_v33 = vmul.f32 %v7269_v23, %v1671_v32 }
 0x9a7   :  { %v1687_v34 = vadd.f32 %v7270_v26, %v1679_v33  ;;  %v7279_v26 = vld [vmem:[%s9765_s5 + $0x20] sm:$0xff] }
 0x9a8   :  { %v8193_v29 = vpack.c.bf16 %v7280_v27, %v7279_v26 }
 0x9a9   :  { %7769 = vmatmul.mubr.msk.f32.vlgmr.msra.gmra.mrb[20].mxu0 %vm101_vm2, %v1687_v34 }
 0x9aa   :  { %8194 = vmatprep.subr.bf16.mxu0 %v8193_v29 }
 0x9ab   :  { %8196 = vmatpush3.bf16.msra.mxu0 %v8193_v29 }
 0xa7c   :  { %v7770_v52 = vpop.f32.mrb[20].mxu0 }
 0xa7d   :  { %v1777_v53 = vadd.f32 %v7770_v52, %v7271_v51  ;;  %v1771_v54 = vpop.f32.mrb[21].mxu0  ;;  %v7284_v52 = vld [vmem:[%s9766_s6 + $0x1] ss:$0 sm:$0xff] }
 0xa7e   :  { %v1772_v43 = vadd.f32 %v7271_v51, %v1771_v54 }
 0xa7f   :  { %v1783_v55 = vmul.f32 %v1777_v53, %v1777_v53  ;;  %v1781_v6 = vmul.f32 0.5, %v1777_v53 }
 0xa80   :  { %v1782_v56 = vmul.f32 %v1772_v43, %v1772_v43  ;;  %v1780_v4 = vmul.f32 0.5, %v1772_v43 }
 0xa81   :  { %v1785_v57 = vmul.f32 %v1783_v55, %v1777_v53 }
 0xa82   :  { %v1784_v58 = vmul.f32 %v1782_v56, %v1772_v43 }
 0xa83   :  { %v1787_v59 = vmul.f32 0.044715, %v1785_v57 }
 0xa84   :  { %v1786_v60 = vmul.f32 0.044715, %v1784_v58 }
 0xa85   :  { %v1789_v61 = vadd.f32 %v1787_v59, %v1777_v53 }
 0xa86   :  { %v1788_v62 = vadd.f32 %v1786_v60, %v1772_v43 }
 0xa87   :  { %v1791_v63 = vmul.f32 0.7978846, %v1789_v61 }
 0xa88   :  { %v1790_v0 = vmul.f32 0.7978846, %v1788_v62 }
 0xa89   :  { %8347 = vtanh.f32 %v1791_v63 }
 0xa8a   :  { %8349 = vtanh.f32 %v1790_v0 }
 0xa93   :  { %v8348_v1 = vpop.eup %8347 }
 0xa94   :  { %v8350_v2 = vpop.eup %8349  ;;  %v1795_v3 = vadd.f32 1.0, %v8348_v1 }
 0xa95   :  { %v1794_v5 = vadd.f32 1.0, %v8350_v2 }
 0xa96   :  { %v1797_v7 = vmul.f32 %v1795_v3, %v1781_v6 }
 0xa97   :  { %v1796_v37 = vmul.f32 %v1794_v5, %v1780_v4 }
 0xa99   :  { %7787 = vmatprep.mubr.msk.f32.mxu1 %vm1813_vm12, %v1796_v37 }
 0xa9a   :  { %7788 = vmatmul.mubr.msk.f32.vlgmr.msra.gmra.mrb[16].mxu1 %vm1813_vm12, %v1797_v7 }
 0xa9b   :  { %7808 = vmatprep.mubr.msk.f32.mxu1 %vm8537_vm7, %v8536_v12 }
 0xb6d   :  { %v7789_v9 = vpop.f32.mrb[16].mxu1 }
 0xb6e   :  { %v1892_v10 = vadd.f32 %v7789_v9, %v7274_v8  ;;  %v1886_v11 = vpop.f32.mrb[17].mxu1 }
 0xb6f   :  { %v1887_v13 = vadd.f32 %v7274_v8, %v1886_v11 }
 0xb70   :  { %v1896_v14 = vadd.f32 %v1892_v10, %v1687_v34 }
 0xb71   :  { %v1895_v38 = vadd.f32 %v1887_v13, %v8880_v30  ;;  %v7282_v30 = vld [vmem:[%s9765_s5 + $0x38] sm:$0xff] }
 0xb72   :  { %v1902_v15 = vsel %vm101_vm2, %v1896_v14, 0.0  ;;  %v8197_v31 = vpack.c.bf16 %v7282_v30, %v7281_v28 }
 0xb73   :  { %1903 = vadd.xlane.f32.xlu0 %v1902_v15  ;;  %v1899_v16 = vsel %vm101_vm2, %v1895_v38, 0.0 }
 0xb74   :  { %1900 = vadd.xlane.f32.xlu1 %v1899_v16  ;;  %8198 = vmatprep.subr.bf16.mxu0 %v8197_v31 }
 0xb75   :  { %8200 = vmatpush3.bf16.msra.mxu0 %v8197_v31 }
 0xb76   :  { %7801 = vmatprep.subr.mxu0 %v8536_v12 }
 0xc00   :  { %v1904_v17 = vpop.xlane.xlu0 %1903 }
 0xc01   :  { %v1906_v18 = vmul.f32 0.03125, %v1904_v17  ;;  %v1901_v19 = vpop.xlane.xlu1 %1900 }
 0xc02   :  { %v1905_v20 = vmul.f32 0.03125, %v1901_v19 }
 0xc03   :  { %v1908_v21 = vsub.f32 %v1896_v14, %v1906_v18 }
 0xc04   :  { %v1907_v41 = vsub.f32 %v1895_v38, %v1905_v20 }
 0xc05   :  { %v1910_v22 = vmul.f32 %v1908_v21, %v1908_v21 }
 0xc06   :  { %v1909_v23 = vmul.f32 %v1907_v41, %v1907_v41 }
 0xc07   :  { %v1914_v24 = vsel %vm101_vm2, %v1910_v22, 0.0 }
 0xc08   :  { %1915 = vadd.xlane.f32.xlu0 %v1914_v24  ;;  %v1911_v25 = vsel %vm101_vm2, %v1909_v23, 0.0 }
 0xc09   :  { %1912 = vadd.xlane.f32.xlu1 %v1911_v25 }
 0xc95   :  { %v1916_v32 = vpop.xlane.xlu0 %1915 }
 0xc96   :  { %v1918_v33 = vmul.f32 0.03125, %v1916_v32  ;;  %v1913_v34 = vpop.xlane.xlu1 %1912 }
 0xc97   :  { %v1917_v35 = vmul.f32 0.03125, %v1913_v34 }
 0xc98   :  { %v1920_v36 = vadd.f32 1e-05, %v1918_v33 }
 0xc99   :  { %v1919_v39 = vadd.f32 1e-05, %v1917_v35 }
 0xc9a   :  { %8351 = vrsqrt.f32 %v1920_v36 }
 0xc9b   :  { %8353 = vrsqrt.f32 %v1919_v39 }
 0xca4   :  { %v8352_v40 = vpop.eup %8351 }
 0xca5   :  { %v8354_v44 = vpop.eup %8353  ;;  %v1924_v45 = vmul.f32 %v8352_v40, %v1908_v21 }
 0xca6   :  { %v1923_v46 = vmul.f32 %v8354_v44, %v1907_v41 }
 0xca7   :  { %v1932_v48 = vmul.f32 %v7277_v42, %v1924_v45 }
 0xca8   :  { %v1931_v49 = vmul.f32 %v7277_v42, %v1923_v46 }
 0xca9   :  { %v8946_v51 = vadd.f32 %v7278_v47, %v1932_v48 }
 0xcaa   :  { %v8944_v50 = vadd.f32 %v7278_v47, %v1931_v49 }
 0xcac   :  { %7798 = vmatprep.mubr.msk.f32.mxu0 %vm101_vm2, %v8944_v50 }
 0xcad   :  { %7799 = vmatmul.mubr.msk.f32.vlgmr.msra.gmra.mrb[22].mxu0 %vm101_vm2, %v8946_v51 }
 0xcae   :  { %7803 = vmatprep.mubr.msk.f32.mxu0 %vm8537_vm7, %v8536_v12 }
 0xd80   :  { %v7800_v53 = vpop.f32.mrb[22].mxu0 }
 0xd81   :  { %v2026_v54 = vpop.f32.mrb[23].mxu0  ;;  %v8971_v55 = vadd.f32 %v7800_v53, %v7284_v52 }
 0xd82   :  { %v8957_v43 = vadd.f32 %v7284_v52, %v2026_v54 }
 0xd84   :  { %2203 = vrot.lane.b32.xlu0 %v8957_v43, %s8539_s21  ;;  %2036 = vrot.lane.b32.xlu1 %v8957_v43, %s8538_s20 }
 0xd88   :  { %2372 = vrot.lane.b32.xlu0 %v8957_v43, %s8541_s2  ;;  %2201 = vrot.lane.b32.xlu1 %v8957_v43, %s8540_s22 }
 0xd8c   :  { %2543 = vrot.lane.b32.xlu0 %v8957_v43, %s8542_s23  ;;  %2374 = vrot.lane.b32.xlu1 %v8957_v43, %s9794_s24 }
 0xd90   :  { %2882 = vrot.lane.b32.xlu0 %v8971_v55, %s8539_s21  ;;  %2545 = vrot.lane.b32.xlu1 %v8957_v43, %s9792_s25 }
 0xd94   :  { %3053 = vrot.lane.b32.xlu0 %v8971_v55, %s9794_s24  ;;  %2715 = vrot.lane.b32.xlu1 %v8971_v55, %s8538_s20 }
 0xd98   :  { %3224 = vrot.lane.b32.xlu0 %v8971_v55, %s9792_s25  ;;  %2880 = vrot.lane.b32.xlu1 %v8971_v55, %s8540_s22 }
 0xd9c   :  { %2124 = vrot.lane.b32.xlu0 %v8957_v43, %s9790_s1  ;;  %3051 = vrot.lane.b32.xlu1 %v8971_v55, %s8541_s2 }
 0xda0   :  { %3222 = vrot.lane.b32.xlu1 %v8971_v55, %s8542_s23 }
 0xda4   :  { %2291 = vrot.lane.b32.xlu1 %v8957_v43, %s9788_s28 }
 0xdf6   :  { %v2204_v56 = vpop.permute.xlu0 %2203  ;;  %v2037_v57 = vpop.permute.xlu1 %2036 }
 0xdf7   :  { %7802 = vmatpush3.xpose.msk.msra.mxu0 %vm280_vm8, %v2037_v57 }
 0xdf8   :  { %7811 = vmatprep.subr.mxu0 %v8536_v12 }
 0xdfa   :  { %v2373_v58 = vpop.permute.xlu0 %2372  ;;  %7804 = vmatmul.mubr.msk.f32.vlgmr.msra.gmra.mrb[24].mxu0 %vm280_vm8, %v8957_v43  ;;  %v2202_v59 = vpop.permute.xlu1 %2201 }
 0xdfb   :  { %7812 = vmatpush3.xpose.msk.msra.mxu0 %vm280_vm8, %v2204_v56  ;;  %7813 = vmatprep.mubr.msk.f32.mxu0 %vm8537_vm7, %v8536_v12 }
 0xdfc   :  { %7821 = vmatprep.subr.mxu0 %v8536_v12 }
 0xdfe   :  { %v2544_v60 = vpop.permute.xlu0 %2543  ;;  %7814 = vmatmul.mubr.msk.f32.vlgmr.msra.gmra.mrb[26].mxu0 %vm280_vm8, %v2202_v59  ;;  %v2375_v61 = vpop.permute.xlu1 %2374 }
 0xdff   :  { %7822 = vmatpush3.xpose.msk.msra.mxu0 %vm280_vm8, %v2375_v61  ;;  %7823 = vmatprep.mubr.msk.f32.mxu0 %vm8537_vm7, %v8536_v12 }
 0xe00   :  { %7831 = vmatprep.subr.mxu0 %v8536_v12 }
 0xe02   :  { %v2883_v62 = vpop.permute.xlu0 %2882  ;;  %7824 = vmatmul.mubr.msk.f32.vlgmr.msra.gmra.mrb[28].mxu0 %vm280_vm8, %v2373_v58  ;;  %v2546_v63 = vpop.permute.xlu1 %2545 }
 0xe03   :  { %7832 = vmatpush3.xpose.msk.msra.mxu0 %vm280_vm8, %v2546_v63  ;;  %7833 = vmatprep.mubr.msk.f32.mxu0 %vm8537_vm7, %v8536_v12 }
 0xe04   :  { %7841 = vmatprep.subr.mxu0 %v8536_v12 }
 0xe06   :  { %v3054_v0 = vpop.permute.xlu0 %3053  ;;  %7834 = vmatmul.mubr.msk.f32.vlgmr.msra.gmra.mrb[30].mxu0 %vm280_vm8, %v2544_v60  ;;  %v2716_v1 = vpop.permute.xlu1 %2715 }
 0xe07   :  { %7842 = vmatpush3.xpose.msk.msra.mxu0 %vm280_vm8, %v2716_v1  ;;  %7843 = vmatprep.mubr.msk.f32.mxu0 %vm8537_vm7, %v8536_v12 }
 0xe08   :  { %7851 = vmatprep.subr.mxu0 %v8536_v12 }
 0xe0a   :  { %v3225_v2 = vpop.permute.xlu0 %3224  ;;  %7844 = vmatmul.mubr.msk.f32.vlgmr.msra.gmra.mrb[32].mxu0 %vm280_vm8, %v8971_v55  ;;  %v2881_v3 = vpop.permute.xlu1 %2880 }
 0xe0b   :  { %7852 = vmatpush3.xpose.msk.msra.mxu0 %vm280_vm8, %v2883_v62  ;;  %7853 = vmatprep.mubr.msk.f32.mxu0 %vm8537_vm7, %v8536_v12 }
 0xe0c   :  { %7861 = vmatprep.subr.mxu0 %v8536_v12 }
 0xe0e   :  { %v2125_v4 = vpop.permute.xlu0 %2124  ;;  %7854 = vmatmul.mubr.msk.f32.vlgmr.msra.gmra.mrb[34].mxu0 %vm280_vm8, %v2881_v3  ;;  %v3052_v5 = vpop.permute.xlu1 %3051 }
 0xe0f   :  { %7807 = vmatpush3.msra.mxu1 %v2125_v4  ;;  %7862 = vmatpush3.xpose.msk.msra.mxu0 %vm280_vm8, %v3054_v0 }
 0xe10   :  { %7863 = vmatprep.mubr.msk.f32.mxu0 %vm8537_vm7, %v8536_v12  ;;  %7871 = vmatprep.subr.mxu0 %v8536_v12 }
 0xe11   :  { %7816 = vmatprep.subr.mxu1 %v8536_v12 }
 0xe12   :  { %7864 = vmatmul.mubr.msk.f32.vlgmr.msra.gmra.mrb[36].mxu0 %vm280_vm8, %v3052_v5  ;;  %v3223_v6 = vpop.permute.xlu1 %3222 }
 0xe13   :  { %7872 = vmatpush3.xpose.msk.msra.mxu0 %vm280_vm8, %v3225_v2  ;;  %7873 = vmatprep.mubr.msk.f32.mxu0 %vm8537_vm7, %v8536_v12 }
 0xe16   :  { %7874 = vmatmul.mubr.msk.f32.vlgmr.msra.gmra.mrb[38].mxu0 %vm280_vm8, %v3223_v6  ;;  %v9045_v39 = vpop.permute.xlu1 %2291 }
 0xecd   :  { %v2108_v37 = vpop.f32.mrb[24].mxu0 }
 0xece   :  { %v2112_v7 = vmul.f32 0.35355338, %v2108_v37  ;;  %v7805_v8 = vpop.f32.mrb[25].mxu0 }
 0xed0   :  { %v2113_v9 = vsel %vm280_vm8, %v2112_v7, -inf }
 0xed1   :  { %2114 = vmax.xlane.f32.xlu0 %v2113_v9  ;;  %v2275_v10 = vpop.f32.mrb[26].mxu0 }
 0xed2   :  { %v2279_v11 = vmul.f32 0.35355338, %v2275_v10  ;;  %v7815_v13 = vpop.f32.mrb[27].mxu0 }
 0xed4   :  { %v2280_v14 = vsel %vm280_vm8, %v2279_v11, -inf }
 0xed5   :  { %2281 = vmax.xlane.f32.xlu1 %v2280_v14  ;;  %v2446_v38 = vpop.f32.mrb[28].mxu0 }
 0xed6   :  { %v2450_v15 = vmul.f32 0.35355338, %v2446_v38  ;;  %v7825_v16 = vpop.f32.mrb[29].mxu0 }
 0xed8   :  { %v2451_v17 = vsel %vm280_vm8, %v2450_v15, -inf }
 0xed9   :  { %2452 = vmax.xlane.f32.xlu0 %v2451_v17  ;;  %v2617_v18 = vpop.f32.mrb[30].mxu0 }
 0xeda   :  { %v2621_v19 = vmul.f32 0.35355338, %v2617_v18  ;;  %v7835_v20 = vpop.f32.mrb[31].mxu0 }
 0xedc   :  { %v2622_v21 = vsel %vm280_vm8, %v2621_v19, -inf }
 0xedd   :  { %2623 = vmax.xlane.f32.xlu0 %v2622_v21  ;;  %v2787_v41 = vpop.f32.mrb[32].mxu0 }
 0xede   :  { %v2791_v22 = vmul.f32 0.35355338, %v2787_v41  ;;  %v7845_v23 = vpop.f32.mrb[33].mxu0 }
 0xee0   :  { %v2792_v24 = vsel %vm280_vm8, %v2791_v22, -inf }
 0xee1   :  { %2793 = vmax.xlane.f32.xlu1 %v2792_v24  ;;  %v2954_v25 = vpop.f32.mrb[34].mxu0 }
 0xee2   :  { %v2958_v26 = vmul.f32 0.35355338, %v2954_v25  ;;  %v7855_v27 = vpop.f32.mrb[35].mxu0 }
 0xee4   :  { %v2959_v28 = vsel %vm280_vm8, %v2958_v26, -inf }
 0xee5   :  { %2960 = vmax.xlane.f32.xlu0 %v2959_v28  ;;  %v3125_v29 = vpop.f32.mrb[36].mxu0 }
 0xee6   :  { %v3129_v30 = vmul.f32 0.35355338, %v3125_v29  ;;  %v7865_v31 = vpop.f32.mrb[37].mxu0 }
 0xee8   :  { %v3130_v32 = vsel %vm280_vm8, %v3129_v30, -inf }
 0xee9   :  { %3131 = vmax.xlane.f32.xlu1 %v3130_v32  ;;  %v3296_v33 = vpop.f32.mrb[38].mxu0 }
 0xeea   :  { %v3300_v34 = vmul.f32 0.35355338, %v3296_v33  ;;  %v7875_v35 = vpop.f32.mrb[39].mxu0 }
 0xeec   :  { %v3301_v36 = vsel %vm280_vm8, %v3300_v34, -inf }
 0xeed   :  { %3302 = vmax.xlane.f32.xlu0 %v3301_v36 }
 0xefa   :  { %2633 = vrot.lane.b32.xlu1 %v8957_v43, %s9786_s27 }
 0xf03   :  { %2462 = vrot.lane.b32.xlu0 %v8957_v43, %s9784_s26 }
 0xf5e   :  { %v2115_v40 = vpop.xlane.xlu0 %2114 }
 0xf5f   :  { %v2116_v42 = vsub.f32 %v2112_v7, %v2115_v40 }
 0xf61   :  { %v2117_v44 = vmul.f32 1.442695, %v2116_v42 }
 0xf62   :  { %v2282_v45 = vpop.xlane.xlu1 %2281 }
 0xf63   :  { %8355 = vpow2.f32 %v2117_v44  ;;  %v2283_v46 = vsub.f32 %v2279_v11, %v2282_v45 }
 0xf65   :  { %v2284_v47 = vmul.f32 1.442695, %v2283_v46 }
 0xf66   :  { %v2453_v48 = vpop.xlane.xlu0 %2452 }
 0xf67   :  { %8357 = vpow2.f32 %v2284_v47  ;;  %v2454_v49 = vsub.f32 %v2450_v15, %v2453_v48 }
 0xf69   :  { %v2455_v52 = vmul.f32 1.442695, %v2454_v49 }
 0xf6a   :  { %v2624_v53 = vpop.xlane.xlu0 %2623 }
 0xf6b   :  { %8359 = vpow2.f32 %v2455_v52  ;;  %v2625_v54 = vsub.f32 %v2621_v19, %v2624_v53 }
 0xf6d   :  { %v8356_v56 = vpop.eup %8355  ;;  %v2626_v57 = vmul.f32 1.442695, %v2625_v54 }
 0xf6e   :  { %v2119_v43 = vsel %vm280_vm8, %v8356_v56, 0.0  ;;  %v2794_v0 = vpop.xlane.xlu1 %2793 }
 0xf6f   :  { %8361 = vpow2.f32 %v2626_v57  ;;  %2120 = vadd.xlane.f32.xlu1 %v2119_v43  ;;  %v2795_v1 = vsub.f32 %v2791_v22, %v2794_v0 }
 0xf71   :  { %v8358_v58 = vpop.eup %8357  ;;  %v2796_v5 = vmul.f32 1.442695, %v2795_v1 }
 0xf72   :  { %v2286_v59 = vsel %vm280_vm8, %v8358_v58, 0.0  ;;  %v2961_v2 = vpop.xlane.xlu0 %2960 }
 0xf73   :  { %2287 = vadd.xlane.f32.xlu0 %v2286_v59  ;;  %v2962_v4 = vsub.f32 %v2958_v26, %v2961_v2  ;;  %8363 = vpow2.f32 %v2796_v5 }
 0xf75   :  { %v8360_v60 = vpop.eup %8359  ;;  %v2963_v7 = vmul.f32 1.442695, %v2962_v4 }
 0xf76   :  { %v2457_v61 = vsel %vm280_vm8, %v8360_v60, 0.0  ;;  %v3132_v3 = vpop.xlane.xlu1 %3131 }
 0xf77   :  { %2458 = vadd.xlane.f32.xlu1 %v2457_v61  ;;  %v3133_v6 = vsub.f32 %v3129_v30, %v3132_v3  ;;  %8365 = vpow2.f32 %v2963_v7 }
 0xf79   :  { %v9050_v62 = vpop.eup %8361  ;;  %v3134_v8 = vmul.f32 1.442695, %v3133_v6 }
 0xf7a   :  { %v2628_v63 = vsel %vm280_vm8, %v9050_v62, 0.0  ;;  %v3303_v37 = vpop.xlane.xlu0 %3302  ;;  %v2634_v19 = vpop.permute.xlu1 %2633 }
 0xf7b   :  { %2629 = vadd.xlane.f32.xlu0 %v2628_v63  ;;  %v3304_v9 = vsub.f32 %v3300_v34, %v3303_v37  ;;  %8367 = vpow2.f32 %v3134_v8 }
 0xf7d   :  { %v3305_v10 = vmul.f32 1.442695, %v3304_v9  ;;  %v8364_v11 = vpop.eup %8363 }
 0xf7e   :  { %v2798_v14 = vsel %vm280_vm8, %v8364_v11, 0.0  ;;  %v2463_v20 = vpop.permute.xlu0 %2462 }
 0xf7f   :  { %8369 = vpow2.f32 %v3305_v10 }
 0xf81   :  { %v9058_v13 = vpop.eup %8365 }
 0xf82   :  { %v2965_v15 = vsel %vm280_vm8, %v9058_v13, 0.0 }
 0xf85   :  { %v9061_v38 = vpop.eup %8367 }
 0xf86   :  { %v3136_v16 = vsel %vm280_vm8, %v9061_v38, 0.0 }
 0xf88   :  { %2970 = vrot.lane.b32.xlu1 %v8971_v55, %s9788_s28  ;;  %s8552_s28 = smov [#allocation3]  }
 0xf89   :  { %v9067_v17 = vpop.eup %8369  ;;  %s7211_s0 = sshll.u32 %s8552_s28, 4  ;;  %s7212_s0 = int_to_ptr.vmem [resolvable:$true] %s7211_s0 }
 0xf8a   :  { %v3307_v18 = vsel %vm280_vm8, %v9067_v17, 0.0  ;;  %p8492_p1 = scmp.lt.s32.totalorder %s7212_s0, %s7212_s0 }
 0xf91   :  { %2803 = vrot.lane.b32.xlu0 %v8971_v55, %s9790_s1 }
 0xfac   :  { %2799 = vadd.xlane.f32.xlu1 %v2798_v14 }
 0xfb0   :  { %2966 = vadd.xlane.f32.xlu0 %v2965_v15  ;;  %3137 = vadd.xlane.f32.xlu1 %v3136_v16 }
 0xfb4   :  { %3308 = vadd.xlane.f32.xlu1 %v3307_v18 }
 0xfc5   :  { %3312 = vrot.lane.b32.xlu1 %v8971_v55, %s9786_s27  ;;  %s9806_s27 = smov 64  }
 0xfc6   :  { %3141 = vrot.lane.b32.xlu0 %v8971_v55, %s9784_s26 }
 0xffc   :  { %v2121_v21 = vpop.xlane.xlu1 %2120 }
 0xffd   :  { %8371 = vrcp.f32 %v2121_v21 }
0x1000   :  { %v2288_v41 = vpop.xlane.xlu0 %2287 }
0x1001   :  { %8373 = vrcp.f32 %v2288_v41 }
0x1004   :  { %v2459_v22 = vpop.xlane.xlu1 %2458 }
0x1005   :  { %8375 = vrcp.f32 %v2459_v22 }
0x1007   :  { %v8372_v23 = vpop.eup %8371 }
0x1008   :  { %v2630_v24 = vpop.xlane.xlu0 %2629  ;;  %v2123_v25 = vmul.f32 %v8372_v23, %v8356_v56  ;;  %v2971_v32 = vpop.permute.xlu1 %2970 }
0x1009   :  { %8377 = vrcp.f32 %v2630_v24  ;;  %v7316_v24 = vld [vmem:[%s9769_s9 + $0x28] sm:$0xff] }
0x100a   :  { %7809 = vmatmul.mubr.msk.f32.vlgmr.msra.gmra.mrb[18].mxu1 %vm280_vm8, %v2123_v25 }
0x100b   :  { %v8374_v26 = vpop.eup %8373  ;;  %7817 = vmatpush3.msra.mxu1 %v9045_v39  ;;  %7818 = vmatprep.mubr.msk.f32.mxu1 %vm8537_vm7, %v8536_v12 }
0x100c   :  { %7826 = vmatprep.subr.mxu1 %v8536_v12  ;;  %v2290_v55 = vmul.f32 %v8374_v26, %v8358_v58  ;;  %v2804_v31 = vpop.permute.xlu0 %2803  ;;  %v7317_v26 = vld [vmem:[%s9769_s9 + $0x30] sm:$0xff] }
0x100e   :  { %7819 = vmatmul.mubr.msk.f32.vlgmr.msra.gmra.mrb[20].mxu1 %vm280_vm8, %v2290_v55  ;;  %v7318_v55 = vld [vmem:[%s9769_s9 + $0x38] sm:$0xff] }
0x100f   :  { %v8376_v27 = vpop.eup %8375  ;;  %7827 = vmatpush3.msra.mxu1 %v2463_v20  ;;  %7828 = vmatprep.mubr.msk.f32.mxu1 %vm8537_vm7, %v8536_v12 }
0x1010   :  { %7836 = vmatprep.subr.mxu1 %v8536_v12  ;;  %v2461_v28 = vmul.f32 %v8376_v27, %v8360_v60  ;;  %v8205_v27 = vpack.c.bf16 %v7318_v55, %v7317_v26 }
0x1012   :  { %7829 = vmatmul.mubr.msk.f32.vlgmr.msra.gmra.mrb[22].mxu1 %vm280_vm8, %v2461_v28 }
0x1013   :  { %v8378_v29 = vpop.eup %8377  ;;  %7837 = vmatpush3.msra.mxu1 %v2634_v19  ;;  %7838 = vmatprep.mubr.msk.f32.mxu1 %vm8537_vm7, %v8536_v12 }
0x1014   :  { %7846 = vmatprep.subr.mxu1 %v8536_v12  ;;  %v2632_v30 = vmul.f32 %v8378_v29, %v9050_v62 }
0x1016   :  { %7839 = vmatmul.mubr.msk.f32.vlgmr.msra.gmra.mrb[24].mxu1 %vm280_vm8, %v2632_v30 }
0x1017   :  { %7847 = vmatpush3.msra.mxu1 %v2804_v31  ;;  %7848 = vmatprep.mubr.msk.f32.mxu1 %vm8537_vm7, %v8536_v12 }
0x1018   :  { %7856 = vmatprep.subr.mxu1 %v8536_v12 }
0x1039   :  { %v2800_v33 = vpop.xlane.xlu1 %2799 }
0x103a   :  { %8379 = vrcp.f32 %v2800_v33 }
0x103d   :  { %v2967_v34 = vpop.xlane.xlu0 %2966  ;;  %v3138_v35 = vpop.xlane.xlu1 %3137 }
0x103e   :  { %8381 = vrcp.f32 %v2967_v34  ;;  %v7314_v34 = vld [vmem:[%s9768_s8 + $0x1] ss:$0 sm:$0xff] }
0x103f   :  { %8383 = vrcp.f32 %v3138_v35 }
0x1041   :  { %v3309_v36 = vpop.xlane.xlu1 %3308  ;;  %v3142_v46 = vpop.permute.xlu0 %3141 }
0x1042   :  { %8385 = vrcp.f32 %v3309_v36 }
0x1044   :  { %v8380_v39 = vpop.eup %8379 }
0x1045   :  { %v2802_v40 = vmul.f32 %v8380_v39, %v8364_v11  ;;  %v3313_v49 = vpop.permute.xlu1 %3312 }
0x1047   :  { %7849 = vmatmul.mubr.msk.f32.vlgmr.msra.gmra.mrb[26].mxu1 %vm280_vm8, %v2802_v40 }
0x1048   :  { %v8382_v42 = vpop.eup %8381  ;;  %7857 = vmatpush3.msra.mxu1 %v2971_v32  ;;  %7858 = vmatprep.mubr.msk.f32.mxu1 %vm8537_vm7, %v8536_v12  ;;  %v7313_v32 = vld [vmem:[%s9767_s7 + $0x1] ss:$0 sm:$0xff] }
0x1049   :  { %7866 = vmatprep.subr.mxu1 %v8536_v12  ;;  %v2969_v44 = vmul.f32 %v8382_v42, %v9058_v13  ;;  %v8384_v45 = vpop.eup %8383 }
0x104a   :  { %v3140_v47 = vmul.f32 %v8384_v45, %v9061_v38 }
0x104b   :  { %7859 = vmatmul.mubr.msk.f32.vlgmr.msra.gmra.mrb[28].mxu1 %vm280_vm8, %v2969_v44 }
0x104c   :  { %7867 = vmatpush3.msra.mxu1 %v3142_v46  ;;  %7868 = vmatprep.mubr.msk.f32.mxu1 %vm8537_vm7, %v8536_v12  ;;  %v8386_v48 = vpop.eup %8385 }
0x104d   :  { %7876 = vmatprep.subr.mxu1 %v8536_v12  ;;  %v3311_v52 = vmul.f32 %v8386_v48, %v9067_v17  ;;  %v7323_v48 = vld [vmem:[%s9771_s11 + $0x40] sm:$0xff] }
0x104f   :  { %7869 = vmatmul.mubr.msk.f32.vlgmr.msra.gmra.mrb[30].mxu1 %vm280_vm8, %v3140_v47 }
0x1050   :  { %7877 = vmatpush3.msra.mxu1 %v3313_v49  ;;  %7878 = vmatprep.mubr.msk.f32.mxu1 %vm8537_vm7, %v8536_v12  ;;  %v7324_v49 = vld [vmem:[%s9771_s11 + $0x48] sm:$0xff] }
0x1053   :  { %7879 = vmatmul.mubr.msk.f32.vlgmr.msra.gmra.mrb[32].mxu1 %vm280_vm8, %v3311_v52  ;;  %v8209_v52 = vpack.c.bf16 %v7324_v49, %v7323_v48 }
0x1055   :  { %8210 = vmatprep.subr.bf16.mxu1 %v8209_v52 }
0x1056   :  { %8212 = vmatpush3.bf16.msra.mxu1 %v8209_v52 }
0x10dd   :  { %v2196_v53 = vpop.f32.mrb[18].mxu1 }
0x10de   :  { %2200 = vst.msk [vmem:[#allocation2] sm:$0xff] %vm280_vm8, %v2196_v53  ;;  %v7810_v54 = vpop.f32.mrb[19].mxu1  ;;  %v7325_v53 = vld [vmem:[%s9771_s11 + $0x50] sm:$0xff] }
0x10df   :  { %v7326_v54 = vld [vmem:[%s9771_s11 + $0x58] sm:$0xff] }
0x10e1   :  { %v2363_v56 = vpop.f32.mrb[20].mxu1 }
0x10e2   :  { %2368 = vrot.lane.b32.xlu0 %v2363_v56, %s9798_s3  ;;  %v7820_v57 = vpop.f32.mrb[21].mxu1  ;;  %v8213_v56 = vpack.c.bf16 %v7326_v54, %v7325_v53  ;;  %v7337_v54 = vld [vmem:[%s9773_s13 + $0x1] ss:$0 sm:$0xff] }
0x10e3   :  { %v7327_v57 = vld [vmem:[%s9771_s11 + $0x60] sm:$0xff] }
0x10e4   :  { %8214 = vmatprep.subr.bf16.mxu1 %v8213_v56 }
0x10e5   :  { %v2534_v43 = vpop.f32.mrb[22].mxu1  ;;  %8216 = vmatpush3.bf16.msra.mxu1 %v8213_v56 }
0x10e6   :  { %2539 = vrot.lane.b32.xlu1 %v2534_v43, %s9799_s4  ;;  %v7830_v58 = vpop.f32.mrb[23].mxu1  ;;  %v7328_v43 = vld [vmem:[%s9771_s11 + $0x68] sm:$0xff] }
0x10e7   :  { %v8217_v58 = vpack.c.bf16 %v7328_v43, %v7327_v57 }
0x10e9   :  { %v2705_v59 = vpop.f32.mrb[24].mxu1  ;;  %8218 = vmatprep.subr.bf16.mxu1 %v8217_v58 }
0x10ea   :  { %2710 = vrot.lane.b32.xlu1 %v2705_v59, %s9800_s17  ;;  %v7840_v60 = vpop.f32.mrb[25].mxu1  ;;  %8220 = vmatpush3.bf16.msra.mxu1 %v8217_v58  ;;  %v7329_v59 = vld [vmem:[%s9771_s11 + $0x70] sm:$0xff]  ;;  %v7338_v58 = vld [vmem:[%s9774_s14 + $0x1] ss:$0 sm:$0xff] }
0x10eb   :  { %v7330_v60 = vld [vmem:[%s9771_s11 + $0x78] sm:$0xff] }
0x111a   :  { %v2875_v61 = vpop.f32.mrb[26].mxu1 }
0x111b   :  { %2879 = vst.msk [vmem:[#allocation2 + $0x8] sm:$0xff] %vm280_vm8, %v2875_v61  ;;  %v7850_v62 = vpop.f32.mrb[27].mxu1  ;;  %v8221_v61 = vpack.c.bf16 %v7330_v60, %v7329_v59 }
0x111c   :  { %v7320_v62 = vld [vmem:[%s9770_s10 + $0x1] ss:$0 sm:$0xff] }
0x111d   :  { %8222 = vmatprep.subr.bf16.mxu1 %v8221_v61 }
0x111e   :  { %v3042_v63 = vpop.f32.mrb[28].mxu1  ;;  %8224 = vmatpush3.bf16.msra.mxu1 %v8221_v61 }
0x111f   :  { %3047 = vrot.lane.b32.xlu0 %v3042_v63, %s9798_s3  ;;  %v7860_v0 = vpop.f32.mrb[29].mxu1  ;;  %7927 = vmatprep.subr.mxu1 %v8536_v12 }
0x1122   :  { %v3213_v1 = vpop.f32.mrb[30].mxu1 }
0x1123   :  { %3218 = vrot.lane.b32.xlu0 %v3213_v1, %s9799_s4  ;;  %v7870_v2 = vpop.f32.mrb[31].mxu1 }
0x1126   :  { %v3384_v3 = vpop.f32.mrb[32].mxu1 }
0x1127   :  { %3389 = vrot.lane.b32.xlu1 %v3384_v3, %s9800_s17  ;;  %v7880_v4 = vpop.f32.mrb[33].mxu1 }
0x1154   :  { %v2369_v5 = vpop.permute.xlu0 %2368 }
0x1155   :  { %2371 = vst.msk [vmem:[#allocation2] sm:$0xff] %vm614_vm9, %v2369_v5 }
0x1158   :  { %v2540_v6 = vpop.permute.xlu1 %2539 }
0x1159   :  { %2542 = vst.msk [vmem:[#allocation2] sm:$0xff] %vm786_vm10, %v2540_v6 }
0x115c   :  { %v2711_v37 = vpop.permute.xlu1 %2710 }
0x115d   :  { %2713 = vst.msk [vmem:[#allocation2] sm:$0xff] %vm958_vm11, %v2711_v37 }
0x1164   :  { %v3393_v7 = vld [vmem:[#allocation2] sm:$0xff] }
0x1165   :  { %v3395_v8 = vadd.f32 %v3393_v7, %v8944_v50 }
0x1167   :  { %v3401_v9 = vsel %vm101_vm2, %v3395_v8, 0.0 }
0x1168   :  { %3402 = vadd.xlane.f32.xlu0 %v3401_v9 }
0x1191   :  { %v3048_v10 = vpop.permute.xlu0 %3047 }
0x1192   :  { %3050 = vst.msk [vmem:[#allocation2 + $0x8] sm:$0xff] %vm614_vm9, %v3048_v10 }
0x1195   :  { %v3219_v11 = vpop.permute.xlu0 %3218 }
0x1196   :  { %3221 = vst.msk [vmem:[#allocation2 + $0x8] sm:$0xff] %vm786_vm10, %v3219_v11 }
0x1199   :  { %v3390_v13 = vpop.permute.xlu1 %3389 }
0x119a   :  { %3392 = vst.msk [vmem:[#allocation2 + $0x8] sm:$0xff] %vm958_vm11, %v3390_v13 }
0x11a1   :  { %v3394_v14 = vld [vmem:[#allocation2 + $0x8] sm:$0xff] }
0x11a2   :  { %v3396_v38 = vadd.f32 %v3394_v14, %v8946_v51  ;;  %v7315_v51 = vld [vmem:[%s9769_s9 + $0x20] sm:$0xff] }
0x11a3   :  { %v8201_v25 = vpack.c.bf16 %v7316_v24, %v7315_v51 }
0x11a4   :  { %v3404_v15 = vsel %vm101_vm2, %v3396_v38, 0.0 }
0x11a5   :  { %3405 = vadd.xlane.f32.xlu1 %v3404_v15  ;;  %8202 = vmatprep.subr.bf16.mxu0 %v8201_v25 }
0x11a6   :  { %8204 = vmatpush3.bf16.msra.mxu0 %v8201_v25 }
0x11a7   :  { %8206 = vmatprep.subr.bf16.mxu0 %v8205_v27 }
0x11aa   :  { %8208 = vmatpush3.bf16.msra.mxu0 %v8205_v27 }
0x11f5   :  { %v3403_v16 = vpop.xlane.xlu0 %3402 }
0x11f6   :  { %v3407_v50 = vmul.f32 0.03125, %v3403_v16 }
0x11f8   :  { %v3409_v17 = vsub.f32 %v3395_v8, %v3407_v50 }
0x11fa   :  { %v3411_v18 = vmul.f32 %v3409_v17, %v3409_v17 }
0x11fc   :  { %v3413_v19 = vsel %vm101_vm2, %v3411_v18, 0.0 }
0x11fd   :  { %3414 = vadd.xlane.f32.xlu0 %v3413_v19  ;;  %v7332_v19 = vld [vmem:[%s9772_s12 + $0x1] ss:$0 sm:$0xff] }
0x1232   :  { %v3406_v20 = vpop.xlane.xlu1 %3405 }
0x1233   :  { %v3408_v21 = vmul.f32 0.03125, %v3406_v20 }
0x1235   :  { %v3410_v41 = vsub.f32 %v3396_v38, %v3408_v21 }
0x1237   :  { %v3412_v22 = vmul.f32 %v3410_v41, %v3410_v41 }
0x1239   :  { %v3416_v23 = vsel %vm101_vm2, %v3412_v22, 0.0 }
0x123a   :  { %3417 = vadd.xlane.f32.xlu0 %v3416_v23 }
0x128a   :  { %v3415_v28 = vpop.xlane.xlu0 %3414 }
0x128b   :  { %v3419_v29 = vmul.f32 0.03125, %v3415_v28 }
0x128d   :  { %v3421_v30 = vadd.f32 1e-05, %v3419_v29 }
0x128f   :  { %8387 = vrsqrt.f32 %v3421_v30 }
0x1299   :  { %v8388_v31 = vpop.eup %8387 }
0x129a   :  { %v3425_v33 = vmul.f32 %v8388_v31, %v3409_v17 }
0x129c   :  { %v3433_v35 = vmul.f32 %v7313_v32, %v3425_v33 }
0x129e   :  { %v9146_v36 = vadd.f32 %v7314_v34, %v3433_v35  ;;  %v3701_v35 = vld [vmem:[%s9765_s5] sm:$0xff] }
0x12a0   :  { %7889 = vmatprep.mubr.msk.f32.mxu0 %vm101_vm2, %v9146_v36 }
0x12c7   :  { %v3418_v39 = vpop.xlane.xlu0 %3417 }
0x12c8   :  { %v3420_v40 = vmul.f32 0.03125, %v3418_v39  ;;  %v3703_v39 = vld [vmem:[%s9765_s5 + $0x10] sm:$0xff] }
0x12ca   :  { %v3422_v42 = vadd.f32 1e-05, %v3420_v40 }
0x12cc   :  { %8389 = vrsqrt.f32 %v3422_v42  ;;  %v3704_v42 = vld [vmem:[%s9765_s5 + $0x18] sm:$0xff] }
0x12d6   :  { %v8390_v44 = vpop.eup %8389 }
0x12d7   :  { %v3426_v45 = vmul.f32 %v8390_v44, %v3410_v41  ;;  %v8229_v44 = vpack.c.bf16 %v3704_v42, %v3703_v39 }
0x12d9   :  { %v3434_v46 = vmul.f32 %v7313_v32, %v3426_v45 }
0x12db   :  { %v3442_v47 = vadd.f32 %v7314_v34, %v3434_v46 }
0x12dd   :  { %7890 = vmatmul.mubr.msk.f32.vlgmr.msra.gmra.mrb[40].mxu0 %vm101_vm2, %v3442_v47 }
0x13b0   :  { %v7891_v63 = vpop.f32.mrb[40].mxu0 }
0x13b1   :  { %v3534_v0 = vadd.f32 %v7891_v63, %v7320_v62  ;;  %v3528_v1 = vpop.f32.mrb[41].mxu0  ;;  %v7339_v63 = vld [vmem:[%s9766_s6] ss:$0 sm:$0xff] }
0x13b2   :  { %v3529_v2 = vadd.f32 %v7320_v62, %v3528_v1 }
0x13b3   :  { %v3540_v3 = vmul.f32 %v3534_v0, %v3534_v0  ;;  %v3538_v50 = vmul.f32 0.5, %v3534_v0 }
0x13b4   :  { %v3539_v4 = vmul.f32 %v3529_v2, %v3529_v2  ;;  %v3537_v15 = vmul.f32 0.5, %v3529_v2 }
0x13b5   :  { %v3542_v5 = vmul.f32 %v3540_v3, %v3534_v0 }
0x13b6   :  { %v3541_v6 = vmul.f32 %v3539_v4, %v3529_v2 }
0x13b7   :  { %v3544_v37 = vmul.f32 0.044715, %v3542_v5 }
0x13b8   :  { %v3543_v7 = vmul.f32 0.044715, %v3541_v6 }
0x13b9   :  { %v3546_v8 = vadd.f32 %v3544_v37, %v3534_v0 }
0x13ba   :  { %v3545_v9 = vadd.f32 %v3543_v7, %v3529_v2 }
0x13bb   :  { %v3548_v10 = vmul.f32 0.7978846, %v3546_v8 }
0x13bc   :  { %v3547_v11 = vmul.f32 0.7978846, %v3545_v9 }
0x13bd   :  { %8391 = vtanh.f32 %v3548_v10 }
0x13be   :  { %8393 = vtanh.f32 %v3547_v11 }
0x13c7   :  { %v8392_v13 = vpop.eup %8391 }
0x13c8   :  { %v8394_v14 = vpop.eup %8393  ;;  %v3552_v38 = vadd.f32 1.0, %v8392_v13 }
0x13c9   :  { %v3551_v16 = vadd.f32 1.0, %v8394_v14 }
0x13ca   :  { %v3554_v18 = vmul.f32 %v3552_v38, %v3538_v50 }
0x13cb   :  { %v3553_v17 = vmul.f32 %v3551_v16, %v3537_v15 }
0x13cd   :  { %7908 = vmatprep.mubr.msk.f32.mxu1 %vm1813_vm12, %v3553_v17 }
0x13ce   :  { %7909 = vmatmul.mubr.msk.f32.vlgmr.msra.gmra.mrb[34].mxu1 %vm1813_vm12, %v3554_v18 }
0x13cf   :  { %7929 = vmatprep.mubr.msk.f32.mxu1 %vm8537_vm7, %v8536_v12 }
0x14a1   :  { %v7910_v20 = vpop.f32.mrb[34].mxu1 }
0x14a2   :  { %v3650_v21 = vadd.f32 %v7910_v20, %v7332_v19  ;;  %v3644_v41 = vpop.f32.mrb[35].mxu1 }
0x14a3   :  { %v3645_v22 = vadd.f32 %v7332_v19, %v3644_v41 }
0x14a4   :  { %v3654_v23 = vadd.f32 %v3650_v21, %v3442_v47 }
0x14a5   :  { %v3653_v51 = vadd.f32 %v3645_v22, %v9146_v36  ;;  %v3702_v36 = vld [vmem:[%s9765_s5 + $0x8] sm:$0xff] }
0x14a6   :  { %v3662_v24 = vsel %vm101_vm2, %v3654_v23, 0.0  ;;  %v8225_v40 = vpack.c.bf16 %v3702_v36, %v3701_v35 }
0x14a7   :  { %3663 = vadd.xlane.f32.xlu0 %v3662_v24  ;;  %v3659_v25 = vsel %vm101_vm2, %v3653_v51, 0.0 }
0x14a8   :  { %3660 = vadd.xlane.f32.xlu1 %v3659_v25  ;;  %8226 = vmatprep.subr.bf16.mxu0 %v8225_v40 }
0x14a9   :  { %8228 = vmatpush3.bf16.msra.mxu0 %v8225_v40 }
0x14aa   :  { %8230 = vmatprep.subr.bf16.mxu0 %v8229_v44 }
0x14ad   :  { %8232 = vmatpush3.bf16.msra.mxu0 %v8229_v44 }
0x14ae   :  { %7922 = vmatprep.subr.mxu0 %v8536_v12 }
0x1534   :  { %v3664_v26 = vpop.xlane.xlu0 %3663 }
0x1535   :  { %v3666_v55 = vmul.f32 0.03125, %v3664_v26  ;;  %v3661_v27 = vpop.xlane.xlu1 %3660 }
0x1536   :  { %v3665_v28 = vmul.f32 0.03125, %v3661_v27 }
0x1537   :  { %v3668_v29 = vsub.f32 %v3654_v23, %v3666_v55 }
0x1538   :  { %v3667_v30 = vsub.f32 %v3653_v51, %v3665_v28 }
0x1539   :  { %v3670_v31 = vmul.f32 %v3668_v29, %v3668_v29 }
0x153a   :  { %v3669_v32 = vmul.f32 %v3667_v30, %v3667_v30 }
0x153b   :  { %v3674_v33 = vsel %vm101_vm2, %v3670_v31, 0.0 }
0x153c   :  { %3675 = vadd.xlane.f32.xlu0 %v3674_v33  ;;  %v3671_v34 = vsel %vm101_vm2, %v3669_v32, 0.0 }
0x153d   :  { %3672 = vadd.xlane.f32.xlu1 %v3671_v34 }
0x15c9   :  { %v3676_v45 = vpop.xlane.xlu0 %3675 }
0x15ca   :  { %v3678_v46 = vmul.f32 0.03125, %v3676_v45  ;;  %v3673_v47 = vpop.xlane.xlu1 %3672 }
0x15cb   :  { %v3677_v48 = vmul.f32 0.03125, %v3673_v47 }
0x15cc   :  { %v3680_v49 = vadd.f32 1e-05, %v3678_v46 }
0x15cd   :  { %v3679_v52 = vadd.f32 1e-05, %v3677_v48 }
0x15ce   :  { %8395 = vrsqrt.f32 %v3680_v49 }
0x15cf   :  { %8397 = vrsqrt.f32 %v3679_v52 }
0x15d8   :  { %v8396_v53 = vpop.eup %8395 }
0x15d9   :  { %v8398_v56 = vpop.eup %8397  ;;  %v3684_v57 = vmul.f32 %v8396_v53, %v3668_v29 }
0x15da   :  { %v3683_v43 = vmul.f32 %v8398_v56, %v3667_v30 }
0x15db   :  { %v3692_v59 = vmul.f32 %v7337_v54, %v3684_v57 }
0x15dc   :  { %v3691_v60 = vmul.f32 %v7337_v54, %v3683_v43 }
0x15dd   :  { %v9212_v62 = vadd.f32 %v7338_v58, %v3692_v59 }
0x15de   :  { %v9210_v61 = vadd.f32 %v7338_v58, %v3691_v60 }
0x15e0   :  { %7919 = vmatprep.mubr.msk.f32.mxu0 %vm101_vm2, %v9210_v61 }
0x15e1   :  { %7920 = vmatmul.mubr.msk.f32.vlgmr.msra.gmra.mrb[42].mxu0 %vm101_vm2, %v9212_v62 }
0x15e2   :  { %7924 = vmatprep.mubr.msk.f32.mxu0 %vm8537_vm7, %v8536_v12 }
0x16b4   :  { %v7921_v0 = vpop.f32.mrb[42].mxu0 }
0x16b5   :  { %v3784_v1 = vpop.f32.mrb[43].mxu0  ;;  %v9237_v3 = vadd.f32 %v7921_v0, %v7339_v63 }
0x16b6   :  { %v9223_v2 = vadd.f32 %v7339_v63, %v3784_v1 }
0x16b8   :  { %3961 = vrot.lane.b32.xlu0 %v9223_v2, %s8539_s21  ;;  %3794 = vrot.lane.b32.xlu1 %v9223_v2, %s8538_s20 }
0x16bc   :  { %4130 = vrot.lane.b32.xlu0 %v9223_v2, %s8541_s2  ;;  %3959 = vrot.lane.b32.xlu1 %v9223_v2, %s8540_s22 }
0x16c0   :  { %4301 = vrot.lane.b32.xlu0 %v9223_v2, %s8542_s23  ;;  %4132 = vrot.lane.b32.xlu1 %v9223_v2, %s9794_s24 }
0x16c4   :  { %4640 = vrot.lane.b32.xlu0 %v9237_v3, %s8539_s21  ;;  %4303 = vrot.lane.b32.xlu1 %v9223_v2, %s9792_s25 }
0x16c8   :  { %4811 = vrot.lane.b32.xlu0 %v9237_v3, %s9794_s24  ;;  %4473 = vrot.lane.b32.xlu1 %v9237_v3, %s8538_s20 }
0x16cc   :  { %4982 = vrot.lane.b32.xlu0 %v9237_v3, %s9792_s25  ;;  %4638 = vrot.lane.b32.xlu1 %v9237_v3, %s8540_s22  ;;  %s9805_s25 = smov 72  }
0x16d0   :  { %3882 = vrot.lane.b32.xlu0 %v9223_v2, %s9790_s1  ;;  %4809 = vrot.lane.b32.xlu1 %v9237_v3, %s8541_s2 }
0x16d4   :  { %4980 = vrot.lane.b32.xlu1 %v9237_v3, %s8542_s23 }
0x16d8   :  { %4049 = vrot.lane.b32.xlu1 %v9223_v2, %s9801_s29 }
0x172a   :  { %v3962_v4 = vpop.permute.xlu0 %3961  ;;  %v3795_v5 = vpop.permute.xlu1 %3794 }
0x172b   :  { %7923 = vmatpush3.xpose.msk.msra.mxu0 %vm280_vm8, %v3795_v5 }
0x172c   :  { %7932 = vmatprep.subr.mxu0 %v8536_v12 }
0x172e   :  { %v4131_v6 = vpop.permute.xlu0 %4130  ;;  %7925 = vmatmul.mubr.msk.f32.vlgmr.msra.gmra.mrb[44].mxu0 %vm280_vm8, %v9223_v2  ;;  %v3960_v37 = vpop.permute.xlu1 %3959 }
0x172f   :  { %7933 = vmatpush3.xpose.msk.msra.mxu0 %vm280_vm8, %v3962_v4  ;;  %7934 = vmatprep.mubr.msk.f32.mxu0 %vm8537_vm7, %v8536_v12 }
0x1730   :  { %7942 = vmatprep.subr.mxu0 %v8536_v12 }
0x1732   :  { %v4302_v7 = vpop.permute.xlu0 %4301  ;;  %7935 = vmatmul.mubr.msk.f32.vlgmr.msra.gmra.mrb[46].mxu0 %vm280_vm8, %v3960_v37  ;;  %v4133_v8 = vpop.permute.xlu1 %4132 }
0x1733   :  { %7943 = vmatpush3.xpose.msk.msra.mxu0 %vm280_vm8, %v4133_v8  ;;  %7944 = vmatprep.mubr.msk.f32.mxu0 %vm8537_vm7, %v8536_v12 }
0x1734   :  { %7952 = vmatprep.subr.mxu0 %v8536_v12 }
0x1736   :  { %v4641_v9 = vpop.permute.xlu0 %4640  ;;  %7945 = vmatmul.mubr.msk.f32.vlgmr.msra.gmra.mrb[48].mxu0 %vm280_vm8, %v4131_v6  ;;  %v4304_v10 = vpop.permute.xlu1 %4303 }
0x1737   :  { %7953 = vmatpush3.xpose.msk.msra.mxu0 %vm280_vm8, %v4304_v10  ;;  %7954 = vmatprep.mubr.msk.f32.mxu0 %vm8537_vm7, %v8536_v12 }
0x1738   :  { %7962 = vmatprep.subr.mxu0 %v8536_v12 }
0x173a   :  { %v4812_v11 = vpop.permute.xlu0 %4811  ;;  %7955 = vmatmul.mubr.msk.f32.vlgmr.msra.gmra.mrb[50].mxu0 %vm280_vm8, %v4302_v7  ;;  %v4474_v13 = vpop.permute.xlu1 %4473 }
0x173b   :  { %7963 = vmatpush3.xpose.msk.msra.mxu0 %vm280_vm8, %v4474_v13  ;;  %7964 = vmatprep.mubr.msk.f32.mxu0 %vm8537_vm7, %v8536_v12 }
0x173c   :  { %7972 = vmatprep.subr.mxu0 %v8536_v12 }
0x173e   :  { %v4983_v14 = vpop.permute.xlu0 %4982  ;;  %7965 = vmatmul.mubr.msk.f32.vlgmr.msra.gmra.mrb[52].mxu0 %vm280_vm8, %v9237_v3  ;;  %v4639_v38 = vpop.permute.xlu1 %4638 }
0x173f   :  { %7973 = vmatpush3.xpose.msk.msra.mxu0 %vm280_vm8, %v4641_v9  ;;  %7974 = vmatprep.mubr.msk.f32.mxu0 %vm8537_vm7, %v8536_v12 }
0x1740   :  { %7982 = vmatprep.subr.mxu0 %v8536_v12 }
0x1742   :  { %v3883_v15 = vpop.permute.xlu0 %3882  ;;  %7975 = vmatmul.mubr.msk.f32.vlgmr.msra.gmra.mrb[54].mxu0 %vm280_vm8, %v4639_v38  ;;  %v4810_v16 = vpop.permute.xlu1 %4809 }
0x1743   :  { %7928 = vmatpush3.msra.mxu1 %v3883_v15  ;;  %7983 = vmatpush3.xpose.msk.msra.mxu0 %vm280_vm8, %v4812_v11 }
0x1744   :  { %7984 = vmatprep.mubr.msk.f32.mxu0 %vm8537_vm7, %v8536_v12  ;;  %7992 = vmatprep.subr.mxu0 %v8536_v12 }
0x1745   :  { %7937 = vmatprep.subr.mxu1 %v8536_v12 }
0x1746   :  { %7985 = vmatmul.mubr.msk.f32.vlgmr.msra.gmra.mrb[56].mxu0 %vm280_vm8, %v4810_v16  ;;  %v4981_v50 = vpop.permute.xlu1 %4980 }
0x1747   :  { %7993 = vmatpush3.xpose.msk.msra.mxu0 %vm280_vm8, %v4983_v14  ;;  %7994 = vmatprep.mubr.msk.f32.mxu0 %vm8537_vm7, %v8536_v12 }
0x174a   :  { %7995 = vmatmul.mubr.msk.f32.vlgmr.msra.gmra.mrb[58].mxu0 %vm280_vm8, %v4981_v50  ;;  %v9311_v52 = vpop.permute.xlu1 %4049 }
0x1801   :  { %v3866_v17 = vpop.f32.mrb[44].mxu0 }
0x1802   :  { %v3870_v18 = vmul.f32 0.35355338, %v3866_v17  ;;  %v7926_v19 = vpop.f32.mrb[45].mxu0 }
0x1804   :  { %v3871_v20 = vsel %vm280_vm8, %v3870_v18, -inf }
0x1805   :  { %3872 = vmax.xlane.f32.xlu0 %v3871_v20  ;;  %v4033_v21 = vpop.f32.mrb[46].mxu0 }
0x1806   :  { %v4037_v41 = vmul.f32 0.35355338, %v4033_v21  ;;  %v7936_v22 = vpop.f32.mrb[47].mxu0 }
0x1808   :  { %v4038_v23 = vsel %vm280_vm8, %v4037_v41, -inf }
0x1809   :  { %4039 = vmax.xlane.f32.xlu1 %v4038_v23  ;;  %v4204_v51 = vpop.f32.mrb[48].mxu0 }
0x180a   :  { %v4208_v24 = vmul.f32 0.35355338, %v4204_v51  ;;  %v7946_v25 = vpop.f32.mrb[49].mxu0 }
0x180c   :  { %v4209_v26 = vsel %vm280_vm8, %v4208_v24, -inf }
0x180d   :  { %4210 = vmax.xlane.f32.xlu0 %v4209_v26  ;;  %v4375_v55 = vpop.f32.mrb[50].mxu0 }
0x180e   :  { %v4379_v27 = vmul.f32 0.35355338, %v4375_v55  ;;  %v7956_v28 = vpop.f32.mrb[51].mxu0 }
0x1810   :  { %v4380_v29 = vsel %vm280_vm8, %v4379_v27, -inf }
0x1811   :  { %4381 = vmax.xlane.f32.xlu0 %v4380_v29  ;;  %v4545_v30 = vpop.f32.mrb[52].mxu0 }
0x1812   :  { %v4549_v31 = vmul.f32 0.35355338, %v4545_v30  ;;  %v7966_v32 = vpop.f32.mrb[53].mxu0 }
0x1814   :  { %v4550_v33 = vsel %vm280_vm8, %v4549_v31, -inf }
0x1815   :  { %4551 = vmax.xlane.f32.xlu1 %v4550_v33  ;;  %v4712_v34 = vpop.f32.mrb[54].mxu0 }
0x1816   :  { %v4716_v35 = vmul.f32 0.35355338, %v4712_v34  ;;  %v7976_v36 = vpop.f32.mrb[55].mxu0 }
0x1818   :  { %v4717_v39 = vsel %vm280_vm8, %v4716_v35, -inf }
0x1819   :  { %4718 = vmax.xlane.f32.xlu0 %v4717_v39  ;;  %v4883_v40 = vpop.f32.mrb[56].mxu0 }
0x181a   :  { %v4887_v42 = vmul.f32 0.35355338, %v4883_v40  ;;  %v7986_v44 = vpop.f32.mrb[57].mxu0 }
0x181c   :  { %v4888_v45 = vsel %vm280_vm8, %v4887_v42, -inf }
0x181d   :  { %4889 = vmax.xlane.f32.xlu1 %v4888_v45  ;;  %v5054_v46 = vpop.f32.mrb[58].mxu0 }
0x181e   :  { %v5058_v47 = vmul.f32 0.35355338, %v5054_v46  ;;  %v7996_v48 = vpop.f32.mrb[59].mxu0 }
0x1820   :  { %v5059_v49 = vsel %vm280_vm8, %v5058_v47, -inf }
0x1821   :  { %5060 = vmax.xlane.f32.xlu0 %v5059_v49 }
0x182e   :  { %4391 = vrot.lane.b32.xlu1 %v9223_v2, %s9802_s30 }
0x1837   :  { %4220 = vrot.lane.b32.xlu0 %v9223_v2, %s9803_s18 }
0x1892   :  { %v3873_v53 = vpop.xlane.xlu0 %3872 }
0x1893   :  { %v3874_v54 = vsub.f32 %v3870_v18, %v3873_v53 }
0x1895   :  { %v3875_v56 = vmul.f32 1.442695, %v3874_v54 }
0x1896   :  { %v4040_v57 = vpop.xlane.xlu1 %4039 }
0x1897   :  { %8399 = vpow2.f32 %v3875_v56  ;;  %v4041_v43 = vsub.f32 %v4037_v41, %v4040_v57 }
0x1899   :  { %v4042_v58 = vmul.f32 1.442695, %v4041_v43 }
0x189a   :  { %v4211_v59 = vpop.xlane.xlu0 %4210 }
0x189b   :  { %8401 = vpow2.f32 %v4042_v58  ;;  %v4212_v60 = vsub.f32 %v4208_v24, %v4211_v59 }
0x189d   :  { %v4213_v63 = vmul.f32 1.442695, %v4212_v60 }
0x189e   :  { %v4382_v0 = vpop.xlane.xlu0 %4381 }
0x189f   :  { %8403 = vpow2.f32 %v4213_v63  ;;  %v4383_v1 = vsub.f32 %v4379_v27, %v4382_v0 }
0x18a1   :  { %v8400_v4 = vpop.eup %8399  ;;  %v4384_v5 = vmul.f32 1.442695, %v4383_v1 }
0x18a2   :  { %v3877_v2 = vsel %vm280_vm8, %v8400_v4, 0.0  ;;  %v4552_v11 = vpop.xlane.xlu1 %4551 }
0x18a3   :  { %8405 = vpow2.f32 %v4384_v5  ;;  %3878 = vadd.xlane.f32.xlu1 %v3877_v2  ;;  %v4553_v13 = vsub.f32 %v4549_v31, %v4552_v11 }
0x18a5   :  { %v8402_v6 = vpop.eup %8401  ;;  %v4554_v16 = vmul.f32 1.442695, %v4553_v13 }
0x18a6   :  { %v4044_v37 = vsel %vm280_vm8, %v8402_v6, 0.0  ;;  %v4719_v14 = vpop.xlane.xlu0 %4718 }
0x18a7   :  { %4045 = vadd.xlane.f32.xlu0 %v4044_v37  ;;  %v4720_v15 = vsub.f32 %v4716_v35, %v4719_v14  ;;  %8407 = vpow2.f32 %v4554_v16 }
0x18a9   :  { %v8404_v7 = vpop.eup %8403  ;;  %v4721_v18 = vmul.f32 1.442695, %v4720_v15 }
0x18aa   :  { %v4215_v8 = vsel %vm280_vm8, %v8404_v7, 0.0  ;;  %v4890_v38 = vpop.xlane.xlu1 %4889 }
0x18ab   :  { %4216 = vadd.xlane.f32.xlu1 %v4215_v8  ;;  %v4891_v50 = vsub.f32 %v4887_v42, %v4890_v38  ;;  %8409 = vpow2.f32 %v4721_v18 }
0x18ad   :  { %v9316_v9 = vpop.eup %8405  ;;  %v4892_v19 = vmul.f32 1.442695, %v4891_v50 }
0x18ae   :  { %v4386_v10 = vsel %vm280_vm8, %v9316_v9, 0.0  ;;  %v5061_v17 = vpop.xlane.xlu0 %5060  ;;  %v4392_v27 = vpop.permute.xlu1 %4391 }
0x18af   :  { %4387 = vadd.xlane.f32.xlu0 %v4386_v10  ;;  %v5062_v20 = vsub.f32 %v5058_v47, %v5061_v17  ;;  %8411 = vpow2.f32 %v4892_v19 }
0x18b1   :  { %v5063_v21 = vmul.f32 1.442695, %v5062_v20  ;;  %v8408_v41 = vpop.eup %8407 }
0x18b2   :  { %v4556_v23 = vsel %vm280_vm8, %v8408_v41, 0.0  ;;  %v4221_v28 = vpop.permute.xlu0 %4220 }
0x18b3   :  { %8413 = vpow2.f32 %v5063_v21 }
0x18b5   :  { %v9324_v22 = vpop.eup %8409 }
0x18b6   :  { %v4723_v24 = vsel %vm280_vm8, %v9324_v22, 0.0 }
0x18b9   :  { %v9327_v51 = vpop.eup %8411 }
0x18ba   :  { %v4894_v25 = vsel %vm280_vm8, %v9327_v51, 0.0 }
0x18bc   :  { %4728 = vrot.lane.b32.xlu1 %v9237_v3, %s9801_s29 }
0x18bd   :  { %v9333_v26 = vpop.eup %8413 }
0x18be   :  { %v5065_v55 = vsel %vm280_vm8, %v9333_v26, 0.0 }
0x18c5   :  { %4561 = vrot.lane.b32.xlu0 %v9237_v3, %s9790_s1 }
0x18e0   :  { %4557 = vadd.xlane.f32.xlu1 %v4556_v23 }
0x18e4   :  { %4724 = vadd.xlane.f32.xlu0 %v4723_v24  ;;  %4895 = vadd.xlane.f32.xlu1 %v4894_v25 }
0x18e8   :  { %5066 = vadd.xlane.f32.xlu1 %v5065_v55 }
0x18f9   :  { %5070 = vrot.lane.b32.xlu1 %v9237_v3, %s9802_s30 }
0x18fa   :  { %4899 = vrot.lane.b32.xlu0 %v9237_v3, %s9803_s18 }
0x1930   :  { %v3879_v29 = vpop.xlane.xlu1 %3878 }
0x1931   :  { %8415 = vrcp.f32 %v3879_v29 }
0x1934   :  { %v4046_v30 = vpop.xlane.xlu0 %4045 }
0x1935   :  { %8417 = vrcp.f32 %v4046_v30 }
0x1938   :  { %v4217_v31 = vpop.xlane.xlu1 %4216 }
0x1939   :  { %8419 = vrcp.f32 %v4217_v31 }
0x193b   :  { %v8416_v32 = vpop.eup %8415 }
0x193c   :  { %v3881_v33 = vmul.f32 %v8416_v32, %v8400_v4  ;;  %v4388_v34 = vpop.xlane.xlu0 %4387  ;;  %v4729_v45 = vpop.permute.xlu1 %4728 }
0x193d   :  { %8421 = vrcp.f32 %v4388_v34 }
0x193e   :  { %7930 = vmatmul.mubr.msk.f32.vlgmr.msra.gmra.mrb[36].mxu1 %vm280_vm8, %v3881_v33  ;;  %v5200_v33 = vld [vmem:[%s9769_s9 + $0x8] sm:$0xff] }
0x193f   :  { %v8418_v35 = vpop.eup %8417  ;;  %7938 = vmatpush3.msra.mxu1 %v9311_v52  ;;  %7939 = vmatprep.mubr.msk.f32.mxu1 %vm8537_vm7, %v8536_v12 }
0x1940   :  { %v4048_v3 = vmul.f32 %v8418_v35, %v8402_v6  ;;  %7947 = vmatprep.subr.mxu1 %v8536_v12  ;;  %v4562_v44 = vpop.permute.xlu0 %4561  ;;  %v5201_v35 = vld [vmem:[%s9769_s9 + $0x10] sm:$0xff] }
0x1942   :  { %7940 = vmatmul.mubr.msk.f32.vlgmr.msra.gmra.mrb[38].mxu1 %vm280_vm8, %v4048_v3  ;;  %v5202_v3 = vld [vmem:[%s9769_s9 + $0x18] sm:$0xff] }
0x1943   :  { %v8420_v36 = vpop.eup %8419  ;;  %7948 = vmatpush3.msra.mxu1 %v4221_v28  ;;  %7949 = vmatprep.mubr.msk.f32.mxu1 %vm8537_vm7, %v8536_v12 }
0x1944   :  { %v4219_v39 = vmul.f32 %v8420_v36, %v8404_v7  ;;  %7957 = vmatprep.subr.mxu1 %v8536_v12  ;;  %v8237_v36 = vpack.c.bf16 %v5202_v3, %v5201_v35 }
0x1946   :  { %7950 = vmatmul.mubr.msk.f32.vlgmr.msra.gmra.mrb[40].mxu1 %vm280_vm8, %v4219_v39 }
0x1947   :  { %v8422_v40 = vpop.eup %8421  ;;  %7958 = vmatpush3.msra.mxu1 %v4392_v27  ;;  %7959 = vmatprep.mubr.msk.f32.mxu1 %vm8537_vm7, %v8536_v12 }
0x1948   :  { %v4390_v42 = vmul.f32 %v8422_v40, %v9316_v9  ;;  %7967 = vmatprep.subr.mxu1 %v8536_v12 }
0x194a   :  { %7960 = vmatmul.mubr.msk.f32.vlgmr.msra.gmra.mrb[42].mxu1 %vm280_vm8, %v4390_v42 }
0x194b   :  { %7968 = vmatpush3.msra.mxu1 %v4562_v44  ;;  %7969 = vmatprep.mubr.msk.f32.mxu1 %vm8537_vm7, %v8536_v12 }
0x194c   :  { %7977 = vmatprep.subr.mxu1 %v8536_v12 }
0x196d   :  { %v4558_v46 = vpop.xlane.xlu1 %4557 }
0x196e   :  { %8423 = vrcp.f32 %v4558_v46 }
0x1971   :  { %v4725_v47 = vpop.xlane.xlu0 %4724  ;;  %v4896_v48 = vpop.xlane.xlu1 %4895 }
0x1972   :  { %8425 = vrcp.f32 %v4725_v47  ;;  %v7367_v47 = vld [vmem:[%s9768_s8] ss:$0 sm:$0xff] }
0x1973   :  { %8427 = vrcp.f32 %v4896_v48 }
0x1975   :  { %v5067_v49 = vpop.xlane.xlu1 %5066  ;;  %v4900_v43 = vpop.permute.xlu0 %4899 }
0x1976   :  { %8429 = vrcp.f32 %v5067_v49 }
0x1978   :  { %v8424_v52 = vpop.eup %8423 }
0x1979   :  { %v4560_v53 = vmul.f32 %v8424_v52, %v8408_v41  ;;  %v5071_v60 = vpop.permute.xlu1 %5070 }
0x197b   :  { %7970 = vmatmul.mubr.msk.f32.vlgmr.msra.gmra.mrb[44].mxu1 %vm280_vm8, %v4560_v53 }
0x197c   :  { %v8426_v54 = vpop.eup %8425  ;;  %7978 = vmatpush3.msra.mxu1 %v4729_v45  ;;  %7979 = vmatprep.mubr.msk.f32.mxu1 %vm8537_vm7, %v8536_v12  ;;  %v7366_v45 = vld [vmem:[%s9767_s7] ss:$0 sm:$0xff] }
0x197d   :  { %v4727_v56 = vmul.f32 %v8426_v54, %v9324_v22  ;;  %7987 = vmatprep.subr.mxu1 %v8536_v12  ;;  %v8428_v57 = vpop.eup %8427 }
0x197e   :  { %v4898_v58 = vmul.f32 %v8428_v57, %v9327_v51 }
0x197f   :  { %7980 = vmatmul.mubr.msk.f32.vlgmr.msra.gmra.mrb[46].mxu1 %vm280_vm8, %v4727_v56 }
0x1980   :  { %7988 = vmatpush3.msra.mxu1 %v4900_v43  ;;  %7989 = vmatprep.mubr.msk.f32.mxu1 %vm8537_vm7, %v8536_v12  ;;  %v8430_v59 = vpop.eup %8429 }
0x1981   :  { %7997 = vmatprep.subr.mxu1 %v8536_v12  ;;  %v5069_v63 = vmul.f32 %v8430_v59, %v9333_v26  ;;  %v5309_v59 = vld [vmem:[%s9771_s11] sm:$0xff] }
0x1983   :  { %7990 = vmatmul.mubr.msk.f32.vlgmr.msra.gmra.mrb[48].mxu1 %vm280_vm8, %v4898_v58 }
0x1984   :  { %7998 = vmatpush3.msra.mxu1 %v5071_v60  ;;  %7999 = vmatprep.mubr.msk.f32.mxu1 %vm8537_vm7, %v8536_v12  ;;  %v5310_v60 = vld [vmem:[%s9771_s11 + $0x8] sm:$0xff] }
0x1987   :  { %8000 = vmatmul.mubr.msk.f32.vlgmr.msra.gmra.mrb[50].mxu1 %vm280_vm8, %v5069_v63  ;;  %v8241_v63 = vpack.c.bf16 %v5310_v60, %v5309_v59 }
0x1989   :  { %8242 = vmatprep.subr.bf16.mxu1 %v8241_v63 }
0x198a   :  { %8244 = vmatpush3.bf16.msra.mxu1 %v8241_v63 }
0x1a11   :  { %v3954_v0 = vpop.f32.mrb[36].mxu1 }
0x1a12   :  { %3958 = vst.msk [vmem:[#allocation2] sm:$0xff] %vm280_vm8, %v3954_v0  ;;  %v7931_v1 = vpop.f32.mrb[37].mxu1  ;;  %v5311_v0 = vld [vmem:[%s9771_s11 + $0x10] sm:$0xff] }
0x1a13   :  { %v5312_v1 = vld [vmem:[%s9771_s11 + $0x18] sm:$0xff] }
0x1a15   :  { %v4121_v4 = vpop.f32.mrb[38].mxu1 }
0x1a16   :  { %4126 = vrot.lane.b32.xlu0 %v4121_v4, %s9798_s3  ;;  %v7941_v5 = vpop.f32.mrb[39].mxu1  ;;  %v8245_v4 = vpack.c.bf16 %v5312_v1, %v5311_v0  ;;  %v7374_v1 = vld [vmem:[%s9773_s13] ss:$0 sm:$0xff] }
0x1a17   :  { %v5313_v5 = vld [vmem:[%s9771_s11 + $0x20] sm:$0xff] }
0x1a18   :  { %8246 = vmatprep.subr.bf16.mxu1 %v8245_v4 }
0x1a19   :  { %v4292_v2 = vpop.f32.mrb[40].mxu1  ;;  %8248 = vmatpush3.bf16.msra.mxu1 %v8245_v4 }
0x1a1a   :  { %4297 = vrot.lane.b32.xlu1 %v4292_v2, %s9799_s4  ;;  %v7951_v6 = vpop.f32.mrb[41].mxu1  ;;  %v5314_v2 = vld [vmem:[%s9771_s11 + $0x28] sm:$0xff] }
0x1a1b   :  { %v8249_v6 = vpack.c.bf16 %v5314_v2, %v5313_v5 }
0x1a1d   :  { %v4463_v37 = vpop.f32.mrb[42].mxu1  ;;  %8250 = vmatprep.subr.bf16.mxu1 %v8249_v6 }
0x1a1e   :  { %4468 = vrot.lane.b32.xlu1 %v4463_v37, %s9800_s17  ;;  %v7961_v7 = vpop.f32.mrb[43].mxu1  ;;  %8252 = vmatpush3.bf16.msra.mxu1 %v8249_v6  ;;  %v5315_v37 = vld [vmem:[%s9771_s11 + $0x30] sm:$0xff]  ;;  %v7375_v6 = vld [vmem:[%s9774_s14] ss:$0 sm:$0xff] }
0x1a1f   :  { %v5316_v7 = vld [vmem:[%s9771_s11 + $0x38] sm:$0xff] }
0x1a4e   :  { %v4633_v8 = vpop.f32.mrb[44].mxu1 }
0x1a4f   :  { %4637 = vst.msk [vmem:[#allocation2 + $0x8] sm:$0xff] %vm280_vm8, %v4633_v8  ;;  %v7971_v9 = vpop.f32.mrb[45].mxu1  ;;  %v8253_v8 = vpack.c.bf16 %v5316_v7, %v5315_v37 }
0x1a50   :  { %v7368_v9 = vld [vmem:[%s9770_s10] ss:$0 sm:$0xff] }
0x1a51   :  { %8254 = vmatprep.subr.bf16.mxu1 %v8253_v8 }
0x1a52   :  { %v4800_v10 = vpop.f32.mrb[46].mxu1  ;;  %8256 = vmatpush3.bf16.msra.mxu1 %v8253_v8 }
0x1a53   :  { %4805 = vrot.lane.b32.xlu0 %v4800_v10, %s9798_s3  ;;  %v7981_v11 = vpop.f32.mrb[47].mxu1  ;;  %8048 = vmatprep.subr.mxu1 %v8536_v12 }
0x1a56   :  { %v4971_v13 = vpop.f32.mrb[48].mxu1 }
0x1a57   :  { %4976 = vrot.lane.b32.xlu0 %v4971_v13, %s9799_s4  ;;  %v7991_v14 = vpop.f32.mrb[49].mxu1 }
0x1a5a   :  { %v5142_v38 = vpop.f32.mrb[50].mxu1 }
0x1a5b   :  { %5147 = vrot.lane.b32.xlu1 %v5142_v38, %s9800_s17  ;;  %v8001_v15 = vpop.f32.mrb[51].mxu1 }
0x1a88   :  { %v4127_v16 = vpop.permute.xlu0 %4126 }
0x1a89   :  { %4129 = vst.msk [vmem:[#allocation2] sm:$0xff] %vm614_vm9, %v4127_v16 }
0x1a8c   :  { %v4298_v50 = vpop.permute.xlu1 %4297 }
0x1a8d   :  { %4300 = vst.msk [vmem:[#allocation2] sm:$0xff] %vm786_vm10, %v4298_v50 }
0x1a90   :  { %v4469_v17 = vpop.permute.xlu1 %4468 }
0x1a91   :  { %4471 = vst.msk [vmem:[#allocation2] sm:$0xff] %vm958_vm11, %v4469_v17 }
0x1a98   :  { %v5151_v18 = vld [vmem:[#allocation2] sm:$0xff] }
0x1a99   :  { %v5153_v19 = vadd.f32 %v5151_v18, %v9210_v61 }
0x1a9b   :  { %v5157_v20 = vsel %vm101_vm2, %v5153_v19, 0.0 }
0x1a9c   :  { %5158 = vadd.xlane.f32.xlu0 %v5157_v20 }
0x1ac5   :  { %v4806_v21 = vpop.permute.xlu0 %4805 }
0x1ac6   :  { %4808 = vst.msk [vmem:[#allocation2 + $0x8] sm:$0xff] %vm614_vm9, %v4806_v21 }
0x1ac9   :  { %v4977_v41 = vpop.permute.xlu0 %4976 }
0x1aca   :  { %4979 = vst.msk [vmem:[#allocation2 + $0x8] sm:$0xff] %vm786_vm10, %v4977_v41 }
0x1acd   :  { %v5148_v22 = vpop.permute.xlu1 %5147 }
0x1ace   :  { %5150 = vst.msk [vmem:[#allocation2 + $0x8] sm:$0xff] %vm958_vm11, %v5148_v22 }
0x1ad5   :  { %v5152_v23 = vld [vmem:[#allocation2 + $0x8] sm:$0xff] }
0x1ad6   :  { %v5154_v51 = vadd.f32 %v5152_v23, %v9212_v62  ;;  %v5199_v62 = vld [vmem:[%s9769_s9] sm:$0xff] }
0x1ad7   :  { %v8233_v34 = vpack.c.bf16 %v5200_v33, %v5199_v62 }
0x1ad8   :  { %v5160_v24 = vsel %vm101_vm2, %v5154_v51, 0.0 }
0x1ad9   :  { %5161 = vadd.xlane.f32.xlu1 %v5160_v24  ;;  %8234 = vmatprep.subr.bf16.mxu0 %v8233_v34 }
0x1ada   :  { %8236 = vmatpush3.bf16.msra.mxu0 %v8233_v34 }
0x1adb   :  { %8238 = vmatprep.subr.bf16.mxu0 %v8237_v36 }
0x1ade   :  { %8240 = vmatpush3.bf16.msra.mxu0 %v8237_v36 }
0x1b29   :  { %v5159_v25 = vpop.xlane.xlu0 %5158 }
0x1b2a   :  { %v5163_v61 = vmul.f32 0.03125, %v5159_v25 }
0x1b2c   :  { %v5165_v26 = vsub.f32 %v5153_v19, %v5163_v61 }
0x1b2e   :  { %v5167_v55 = vmul.f32 %v5165_v26, %v5165_v26 }
0x1b30   :  { %v5169_v27 = vsel %vm101_vm2, %v5167_v55, 0.0 }
0x1b31   :  { %5170 = vadd.xlane.f32.xlu0 %v5169_v27  ;;  %v7371_v27 = vld [vmem:[%s9772_s12] ss:$0 sm:$0xff] }
0x1b66   :  { %v5162_v28 = vpop.xlane.xlu1 %5161 }
0x1b67   :  { %v5164_v29 = vmul.f32 0.03125, %v5162_v28 }
0x1b69   :  { %v5166_v30 = vsub.f32 %v5154_v51, %v5164_v29 }
0x1b6b   :  { %v5168_v31 = vmul.f32 %v5166_v30, %v5166_v30 }
0x1b6d   :  { %v5172_v32 = vsel %vm101_vm2, %v5168_v31, 0.0 }
0x1b6e   :  { %5173 = vadd.xlane.f32.xlu0 %v5172_v32 }
0x1bbe   :  { %v5171_v39 = vpop.xlane.xlu0 %5170 }
0x1bbf   :  { %v5175_v40 = vmul.f32 0.03125, %v5171_v39 }
0x1bc1   :  { %v5177_v42 = vadd.f32 1e-05, %v5175_v40 }
0x1bc3   :  { %8431 = vrsqrt.f32 %v5177_v42 }
0x1bcd   :  { %v8432_v44 = vpop.eup %8431 }
0x1bce   :  { %v5181_v46 = vmul.f32 %v8432_v44, %v5165_v26 }
0x1bd0   :  { %v5189_v48 = vmul.f32 %v7366_v45, %v5181_v46 }
0x1bd2   :  { %v9412_v49 = vadd.f32 %v7367_v47, %v5189_v48  ;;  %v7376_v48 = vld [vmem:[%s9765_s5 + $0x20] sm:$0xff] }
0x1bd4   :  { %8010 = vmatprep.mubr.msk.f32.mxu0 %vm101_vm2, %v9412_v49 }
0x1bfb   :  { %v5174_v52 = vpop.xlane.xlu0 %5173 }
0x1bfc   :  { %v5176_v53 = vmul.f32 0.03125, %v5174_v52 }
0x1bfe   :  { %v5178_v54 = vadd.f32 1e-05, %v5176_v53  ;;  %v7378_v53 = vld [vmem:[%s9765_s5 + $0x30] sm:$0xff] }
0x1c00   :  { %8433 = vrsqrt.f32 %v5178_v54  ;;  %v7379_v54 = vld [vmem:[%s9765_s5 + $0x38] sm:$0xff] }
0x1c0a   :  { %v8434_v56 = vpop.eup %8433 }
0x1c0b   :  { %v5182_v57 = vmul.f32 %v8434_v56, %v5166_v30  ;;  %v8261_v56 = vpack.c.bf16 %v7379_v54, %v7378_v53 }
0x1c0d   :  { %v5190_v43 = vmul.f32 %v7366_v45, %v5182_v57 }
0x1c0f   :  { %v5198_v58 = vadd.f32 %v7367_v47, %v5190_v43 }
0x1c11   :  { %8011 = vmatmul.mubr.msk.f32.vlgmr.msra.gmra.mrb[60].mxu0 %vm101_vm2, %v5198_v58 }
0x1ce4   :  { %v8012_v10 = vpop.f32.mrb[60].mxu0 }
0x1ce5   :  { %v5288_v11 = vadd.f32 %v8012_v10, %v7368_v9  ;;  %v5282_v13 = vpop.f32.mrb[61].mxu0  ;;  %v7381_v10 = vld [vmem:[%s9766_s6 + $0x1] ss:$0 sm:$0xff]  ;;  %s9804_s6 = smov 80  }
0x1ce6   :  { %v5283_v14 = vadd.f32 %v7368_v9, %v5282_v13 }
0x1ce7   :  { %v5294_v38 = vmul.f32 %v5288_v11, %v5288_v11  ;;  %v5292_v61 = vmul.f32 0.5, %v5288_v11 }
0x1ce8   :  { %v5293_v15 = vmul.f32 %v5283_v14, %v5283_v14  ;;  %v5291_v24 = vmul.f32 0.5, %v5283_v14 }
0x1ce9   :  { %v5296_v16 = vmul.f32 %v5294_v38, %v5288_v11 }
0x1cea   :  { %v5295_v50 = vmul.f32 %v5293_v15, %v5283_v14 }
0x1ceb   :  { %v5298_v17 = vmul.f32 0.044715, %v5296_v16 }
0x1cec   :  { %v5297_v18 = vmul.f32 0.044715, %v5295_v50 }
0x1ced   :  { %v5300_v19 = vadd.f32 %v5298_v17, %v5288_v11 }
0x1cee   :  { %v5299_v20 = vadd.f32 %v5297_v18, %v5283_v14 }
0x1cef   :  { %v5302_v21 = vmul.f32 0.7978846, %v5300_v19 }
0x1cf0   :  { %v5301_v41 = vmul.f32 0.7978846, %v5299_v20 }
0x1cf1   :  { %8435 = vtanh.f32 %v5302_v21 }
0x1cf2   :  { %8437 = vtanh.f32 %v5301_v41 }
0x1cfb   :  { %v8436_v22 = vpop.eup %8435 }
0x1cfc   :  { %v8438_v23 = vpop.eup %8437  ;;  %v5306_v51 = vadd.f32 1.0, %v8436_v22 }
0x1cfd   :  { %v5305_v25 = vadd.f32 1.0, %v8438_v23 }
0x1cfe   :  { %v5308_v55 = vmul.f32 %v5306_v51, %v5292_v61 }
0x1cff   :  { %v5307_v26 = vmul.f32 %v5305_v25, %v5291_v24 }
0x1d01   :  { %8029 = vmatprep.mubr.msk.f32.mxu1 %vm1813_vm12, %v5307_v26 }
0x1d02   :  { %8030 = vmatmul.mubr.msk.f32.vlgmr.msra.gmra.mrb[52].mxu1 %vm1813_vm12, %v5308_v55 }
0x1d03   :  { %8050 = vmatprep.mubr.msk.f32.mxu1 %vm8537_vm7, %v8536_v12 }
0x1dd5   :  { %v8031_v28 = vpop.f32.mrb[52].mxu1 }
0x1dd6   :  { %v5402_v29 = vadd.f32 %v8031_v28, %v7371_v27  ;;  %v5396_v30 = vpop.f32.mrb[53].mxu1 }
0x1dd7   :  { %v5397_v31 = vadd.f32 %v7371_v27, %v5396_v30 }
0x1dd8   :  { %v5406_v32 = vadd.f32 %v5402_v29, %v5198_v58 }
0x1dd9   :  { %v5405_v62 = vadd.f32 %v5397_v31, %v9412_v49  ;;  %v7377_v49 = vld [vmem:[%s9765_s5 + $0x28] sm:$0xff] }
0x1dda   :  { %v5412_v33 = vsel %vm101_vm2, %v5406_v32, 0.0  ;;  %v8257_v52 = vpack.c.bf16 %v7377_v49, %v7376_v48 }
0x1ddb   :  { %5413 = vadd.xlane.f32.xlu0 %v5412_v33  ;;  %v5409_v34 = vsel %vm101_vm2, %v5405_v62, 0.0 }
0x1ddc   :  { %5410 = vadd.xlane.f32.xlu1 %v5409_v34  ;;  %8258 = vmatprep.subr.bf16.mxu0 %v8257_v52 }
0x1ddd   :  { %8260 = vmatpush3.bf16.msra.mxu0 %v8257_v52 }
0x1dde   :  { %8262 = vmatprep.subr.bf16.mxu0 %v8261_v56 }
0x1de1   :  { %8264 = vmatpush3.bf16.msra.mxu0 %v8261_v56 }
0x1de2   :  { %8043 = vmatprep.subr.mxu0 %v8536_v12 }
0x1e68   :  { %v5414_v35 = vpop.xlane.xlu0 %5413 }
0x1e69   :  { %v5416_v3 = vmul.f32 0.03125, %v5414_v35  ;;  %v5411_v36 = vpop.xlane.xlu1 %5410 }
0x1e6a   :  { %v5415_v39 = vmul.f32 0.03125, %v5411_v36 }
0x1e6b   :  { %v5418_v40 = vsub.f32 %v5406_v32, %v5416_v3 }
0x1e6c   :  { %v5417_v42 = vsub.f32 %v5405_v62, %v5415_v39 }
0x1e6d   :  { %v5420_v44 = vmul.f32 %v5418_v40, %v5418_v40 }
0x1e6e   :  { %v5419_v45 = vmul.f32 %v5417_v42, %v5417_v42 }
0x1e6f   :  { %v5424_v46 = vsel %vm101_vm2, %v5420_v44, 0.0 }
0x1e70   :  { %5425 = vadd.xlane.f32.xlu0 %v5424_v46  ;;  %v5421_v47 = vsel %vm101_vm2, %v5419_v45, 0.0 }
0x1e71   :  { %5422 = vadd.xlane.f32.xlu1 %v5421_v47 }
0x1efd   :  { %v5426_v57 = vpop.xlane.xlu0 %5425 }
0x1efe   :  { %v5428_v43 = vmul.f32 0.03125, %v5426_v57  ;;  %v5423_v58 = vpop.xlane.xlu1 %5422 }
0x1eff   :  { %v5427_v59 = vmul.f32 0.03125, %v5423_v58 }
0x1f00   :  { %v5430_v60 = vadd.f32 1e-05, %v5428_v43 }
0x1f01   :  { %v5429_v63 = vadd.f32 1e-05, %v5427_v59 }
0x1f02   :  { %8439 = vrsqrt.f32 %v5430_v60 }
0x1f03   :  { %8441 = vrsqrt.f32 %v5429_v63 }
0x1f0c   :  { %v8440_v0 = vpop.eup %8439 }
0x1f0d   :  { %v8442_v4 = vpop.eup %8441  ;;  %v5434_v5 = vmul.f32 %v8440_v0, %v5418_v40 }
0x1f0e   :  { %v5433_v2 = vmul.f32 %v8442_v4, %v5417_v42 }
0x1f0f   :  { %v5442_v37 = vmul.f32 %v7374_v1, %v5434_v5 }
0x1f10   :  { %v5441_v7 = vmul.f32 %v7374_v1, %v5433_v2 }
0x1f11   :  { %v9478_v9 = vadd.f32 %v7375_v6, %v5442_v37 }
0x1f12   :  { %v9476_v8 = vadd.f32 %v7375_v6, %v5441_v7 }
0x1f14   :  { %8040 = vmatprep.mubr.msk.f32.mxu0 %vm101_vm2, %v9476_v8 }
0x1f15   :  { %8041 = vmatmul.mubr.msk.f32.vlgmr.msra.gmra.mrb[62].mxu0 %vm101_vm2, %v9478_v9 }
0x1f16   :  { %8045 = vmatprep.mubr.msk.f32.mxu0 %vm8537_vm7, %v8536_v12 }
0x1fe8   :  { %v8042_v11 = vpop.f32.mrb[62].mxu0 }
0x1fe9   :  { %v5534_v13 = vpop.f32.mrb[63].mxu0  ;;  %v9503_v38 = vadd.f32 %v8042_v11, %v7381_v10 }
0x1fea   :  { %v9489_v14 = vadd.f32 %v7381_v10, %v5534_v13 }
0x1fec   :  { %5711 = vrot.lane.b32.xlu0 %v9489_v14, %s8539_s21  ;;  %5544 = vrot.lane.b32.xlu1 %v9489_v14, %s8538_s20 }
0x1ff0   :  { %5880 = vrot.lane.b32.xlu0 %v9489_v14, %s8541_s2  ;;  %5709 = vrot.lane.b32.xlu1 %v9489_v14, %s8540_s22 }
0x1ff4   :  { %6051 = vrot.lane.b32.xlu0 %v9489_v14, %s8542_s23  ;;  %5882 = vrot.lane.b32.xlu1 %v9489_v14, %s9804_s6 }
0x1ff8   :  { %6390 = vrot.lane.b32.xlu0 %v9503_v38, %s8539_s21  ;;  %6053 = vrot.lane.b32.xlu1 %v9489_v14, %s9805_s25 }
0x1ffc   :  { %6561 = vrot.lane.b32.xlu0 %v9503_v38, %s9804_s6  ;;  %6223 = vrot.lane.b32.xlu1 %v9503_v38, %s8538_s20 }
0x2000   :  { %6732 = vrot.lane.b32.xlu0 %v9503_v38, %s9805_s25  ;;  %6388 = vrot.lane.b32.xlu1 %v9503_v38, %s8540_s22 }
0x2004   :  { %5632 = vrot.lane.b32.xlu0 %v9489_v14, %s9806_s27  ;;  %6559 = vrot.lane.b32.xlu1 %v9503_v38, %s8541_s2 }
0x2008   :  { %6730 = vrot.lane.b32.xlu1 %v9503_v38, %s8542_s23 }
0x200c   :  { %5799 = vrot.lane.b32.xlu1 %v9489_v14, %s9801_s29 }
0x205e   :  { %v5712_v15 = vpop.permute.xlu0 %5711  ;;  %v5545_v16 = vpop.permute.xlu1 %5544 }
0x205f   :  { %8044 = vmatpush3.xpose.msk.msra.mxu0 %vm280_vm8, %v5545_v16 }
0x2060   :  { %8053 = vmatprep.subr.mxu0 %v8536_v12 }
0x2062   :  { %v5881_v50 = vpop.permute.xlu0 %5880  ;;  %8046 = vmatmul.mubr.msk.f32.vlgmr.msra.gmra.mrb[64].mxu0 %vm280_vm8, %v9489_v14  ;;  %v5710_v17 = vpop.permute.xlu1 %5709 }
0x2063   :  { %8054 = vmatpush3.xpose.msk.msra.mxu0 %vm280_vm8, %v5712_v15  ;;  %8055 = vmatprep.mubr.msk.f32.mxu0 %vm8537_vm7, %v8536_v12 }
0x2064   :  { %8063 = vmatprep.subr.mxu0 %v8536_v12 }
0x2066   :  { %v6052_v18 = vpop.permute.xlu0 %6051  ;;  %8056 = vmatmul.mubr.msk.f32.vlgmr.msra.gmra.mrb[66].mxu0 %vm280_vm8, %v5710_v17  ;;  %v5883_v19 = vpop.permute.xlu1 %5882 }
0x2067   :  { %8064 = vmatpush3.xpose.msk.msra.mxu0 %vm280_vm8, %v5883_v19  ;;  %8065 = vmatprep.mubr.msk.f32.mxu0 %vm8537_vm7, %v8536_v12 }
0x2068   :  { %8073 = vmatprep.subr.mxu0 %v8536_v12 }
0x206a   :  { %v6391_v20 = vpop.permute.xlu0 %6390  ;;  %8066 = vmatmul.mubr.msk.f32.vlgmr.msra.gmra.mrb[68].mxu0 %vm280_vm8, %v5881_v50  ;;  %v6054_v21 = vpop.permute.xlu1 %6053 }
0x206b   :  { %8074 = vmatpush3.xpose.msk.msra.mxu0 %vm280_vm8, %v6054_v21  ;;  %8075 = vmatprep.mubr.msk.f32.mxu0 %vm8537_vm7, %v8536_v12 }
0x206c   :  { %8083 = vmatprep.subr.mxu0 %v8536_v12 }
0x206e   :  { %v6562_v41 = vpop.permute.xlu0 %6561  ;;  %8076 = vmatmul.mubr.msk.f32.vlgmr.msra.gmra.mrb[70].mxu0 %vm280_vm8, %v6052_v18  ;;  %v6224_v22 = vpop.permute.xlu1 %6223 }
0x206f   :  { %8084 = vmatpush3.xpose.msk.msra.mxu0 %vm280_vm8, %v6224_v22  ;;  %8085 = vmatprep.mubr.msk.f32.mxu0 %vm8537_vm7, %v8536_v12 }
0x2070   :  { %8093 = vmatprep.subr.mxu0 %v8536_v12 }
0x2072   :  { %v6733_v23 = vpop.permute.xlu0 %6732  ;;  %8086 = vmatmul.mubr.msk.f32.vlgmr.msra.gmra.mrb[72].mxu0 %vm280_vm8, %v9503_v38  ;;  %v6389_v51 = vpop.permute.xlu1 %6388 }
0x2073   :  { %8094 = vmatpush3.xpose.msk.msra.mxu0 %vm280_vm8, %v6391_v20  ;;  %8095 = vmatprep.mubr.msk.f32.mxu0 %vm8537_vm7, %v8536_v12 }
0x2074   :  { %8103 = vmatprep.subr.mxu0 %v8536_v12 }
0x2076   :  { %v5633_v24 = vpop.permute.xlu0 %5632  ;;  %8096 = vmatmul.mubr.msk.f32.vlgmr.msra.gmra.mrb[74].mxu0 %vm280_vm8, %v6389_v51  ;;  %v6560_v25 = vpop.permute.xlu1 %6559 }
0x2077   :  { %8049 = vmatpush3.msra.mxu1 %v5633_v24  ;;  %8104 = vmatpush3.xpose.msk.msra.mxu0 %vm280_vm8, %v6562_v41 }
0x2078   :  { %8105 = vmatprep.mubr.msk.f32.mxu0 %vm8537_vm7, %v8536_v12  ;;  %8113 = vmatprep.subr.mxu0 %v8536_v12 }
0x2079   :  { %8058 = vmatprep.subr.mxu1 %v8536_v12 }
0x207a   :  { %8106 = vmatmul.mubr.msk.f32.vlgmr.msra.gmra.mrb[76].mxu0 %vm280_vm8, %v6560_v25  ;;  %v6731_v61 = vpop.permute.xlu1 %6730 }
0x207b   :  { %8114 = vmatpush3.xpose.msk.msra.mxu0 %vm280_vm8, %v6733_v23  ;;  %8115 = vmatprep.mubr.msk.f32.mxu0 %vm8537_vm7, %v8536_v12 }
0x207e   :  { %8116 = vmatmul.mubr.msk.f32.vlgmr.msra.gmra.mrb[78].mxu0 %vm280_vm8, %v6731_v61  ;;  %v9577_v63 = vpop.permute.xlu1 %5799 }
0x2135   :  { %v5616_v26 = vpop.f32.mrb[64].mxu0 }
0x2136   :  { %v5620_v55 = vmul.f32 0.35355338, %v5616_v26  ;;  %v8047_v27 = vpop.f32.mrb[65].mxu0 }
0x2138   :  { %v5621_v28 = vsel %vm280_vm8, %v5620_v55, -inf }
0x2139   :  { %5622 = vmax.xlane.f32.xlu0 %v5621_v28  ;;  %v5783_v29 = vpop.f32.mrb[66].mxu0 }
0x213a   :  { %v5787_v30 = vmul.f32 0.35355338, %v5783_v29  ;;  %v8057_v31 = vpop.f32.mrb[67].mxu0 }
0x213c   :  { %v5788_v32 = vsel %vm280_vm8, %v5787_v30, -inf }
0x213d   :  { %5789 = vmax.xlane.f32.xlu1 %v5788_v32  ;;  %v5954_v62 = vpop.f32.mrb[68].mxu0 }
0x213e   :  { %v5958_v33 = vmul.f32 0.35355338, %v5954_v62  ;;  %v8067_v34 = vpop.f32.mrb[69].mxu0 }
0x2140   :  { %v5959_v35 = vsel %vm280_vm8, %v5958_v33, -inf }
0x2141   :  { %5960 = vmax.xlane.f32.xlu0 %v5959_v35  ;;  %v6125_v3 = vpop.f32.mrb[70].mxu0 }
0x2142   :  { %v6129_v36 = vmul.f32 0.35355338, %v6125_v3  ;;  %v8077_v39 = vpop.f32.mrb[71].mxu0 }
0x2144   :  { %v6130_v40 = vsel %vm280_vm8, %v6129_v36, -inf }
0x2145   :  { %6131 = vmax.xlane.f32.xlu0 %v6130_v40  ;;  %v6295_v42 = vpop.f32.mrb[72].mxu0 }
0x2146   :  { %v6299_v44 = vmul.f32 0.35355338, %v6295_v42  ;;  %v8087_v45 = vpop.f32.mrb[73].mxu0 }
0x2148   :  { %v6300_v46 = vsel %vm280_vm8, %v6299_v44, -inf }
0x2149   :  { %6301 = vmax.xlane.f32.xlu1 %v6300_v46  ;;  %v6462_v47 = vpop.f32.mrb[74].mxu0 }
0x214a   :  { %v6466_v48 = vmul.f32 0.35355338, %v6462_v47  ;;  %v8097_v49 = vpop.f32.mrb[75].mxu0 }
0x214c   :  { %v6467_v52 = vsel %vm280_vm8, %v6466_v48, -inf }
0x214d   :  { %6468 = vmax.xlane.f32.xlu0 %v6467_v52  ;;  %v6633_v53 = vpop.f32.mrb[76].mxu0 }
0x214e   :  { %v6637_v54 = vmul.f32 0.35355338, %v6633_v53  ;;  %v8107_v56 = vpop.f32.mrb[77].mxu0 }
0x2150   :  { %v6638_v57 = vsel %vm280_vm8, %v6637_v54, -inf }
0x2151   :  { %6639 = vmax.xlane.f32.xlu1 %v6638_v57  ;;  %v6804_v43 = vpop.f32.mrb[78].mxu0 }
0x2152   :  { %v6808_v58 = vmul.f32 0.35355338, %v6804_v43  ;;  %v8117_v59 = vpop.f32.mrb[79].mxu0 }
0x2154   :  { %v6809_v60 = vsel %vm280_vm8, %v6808_v58, -inf }
0x2155   :  { %6810 = vmax.xlane.f32.xlu0 %v6809_v60 }
0x2162   :  { %6141 = vrot.lane.b32.xlu1 %v9489_v14, %s9802_s30 }
0x216b   :  { %5970 = vrot.lane.b32.xlu0 %v9489_v14, %s9803_s18 }
0x21c6   :  { %v5623_v0 = vpop.xlane.xlu0 %5622 }
0x21c7   :  { %v5624_v1 = vsub.f32 %v5620_v55, %v5623_v0 }
0x21c9   :  { %v5625_v4 = vmul.f32 1.442695, %v5624_v1 }
0x21ca   :  { %v5790_v5 = vpop.xlane.xlu1 %5789 }
0x21cb   :  { %8443 = vpow2.f32 %v5625_v4  ;;  %v5791_v2 = vsub.f32 %v5787_v30, %v5790_v5 }
0x21cd   :  { %v5792_v6 = vmul.f32 1.442695, %v5791_v2 }
0x21ce   :  { %v5961_v37 = vpop.xlane.xlu0 %5960 }
0x21cf   :  { %8445 = vpow2.f32 %v5792_v6  ;;  %v5962_v7 = vsub.f32 %v5958_v33, %v5961_v37 }
0x21d1   :  { %v5963_v10 = vmul.f32 1.442695, %v5962_v7 }
0x21d2   :  { %v6132_v11 = vpop.xlane.xlu0 %6131 }
0x21d3   :  { %8447 = vpow2.f32 %v5963_v10  ;;  %v6133_v13 = vsub.f32 %v6129_v36, %v6132_v11 }
0x21d5   :  { %v8444_v15 = vpop.eup %8443  ;;  %v6134_v16 = vmul.f32 1.442695, %v6133_v13 }
0x21d6   :  { %v5627_v14 = vsel %vm280_vm8, %v8444_v15, 0.0  ;;  %v6302_v41 = vpop.xlane.xlu1 %6301 }
0x21d7   :  { %8449 = vpow2.f32 %v6134_v16  ;;  %5628 = vadd.xlane.f32.xlu1 %v5627_v14  ;;  %v6303_v22 = vsub.f32 %v6299_v44, %v6302_v41 }
0x21d9   :  { %v8446_v50 = vpop.eup %8445  ;;  %v6304_v25 = vmul.f32 1.442695, %v6303_v22 }
0x21da   :  { %v5794_v17 = vsel %vm280_vm8, %v8446_v50, 0.0  ;;  %v6469_v23 = vpop.xlane.xlu0 %6468 }
0x21db   :  { %5795 = vadd.xlane.f32.xlu0 %v5794_v17  ;;  %v6470_v24 = vsub.f32 %v6466_v48, %v6469_v23  ;;  %8451 = vpow2.f32 %v6304_v25 }
0x21dd   :  { %v8448_v18 = vpop.eup %8447  ;;  %v6471_v55 = vmul.f32 1.442695, %v6470_v24 }
0x21de   :  { %v5965_v19 = vsel %vm280_vm8, %v8448_v18, 0.0  ;;  %v6640_v51 = vpop.xlane.xlu1 %6639 }
0x21df   :  { %5966 = vadd.xlane.f32.xlu1 %v5965_v19  ;;  %v6641_v61 = vsub.f32 %v6637_v54, %v6640_v51  ;;  %8453 = vpow2.f32 %v6471_v55 }
0x21e1   :  { %v9582_v20 = vpop.eup %8449  ;;  %v6642_v27 = vmul.f32 1.442695, %v6641_v61 }
0x21e2   :  { %v6136_v21 = vsel %vm280_vm8, %v9582_v20, 0.0  ;;  %v6811_v26 = vpop.xlane.xlu0 %6810  ;;  %v6142_v36 = vpop.permute.xlu1 %6141 }
0x21e3   :  { %6137 = vadd.xlane.f32.xlu0 %v6136_v21  ;;  %v6812_v28 = vsub.f32 %v6808_v58, %v6811_v26  ;;  %8455 = vpow2.f32 %v6642_v27 }
0x21e5   :  { %v6813_v29 = vmul.f32 1.442695, %v6812_v28  ;;  %v8452_v30 = vpop.eup %8451 }
0x21e6   :  { %v6306_v32 = vsel %vm280_vm8, %v8452_v30, 0.0  ;;  %v5971_v39 = vpop.permute.xlu0 %5970 }
0x21e7   :  { %8457 = vpow2.f32 %v6813_v29 }
0x21e9   :  { %v9590_v31 = vpop.eup %8453 }
0x21ea   :  { %v6473_v33 = vsel %vm280_vm8, %v9590_v31, 0.0 }
0x21ed   :  { %v9593_v62 = vpop.eup %8455 }
0x21ee   :  { %v6644_v34 = vsel %vm280_vm8, %v9593_v62, 0.0 }
0x21f0   :  { %6478 = vrot.lane.b32.xlu1 %v9503_v38, %s9801_s29 }
0x21f1   :  { %v9599_v35 = vpop.eup %8457 }
0x21f2   :  { %v6815_v3 = vsel %vm280_vm8, %v9599_v35, 0.0 }
0x21f9   :  { %6311 = vrot.lane.b32.xlu0 %v9503_v38, %s9806_s27 }
0x2214   :  { %6307 = vadd.xlane.f32.xlu1 %v6306_v32 }
0x2218   :  { %6474 = vadd.xlane.f32.xlu0 %v6473_v33  ;;  %6645 = vadd.xlane.f32.xlu1 %v6644_v34 }
0x221c   :  { %6816 = vadd.xlane.f32.xlu1 %v6815_v3 }
0x222d   :  { %6820 = vrot.lane.b32.xlu1 %v9503_v38, %s9802_s30 }
0x222e   :  { %6649 = vrot.lane.b32.xlu0 %v9503_v38, %s9803_s18 }
0x2264   :  { %v5629_v40 = vpop.xlane.xlu1 %5628 }
0x2265   :  { %8459 = vrcp.f32 %v5629_v40 }
0x2268   :  { %v5796_v42 = vpop.xlane.xlu0 %5795 }
0x2269   :  { %8461 = vrcp.f32 %v5796_v42 }
0x226c   :  { %v5967_v44 = vpop.xlane.xlu1 %5966 }
0x226d   :  { %8463 = vrcp.f32 %v5967_v44 }
0x226f   :  { %v8460_v45 = vpop.eup %8459 }
0x2270   :  { %v5631_v46 = vmul.f32 %v8460_v45, %v8444_v15  ;;  %v6138_v47 = vpop.xlane.xlu0 %6137  ;;  %v6479_v57 = vpop.permute.xlu1 %6478  ;;  %v7413_v45 = vld [vmem:[%s9769_s9 + $0x28] sm:$0xff] }
0x2271   :  { %8465 = vrcp.f32 %v6138_v47  ;;  %v7414_v47 = vld [vmem:[%s9769_s9 + $0x30] sm:$0xff] }
0x2272   :  { %8051 = vmatmul.mubr.msk.f32.vlgmr.msra.gmra.mrb[54].mxu1 %vm280_vm8, %v5631_v46 }
0x2273   :  { %v8462_v48 = vpop.eup %8461  ;;  %8059 = vmatpush3.msra.mxu1 %v9577_v63  ;;  %8060 = vmatprep.mubr.msk.f32.mxu1 %vm8537_vm7, %v8536_v12 }
0x2274   :  { %v5798_v38 = vmul.f32 %v8462_v48, %v8446_v50  ;;  %8068 = vmatprep.subr.mxu1 %v8536_v12  ;;  %v6312_v56 = vpop.permute.xlu0 %6311  ;;  %v7415_v48 = vld [vmem:[%s9769_s9 + $0x38] sm:$0xff] }
0x2276   :  { %8061 = vmatmul.mubr.msk.f32.vlgmr.msra.gmra.mrb[56].mxu1 %vm280_vm8, %v5798_v38  ;;  %v8269_v38 = vpack.c.bf16 %v7415_v48, %v7414_v47 }
0x2277   :  { %v8464_v49 = vpop.eup %8463  ;;  %8069 = vmatpush3.msra.mxu1 %v5971_v39  ;;  %8070 = vmatprep.mubr.msk.f32.mxu1 %vm8537_vm7, %v8536_v12 }
0x2278   :  { %v5969_v52 = vmul.f32 %v8464_v49, %v8448_v18  ;;  %8078 = vmatprep.subr.mxu1 %v8536_v12 }
0x227a   :  { %8071 = vmatmul.mubr.msk.f32.vlgmr.msra.gmra.mrb[58].mxu1 %vm280_vm8, %v5969_v52 }
0x227b   :  { %v8466_v53 = vpop.eup %8465  ;;  %8079 = vmatpush3.msra.mxu1 %v6142_v36  ;;  %8080 = vmatprep.mubr.msk.f32.mxu1 %vm8537_vm7, %v8536_v12 }
0x227c   :  { %v6140_v54 = vmul.f32 %v8466_v53, %v9582_v20  ;;  %8088 = vmatprep.subr.mxu1 %v8536_v12 }
0x227e   :  { %8081 = vmatmul.mubr.msk.f32.vlgmr.msra.gmra.mrb[60].mxu1 %vm280_vm8, %v6140_v54 }
0x227f   :  { %8089 = vmatpush3.msra.mxu1 %v6312_v56  ;;  %8090 = vmatprep.mubr.msk.f32.mxu1 %vm8537_vm7, %v8536_v12  ;;  %v7410_v56 = vld [vmem:[%s9767_s7 + $0x1] ss:$0 sm:$0xff]  ;;  %s8553_s7 = smov [#allocation5]  }
0x2280   :  { %8098 = vmatprep.subr.mxu1 %v8536_v12 }
0x22a1   :  { %v6308_v43 = vpop.xlane.xlu1 %6307 }
0x22a2   :  { %8467 = vrcp.f32 %v6308_v43  ;;  %v7411_v43 = vld [vmem:[%s9768_s8 + $0x1] ss:$0 sm:$0xff] }
0x22a5   :  { %v6475_v58 = vpop.xlane.xlu0 %6474  ;;  %v6646_v59 = vpop.xlane.xlu1 %6645 }
0x22a6   :  { %8469 = vrcp.f32 %v6475_v58 }
0x22a7   :  { %8471 = vrcp.f32 %v6646_v59 }
0x22a9   :  { %v6817_v60 = vpop.xlane.xlu1 %6816  ;;  %v6650_v2 = vpop.permute.xlu0 %6649 }
0x22aa   :  { %8473 = vrcp.f32 %v6817_v60 }
0x22ac   :  { %v8468_v63 = vpop.eup %8467 }
0x22ad   :  { %v6310_v0 = vmul.f32 %v8468_v63, %v8452_v30  ;;  %v6821_v7 = vpop.permute.xlu1 %6820 }
0x22af   :  { %8091 = vmatmul.mubr.msk.f32.vlgmr.msra.gmra.mrb[62].mxu1 %vm280_vm8, %v6310_v0 }
0x22b0   :  { %v8470_v1 = vpop.eup %8469  ;;  %8099 = vmatpush3.msra.mxu1 %v6479_v57  ;;  %8100 = vmatprep.mubr.msk.f32.mxu1 %vm8537_vm7, %v8536_v12 }
0x22b1   :  { %v6477_v4 = vmul.f32 %v8470_v1, %v9590_v31  ;;  %8108 = vmatprep.subr.mxu1 %v8536_v12  ;;  %v8472_v5 = vpop.eup %8471 }
0x22b2   :  { %v6648_v6 = vmul.f32 %v8472_v5, %v9593_v62 }
0x22b3   :  { %8101 = vmatmul.mubr.msk.f32.vlgmr.msra.gmra.mrb[64].mxu1 %vm280_vm8, %v6477_v4 }
0x22b4   :  { %8109 = vmatpush3.msra.mxu1 %v6650_v2  ;;  %8110 = vmatprep.mubr.msk.f32.mxu1 %vm8537_vm7, %v8536_v12  ;;  %v8474_v37 = vpop.eup %8473 }
0x22b5   :  { %8118 = vmatprep.subr.mxu1 %v8536_v12  ;;  %v6819_v10 = vmul.f32 %v8474_v37, %v9599_v35  ;;  %v7421_v37 = vld [vmem:[%s9771_s11 + $0x48] sm:$0xff] }
0x22b7   :  { %8111 = vmatmul.mubr.msk.f32.vlgmr.msra.gmra.mrb[66].mxu1 %vm280_vm8, %v6648_v6  ;;  %v7420_v6 = vld [vmem:[%s9771_s11 + $0x40] sm:$0xff] }
0x22b8   :  { %8119 = vmatpush3.msra.mxu1 %v6821_v7  ;;  %8120 = vmatprep.mubr.msk.f32.mxu1 %vm8537_vm7, %v8536_v12  ;;  %v8273_v7 = vpack.c.bf16 %v7421_v37, %v7420_v6  ;;  %v7435_v6 = vld [vmem:[%s9774_s14 + $0x1] ss:$0 sm:$0xff] }
0x22ba   :  { %8274 = vmatprep.subr.bf16.mxu1 %v8273_v7 }
0x22bb   :  { %8121 = vmatmul.mubr.msk.f32.vlgmr.msra.gmra.mrb[68].mxu1 %vm280_vm8, %v6819_v10  ;;  %v7422_v10 = vld [vmem:[%s9771_s11 + $0x50] sm:$0xff] }
0x22bc   :  { %8276 = vmatpush3.bf16.msra.mxu1 %v8273_v7 }
0x2345   :  { %v5704_v11 = vpop.f32.mrb[54].mxu1 }
0x2346   :  { %5708 = vst.msk [vmem:[#allocation2] sm:$0xff] %vm280_vm8, %v5704_v11  ;;  %v8052_v13 = vpop.f32.mrb[55].mxu1  ;;  %v7423_v11 = vld [vmem:[%s9771_s11 + $0x58] sm:$0xff] }
0x2347   :  { %v8277_v13 = vpack.c.bf16 %v7423_v11, %v7422_v10 }
0x2349   :  { %v5871_v15 = vpop.f32.mrb[56].mxu1  ;;  %8278 = vmatprep.subr.bf16.mxu1 %v8277_v13 }
0x234a   :  { %5876 = vrot.lane.b32.xlu0 %v5871_v15, %s9798_s3  ;;  %v8062_v16 = vpop.f32.mrb[57].mxu1  ;;  %8280 = vmatpush3.bf16.msra.mxu1 %v8277_v13  ;;  %v7424_v15 = vld [vmem:[%s9771_s11 + $0x60] sm:$0xff] }
0x234b   :  { %v7425_v16 = vld [vmem:[%s9771_s11 + $0x68] sm:$0xff] }
0x234d   :  { %v6042_v14 = vpop.f32.mrb[58].mxu1 }
0x234e   :  { %6047 = vrot.lane.b32.xlu1 %v6042_v14, %s9799_s4  ;;  %v8072_v50 = vpop.f32.mrb[59].mxu1  ;;  %v8281_v14 = vpack.c.bf16 %v7425_v16, %v7424_v15 }
0x234f   :  { %v7426_v50 = vld [vmem:[%s9771_s11 + $0x70] sm:$0xff] }
0x2350   :  { %8282 = vmatprep.subr.bf16.mxu1 %v8281_v14 }
0x2351   :  { %v6213_v17 = vpop.f32.mrb[60].mxu1  ;;  %8284 = vmatpush3.bf16.msra.mxu1 %v8281_v14 }
0x2352   :  { %6218 = vrot.lane.b32.xlu1 %v6213_v17, %s9800_s17  ;;  %v8082_v12 = vpop.f32.mrb[61].mxu1  ;;  %v7427_v17 = vld [vmem:[%s9771_s11 + $0x78] sm:$0xff] }
0x2353   :  { %v8285_v12 = vpack.c.bf16 %v7427_v17, %v7426_v50 }
0x2355   :  { %8286 = vmatprep.subr.bf16.mxu1 %v8285_v12 }
0x2356   :  { %8288 = vmatpush3.bf16.msra.mxu1 %v8285_v12 }
0x2382   :  { %v6383_v18 = vpop.f32.mrb[62].mxu1 }
0x2383   :  { %6387 = vst.msk [vmem:[#allocation2 + $0x8] sm:$0xff] %vm280_vm8, %v6383_v18  ;;  %v8092_v19 = vpop.f32.mrb[63].mxu1  ;;  %v7417_v18 = vld [vmem:[%s9770_s10 + $0x1] ss:$0 sm:$0xff] }
0x2386   :  { %v6550_v20 = vpop.f32.mrb[64].mxu1 }
0x2387   :  { %6555 = vrot.lane.b32.xlu0 %v6550_v20, %s9798_s3  ;;  %v8102_v21 = vpop.f32.mrb[65].mxu1 }
0x238a   :  { %v6721_v41 = vpop.f32.mrb[66].mxu1 }
0x238b   :  { %6726 = vrot.lane.b32.xlu0 %v6721_v41, %s9799_s4  ;;  %v8112_v22 = vpop.f32.mrb[67].mxu1 }
0x238e   :  { %v6892_v23 = vpop.f32.mrb[68].mxu1 }
0x238f   :  { %6897 = vrot.lane.b32.xlu1 %v6892_v23, %s9800_s17  ;;  %v8122_v51 = vpop.f32.mrb[69].mxu1 }
0x23bc   :  { %v5877_v24 = vpop.permute.xlu0 %5876 }
0x23bd   :  { %5879 = vst.msk [vmem:[#allocation2] sm:$0xff] %vm614_vm9, %v5877_v24 }
0x23c0   :  { %v6048_v25 = vpop.permute.xlu1 %6047 }
0x23c1   :  { %6050 = vst.msk [vmem:[#allocation2] sm:$0xff] %vm786_vm10, %v6048_v25 }
0x23c4   :  { %v6219_v61 = vpop.permute.xlu1 %6218 }
0x23c5   :  { %6221 = vst.msk [vmem:[#allocation2] sm:$0xff] %vm958_vm11, %v6219_v61 }
0x23cc   :  { %v6901_v26 = vld [vmem:[#allocation2] sm:$0xff] }
0x23cd   :  { %v6903_v55 = vadd.f32 %v6901_v26, %v9476_v8 }
0x23cf   :  { %v6907_v27 = vsel %vm101_vm2, %v6903_v55, 0.0 }
0x23d0   :  { %6908 = vadd.xlane.f32.xlu0 %v6907_v27 }
0x23f9   :  { %v6556_v28 = vpop.permute.xlu0 %6555 }
0x23fa   :  { %6558 = vst.msk [vmem:[#allocation2 + $0x8] sm:$0xff] %vm614_vm9, %v6556_v28 }
0x23fd   :  { %v6727_v29 = vpop.permute.xlu0 %6726 }
0x23fe   :  { %6729 = vst.msk [vmem:[#allocation2 + $0x8] sm:$0xff] %vm786_vm10, %v6727_v29 }
0x2401   :  { %v6898_v30 = vpop.permute.xlu1 %6897 }
0x2402   :  { %6900 = vst.msk [vmem:[#allocation2 + $0x8] sm:$0xff] %vm958_vm11, %v6898_v30 }
0x2409   :  { %v6902_v31 = vld [vmem:[#allocation2 + $0x8] sm:$0xff] }
0x240a   :  { %v6904_v32 = vadd.f32 %v6902_v31, %v9478_v9  ;;  %v7412_v9 = vld [vmem:[%s9769_s9 + $0x20] sm:$0xff]  ;;  %s7224_s9 = sshll.u32 %s8553_s7, 4  ;;  %s9727_s9 = int_to_ptr.vmem [resolvable:$true] %s7224_s9 }
0x240b   :  { %v8265_v46 = vpack.c.bf16 %v7413_v45, %v7412_v9 }
0x240c   :  { %v6910_v62 = vsel %vm101_vm2, %v6904_v32, 0.0 }
0x240d   :  { %6911 = vadd.xlane.f32.xlu1 %v6910_v62  ;;  %8266 = vmatprep.subr.bf16.mxu0 %v8265_v46 }
0x240e   :  { %8268 = vmatpush3.bf16.msra.mxu0 %v8265_v46 }
0x240f   :  { %8270 = vmatprep.subr.bf16.mxu0 %v8269_v38 }
0x2412   :  { %8272 = vmatpush3.bf16.msra.mxu0 %v8269_v38 }
0x245d   :  { %v6909_v33 = vpop.xlane.xlu0 %6908 }
0x245e   :  { %v6913_v8 = vmul.f32 0.03125, %v6909_v33 }
0x2460   :  { %v6915_v34 = vsub.f32 %v6903_v55, %v6913_v8 }
0x2462   :  { %v6917_v35 = vmul.f32 %v6915_v34, %v6915_v34 }
0x2464   :  { %v6919_v3 = vsel %vm101_vm2, %v6917_v35, 0.0  ;;  %v7429_v35 = vld [vmem:[%s9772_s12 + $0x1] ss:$0 sm:$0xff] }
0x2465   :  { %6920 = vadd.xlane.f32.xlu0 %v6919_v3 }
0x249a   :  { %v6912_v36 = vpop.xlane.xlu1 %6911 }
0x249b   :  { %v6914_v39 = vmul.f32 0.03125, %v6912_v36 }
0x249d   :  { %v6916_v40 = vsub.f32 %v6904_v32, %v6914_v39 }
0x249f   :  { %v6918_v42 = vmul.f32 %v6916_v40, %v6916_v40 }
0x24a1   :  { %v6922_v44 = vsel %vm101_vm2, %v6918_v42, 0.0 }
0x24a2   :  { %6923 = vadd.xlane.f32.xlu0 %v6922_v44 }
0x24f2   :  { %v6921_v49 = vpop.xlane.xlu0 %6920 }
0x24f3   :  { %v6925_v52 = vmul.f32 0.03125, %v6921_v49 }
0x24f5   :  { %v6927_v53 = vadd.f32 1e-05, %v6925_v52 }
0x24f7   :  { %8475 = vrsqrt.f32 %v6927_v53 }
0x2501   :  { %v8476_v54 = vpop.eup %8475 }
0x2502   :  { %v6931_v57 = vmul.f32 %v8476_v54, %v6915_v34 }
0x2504   :  { %v6939_v58 = vmul.f32 %v7410_v56, %v6931_v57 }
0x2506   :  { %v9678_v59 = vadd.f32 %v7411_v43, %v6939_v58 }
0x2508   :  { %8131 = vmatprep.mubr.msk.f32.mxu0 %vm101_vm2, %v9678_v59 }
0x252f   :  { %v6924_v60 = vpop.xlane.xlu0 %6923 }
0x2530   :  { %v6926_v63 = vmul.f32 0.03125, %v6924_v60 }
0x2532   :  { %v6928_v0 = vadd.f32 1e-05, %v6926_v63 }
0x2534   :  { %8477 = vrsqrt.f32 %v6928_v0 }
0x253e   :  { %v8478_v1 = vpop.eup %8477 }
0x253f   :  { %v6932_v4 = vmul.f32 %v8478_v1, %v6916_v40 }
0x2541   :  { %v6940_v5 = vmul.f32 %v7410_v56, %v6932_v4  ;;  %v7434_v4 = vld [vmem:[%s9773_s13 + $0x1] ss:$0 sm:$0xff]  ;;  %s8487_s13 = scalar_lea.vmem %s7212_s0, 256 }
0x2542   :  { %p8488_p0 = scmp.ne.s32.totalorder %s7212_s0, %s8487_s13  ;;  %p8493_p2 = scmp.lt.s32.totalorder %s8487_s13, %s8487_s13 }
0x2543   :  { %v6948_v2 = vadd.f32 %v7411_v43, %v6940_v5 }
0x2544   :  { %p8494_p3 = por %p8493_p2, %p8492_p1 }
0x2545   :  { %8132 = vmatmul.mubr.msk.f32.vlgmr.msra.gmra.mrb[80].mxu0 %vm101_vm2, %v6948_v2 }
0x2546   :  { %p8495_p4 = pnand %p8494_p3, %p8488_p0 }
0x2618   :  { %v8133_v19 = vpop.f32.mrb[80].mxu0 }
0x2619   :  { %v7038_v20 = vadd.f32 %v8133_v19, %v7417_v18  ;;  %v7032_v21 = vpop.f32.mrb[81].mxu0 }
0x261a   :  { %v7033_v41 = vadd.f32 %v7417_v18, %v7032_v21 }
0x261b   :  { %v7044_v22 = vmul.f32 %v7038_v20, %v7038_v20  ;;  %v7042_v33 = vmul.f32 0.5, %v7038_v20 }
0x261c   :  { %v7043_v23 = vmul.f32 %v7033_v41, %v7033_v41  ;;  %v7041_v32 = vmul.f32 0.5, %v7033_v41 }
0x261d   :  { %v7046_v51 = vmul.f32 %v7044_v22, %v7038_v20 }
0x261e   :  { %v7045_v24 = vmul.f32 %v7043_v23, %v7033_v41 }
0x261f   :  { %v7048_v25 = vmul.f32 0.044715, %v7046_v51 }
0x2620   :  { %v7047_v61 = vmul.f32 0.044715, %v7045_v24 }
0x2621   :  { %v7050_v26 = vadd.f32 %v7048_v25, %v7038_v20 }
0x2622   :  { %v7049_v55 = vadd.f32 %v7047_v61, %v7033_v41 }
0x2623   :  { %v7052_v27 = vmul.f32 0.7978846, %v7050_v26 }
0x2624   :  { %v7051_v28 = vmul.f32 0.7978846, %v7049_v55 }
0x2625   :  { %8479 = vtanh.f32 %v7052_v27 }
0x2626   :  { %8481 = vtanh.f32 %v7051_v28 }
0x262f   :  { %v8480_v29 = vpop.eup %8479 }
0x2630   :  { %v8482_v30 = vpop.eup %8481  ;;  %v7056_v31 = vadd.f32 1.0, %v8480_v29 }
0x2631   :  { %v7055_v62 = vadd.f32 1.0, %v8482_v30 }
0x2632   :  { %v7058_v34 = vmul.f32 %v7056_v31, %v7042_v33 }
0x2633   :  { %v7057_v8 = vmul.f32 %v7055_v62, %v7041_v32 }
0x2635   :  { %8150 = vmatprep.mubr.msk.f32.mxu1 %vm1813_vm12, %v7057_v8 }
0x2636   :  { %8151 = vmatmul.mubr.msk.f32.vlgmr.msra.gmra.mrb[70].mxu1 %vm1813_vm12, %v7058_v34 }
0x2709   :  { %v8152_v3 = vpop.f32.mrb[70].mxu1 }
0x270a   :  { %v7152_v36 = vadd.f32 %v8152_v3, %v7429_v35  ;;  %v7146_v39 = vpop.f32.mrb[71].mxu1 }
0x270b   :  { %v7147_v40 = vadd.f32 %v7429_v35, %v7146_v39 }
0x270c   :  { %v7156_v42 = vadd.f32 %v7152_v36, %v6948_v2 }
0x270d   :  { %v7155_v44 = vadd.f32 %v7147_v40, %v9678_v59 }
0x270e   :  { %v7162_v9 = vsel %vm101_vm2, %v7156_v42, 0.0 }
0x270f   :  { %7163 = vadd.xlane.f32.xlu0 %v7162_v9  ;;  %v7159_v45 = vsel %vm101_vm2, %v7155_v44, 0.0 }
0x2710   :  { %7160 = vadd.xlane.f32.xlu1 %v7159_v45 }
0x279c   :  { %v7164_v46 = vpop.xlane.xlu0 %7163 }
0x279d   :  { %v7166_v47 = vmul.f32 0.03125, %v7164_v46  ;;  %v7161_v48 = vpop.xlane.xlu1 %7160 }
0x279e   :  { %v7165_v38 = vmul.f32 0.03125, %v7161_v48 }
0x279f   :  { %v7168_v49 = vsub.f32 %v7156_v42, %v7166_v47 }
0x27a0   :  { %v7167_v52 = vsub.f32 %v7155_v44, %v7165_v38 }
0x27a1   :  { %v7170_v53 = vmul.f32 %v7168_v49, %v7168_v49 }
0x27a2   :  { %v7169_v54 = vmul.f32 %v7167_v52, %v7167_v52 }
0x27a3   :  { %v7174_v56 = vsel %vm101_vm2, %v7170_v53, 0.0 }
0x27a4   :  { %7175 = vadd.xlane.f32.xlu0 %v7174_v56  ;;  %v7171_v57 = vsel %vm101_vm2, %v7169_v54, 0.0 }
0x27a5   :  { %7172 = vadd.xlane.f32.xlu1 %v7171_v57 }
0x2831   :  { %v7176_v43 = vpop.xlane.xlu0 %7175 }
0x2832   :  { %v7178_v58 = vmul.f32 0.03125, %v7176_v43  ;;  %v7173_v59 = vpop.xlane.xlu1 %7172 }
0x2833   :  { %v7177_v60 = vmul.f32 0.03125, %v7173_v59 }
0x2834   :  { %v7180_v63 = vadd.f32 1e-05, %v7178_v58 }
0x2835   :  { %v7179_v0 = vadd.f32 1e-05, %v7177_v60 }
0x2836   :  { %8483 = vrsqrt.f32 %v7180_v63 }
0x2837   :  { %8485 = vrsqrt.f32 %v7179_v0 }
0x2840   :  { %v8484_v1 = vpop.eup %8483 }
0x2841   :  { %v8486_v5 = vpop.eup %8485  ;;  %v7184_v2 = vmul.f32 %v8484_v1, %v7168_v49 }
0x2842   :  { %v7183_v37 = vmul.f32 %v8486_v5, %v7167_v52 }
0x2843   :  { %v7192_v7 = vmul.f32 %v7434_v4, %v7184_v2 }
0x2844   :  { %v7191_v10 = vmul.f32 %v7434_v4, %v7183_v37 }
0x2845   :  { %v7200_v11 = vadd.f32 %v7435_v6, %v7192_v7 }
0x2846   :  { %v7199_v13 = vadd.f32 %v7435_v6, %v7191_v10 }
0x2847   :  { %7202 = vst.msk [vmem:[#allocation3 + $0x8] sm:$0xff] %vm101_vm2, %v7200_v11 }
0x2848   :  { %7205 = vst.msk [vmem:[#allocation5 + $0x1] sm:$0x1] %vm7203_vm13, %v7200_v11  ;;  %7204 = vst.msk [vmem:[#allocation5] sm:$0x1] %vm7203_vm13, %v7199_v13 }
0x2849   :  { %7201 = vst.msk [vmem:[#allocation3] sm:$0xff] %vm101_vm2, %v7199_v13 }
0x284a   :  { %8498 = shalt.err (!%p8495_p4)
}
0x284b   :  { %s8499_s19 = scalar_lea.hbm %s9775_s15, 256 }
0x284c   :  { %p8500_p5 = scmp.ne.s32.totalorder %s9775_s15, %s8499_s19  ;;  %p8503_p6 = scmp.lt.u32.totalorder %s8499_s19, %s9775_s15 }
0x284e   :  { %p8505_p7 = pnand %p8503_p6, %p8500_p5 }
0x2850   :  { %8508 = shalt.err (!%p8505_p7)
}
0x2851   :  { %s8554_s6 = smov 128   ;;  %s8509_s20 = scalar_lea.vmem %s9727_s9, 32 }
0x2852   :  { %7217 = dma.vmem_to_hbm [thread:$0]  %s7212_s0, 256, %s9775_s15, [#allocation4], %s8554_s6, %s8554_s6, %s9798_s3  }
0x2853   :  { %p8510_p8 = scmp.ne.s32.totalorder %s9727_s9, %s8509_s20  ;;  %p8514_p9 = scmp.lt.s32.totalorder %s9727_s9, %s9727_s9 }
0x2854   :  { %p8515_p10 = scmp.lt.s32.totalorder %s8509_s20, %s8509_s20 }
0x2856   :  { %p8516_p11 = por %p8515_p10, %p8514_p9 }
0x2858   :  { %p8517_p12 = pnand %p8516_p11, %p8510_p8 }
0x285a   :  { %8520 = shalt.err (!%p8517_p12)
}
0x285b   :  { %s8521_s2 = scalar_lea.hbm %s9776_s16, 32 }
0x285c   :  { %p8522_p13 = scmp.ne.s32.totalorder %s9776_s16, %s8521_s2  ;;  %p8525_p0 = scmp.lt.u32.totalorder %s8521_s2, %s9776_s16 }
0x285e   :  { %p8527_p1 = pnand %p8525_p0, %p8522_p13 }
0x2860   :  { %8530 = shalt.err (!%p8527_p1)
}
0x2861   :  { %7227 = dma.vmem_to_hbm [thread:$0]  %s9727_s9, 32, %s9776_s16, [#allocation6]  }
0x2862   :  { %8531 = dma.done.wait [#allocation4], 256  }
0x2863   :  { %8532 = vsyncadd [#allocation4], 4294967040 }
0x2864   :  { %8533 = dma.done.wait [#allocation6], 32  }
0x2865   :  { %8534 = vsyncadd [#allocation6], 4294967264 }
0x2866   :  { %7234 = vsyncpa [#allocation4], 1 }
0x2867   :  { %7235 = vsyncpa [#allocation6], 1 }

</bundles_post_ra>
